<compile_context>
chip_gen: v7x
topology: tpu7x:2x2x1
jax: 0.10.0
libtpu: 0.0.40
codegen_flags: <defaults>
</compile_context>

<pallas_src>
import functools

import jax
import jax.numpy as jnp
from jax.experimental import pallas as pl
from jax.experimental.pallas import tpu as pltpu

TN = 512       # point-rows per grid step (big tiles: ~85% vs ~29% HBM roofline at 128)
LANES = 128    # output padded to a multiple of 128 lanes -> unmasked dense stores
BN_EPS = 1e-4


# ----------------------------- fused Pallas kernel -------------------------- #

def _semantic_fused_kernel(*refs, n_blocks):
    """One row-tile of the full Semantic forward (everything stays in VMEM)."""
    feats_ref = refs[0]
    w_in_ref = refs[1]
    blk = refs[2:2 + 2 * n_blocks]                       # [wb1_0, wb2_0, wb1_1, ...]
    (w1_ref, b1_ref, w2_ref, b2_ref,
     w3_ref, b3_ref) = refs[2 + 2 * n_blocks: 8 + 2 * n_blocks]
    out_ref = refs[8 + 2 * n_blocks]

    f32 = jnp.float32
    x = feats_ref[...]

    # input_conv: SubMConv3d(input_c, m, k=3) centre tap (BN scale folded in) -> ReLU
    h = jnp.maximum(jnp.dot(x, w_in_ref[...], preferred_element_type=f32), 0.0)

    # top-level UBlock ResidualBlocks: (BN+ReLU+conv, BN+ReLU+conv) + identity.
    # BN scale s is folded into wb1 / wb2 (relu(s*x) == s*relu(x), s > 0).
    for i in range(n_blocks):
        t = jnp.maximum(h, 0.0)
        t = jnp.dot(t, blk[2 * i][...], preferred_element_type=f32)
        t = jnp.maximum(t, 0.0)
        h = jnp.dot(t, blk[2 * i + 1][...], preferred_element_type=f32) + h

    # output_layer: BN+ReLU (scale folded into w1), then the linear head
    # (Dropout == identity in eval mode).  Last layer writes a lane-dense slab.
    t = jnp.maximum(h, 0.0)
    t = jnp.maximum(jnp.dot(t, w1_ref[...], preferred_element_type=f32) + b1_ref[...], 0.0)
    t = jnp.maximum(jnp.dot(t, w2_ref[...], preferred_element_type=f32) + b2_ref[...], 0.0)
    out_ref[...] = (jnp.dot(t, w3_ref[...], preferred_element_type=f32)
                    + b3_ref[...]).astype(out_ref.dtype)


# --------------------------- parameters & forward --------------------------- #

def init_params(key, input_c, m, classes, block_reps):
    ks = jax.random.split(key, 7 + 2 * block_reps)
    s = 0.1
    params = {
        # SubMConv3d centre-tap weight of the 3x3x3 kernel: (input_c, m); bias=False
        "w_in": s * jax.random.normal(ks[0], (input_c, m), jnp.float32),
        # linear head: Linear(m,m)+ReLU, Linear(m,m)+ReLU, Linear(m,classes)
        "w1": s * jax.random.normal(ks[1], (m, m), jnp.float32),
        "b1": s * jax.random.normal(ks[2], (m,), jnp.float32),
        "w2": s * jax.random.normal(ks[3], (m, m), jnp.float32),
        "b2": s * jax.random.normal(ks[4], (m,), jnp.float32),
        "w3": s * jax.random.normal(ks[5], (m, classes), jnp.float32),
        "b3": s * jax.random.normal(ks[6], (classes,), jnp.float32),
        # top-level UBlock ResidualBlocks (in == out == m -> identity i_branch)
        "res_blocks": [
            (s * jax.random.normal(ks[7 + 2 * i], (m, m), jnp.float32),
             s * jax.random.normal(ks[8 + 2 * i], (m, m), jnp.float32))
            for i in range(block_reps)
        ],
    }
    return params


def semantic_forward(params, feats, xyz, batch):
    del xyz, batch  # only consumed by the untranslated sparse/attention parts

    n, input_c = feats.shape
    m = params["w_in"].shape[1]
    classes = params["w3"].shape[1]
    n_blocks = len(params["res_blocks"])

    # eval-mode BatchNorm1d affine (set_bn_init + default running stats):
    #   y = x / sqrt(1 + eps)  -> positive scalar, folded into adjacent weights.
    s = (1.0 + BN_EPS) ** -0.5

    # lane-dense score slab: pad classes up to a multiple of 128 lanes.
    cpad = ((classes + LANES - 1) // LANES) * LANES
    w3p = jnp.pad(params["w3"], ((0, 0), (0, cpad - classes)))
    b3p = jnp.pad(params["b3"], ((0, cpad - classes),)).reshape(1, cpad)

    weights = [s * params["w_in"]]
    for wb1, wb2 in params["res_blocks"]:
        weights += [s * wb1, s * wb2]
    weights += [s * params["w1"], params["b1"].reshape(1, m),
                params["w2"], params["b2"].reshape(1, m),
                w3p, b3p]

    # pad rows exactly once.
    n_pad = TN * pl.cdiv(n, TN)
    feats_p = jnp.pad(feats, ((0, n_pad - n), (0, 0))) if n_pad != n else feats

    grid = (n_pad // TN,)
    in_specs = [pl.BlockSpec((TN, input_c), lambda i: (i, 0))]
    # weights/biases: full-array blocks with a constant index_map -> DMA'd once,
    # kept resident in VMEM across all grid steps.
    in_specs += [pl.BlockSpec(w.shape, lambda i: (0, 0)) for w in weights]

    out = pl.pallas_call(
        functools.partial(_semantic_fused_kernel, n_blocks=n_blocks),
        out_shape=jax.ShapeDtypeStruct((n_pad, cpad), jnp.float32),
        grid=grid,
        in_specs=in_specs,
        out_specs=pl.BlockSpec((TN, cpad), lambda i: (i, 0)),
        compiler_params=pltpu.CompilerParams(
            dimension_semantics=("parallel",)),
    )(feats_p, *weights)

    # drop row padding and the lane padding of the class dimension.
    return out[:n, :classes]


if __name__ == "__main__":
    key = jax.random.PRNGKey(0)
    k_feat, k_xyz, k_param = jax.random.split(key, 3)

    # small point cloud: N points, input_c feature channels (e.g. xyz + rgb)
    N, input_c, m, classes, block_reps = 2000, 6, 32, 13, 2
    feats = jax.random.normal(k_feat, (N, input_c), jnp.float32)
    xyz = jax.random.uniform(k_xyz, (N, 3), jnp.float32) * 10.0
    batch = jnp.zeros((N,), jnp.int32)

    params = init_params(k_param, input_c, m, classes, block_reps)

    fwd = jax.jit(semantic_forward)
    scores = fwd(params, feats, xyz, batch)
    jax.block_until_ready(scores)

    assert scores.shape == (N, classes), scores.shape
    assert scores.dtype == jnp.float32
    print("KERNEL_OK")
</pallas_src>

<mosaic_0001>
module attributes {stable_mosaic.version = 11 : i64} {
  func.func @_semantic_fused_kernel(%arg0: i32, %arg1: memref<512x6xf32, #tpu.memory_space<vmem>>, %arg2: memref<6x32xf32, #tpu.memory_space<vmem>>, %arg3: memref<32x32xf32, #tpu.memory_space<vmem>>, %arg4: memref<32x32xf32, #tpu.memory_space<vmem>>, %arg5: memref<32x32xf32, #tpu.memory_space<vmem>>, %arg6: memref<32x32xf32, #tpu.memory_space<vmem>>, %arg7: memref<32x32xf32, #tpu.memory_space<vmem>>, %arg8: memref<1x32xf32, #tpu.memory_space<vmem>>, %arg9: memref<32x32xf32, #tpu.memory_space<vmem>>, %arg10: memref<1x32xf32, #tpu.memory_space<vmem>>, %arg11: memref<32x128xf32, #tpu.memory_space<vmem>>, %arg12: memref<1x128xf32, #tpu.memory_space<vmem>>, %arg13: memref<512x128xf32, #tpu.memory_space<vmem>>) attributes {dimension_semantics = [#tpu.dimension_semantics<parallel>], iteration_bounds = array<i64: 4>, scalar_prefetch = 0 : i64, scratch_operands = 0 : i64, tpu.core_type = #tpu.core_type<tc>, window_params = [{transform_indices = @transform_0, window_bounds = array<i64: 512, 6>}, {pipeline_mode = #tpu.pipeline_mode<synchronous>, transform_indices = @transform_1, window_bounds = array<i64: 6, 32>}, {pipeline_mode = #tpu.pipeline_mode<synchronous>, transform_indices = @transform_2, window_bounds = array<i64: 32, 32>}, {pipeline_mode = #tpu.pipeline_mode<synchronous>, transform_indices = @transform_3, window_bounds = array<i64: 32, 32>}, {pipeline_mode = #tpu.pipeline_mode<synchronous>, transform_indices = @transform_4, window_bounds = array<i64: 32, 32>}, {pipeline_mode = #tpu.pipeline_mode<synchronous>, transform_indices = @transform_5, window_bounds = array<i64: 32, 32>}, {pipeline_mode = #tpu.pipeline_mode<synchronous>, transform_indices = @transform_6, window_bounds = array<i64: 32, 32>}, {pipeline_mode = #tpu.pipeline_mode<synchronous>, transform_indices = @transform_7, window_bounds = array<i64: 1, 32>}, {pipeline_mode = #tpu.pipeline_mode<synchronous>, transform_indices = @transform_8, window_bounds = array<i64: 32, 32>}, {pipeline_mode = #tpu.pipeline_mode<synchronous>, transform_indices = @transform_9, window_bounds = array<i64: 1, 32>}, {pipeline_mode = #tpu.pipeline_mode<synchronous>, transform_indices = @transform_10, window_bounds = array<i64: 32, 128>}, {pipeline_mode = #tpu.pipeline_mode<synchronous>, transform_indices = @transform_11, window_bounds = array<i64: 1, 128>}, {transform_indices = @transform_12, window_bounds = array<i64: 512, 128>}]} {
    %c0 = arith.constant 0 : index
    %c0_0 = arith.constant 0 : index
    %0 = vector.load %arg1[%c0, %c0_0] : memref<512x6xf32, #tpu.memory_space<vmem>>, vector<512x6xf32>
    %c0_1 = arith.constant 0 : index
    %c0_2 = arith.constant 0 : index
    %1 = vector.load %arg2[%c0_1, %c0_2] : memref<6x32xf32, #tpu.memory_space<vmem>>, vector<6x32xf32>
    %cst = arith.constant dense<0.000000e+00> : vector<512x32xf32>
    %2 = tpu.matmul %0, %1, %cst {dimension_numbers = #tpu.dot_dimension_numbers<[1], [0], [0], [1], [0, 0, 1, 1], [], []>} : vector<512x6xf32>, vector<6x32xf32>, vector<512x32xf32> -> vector<512x32xf32>
    %cst_3 = arith.constant 0.000000e+00 : f32
    %3 = vector.broadcast %cst_3 : f32 to vector<512x32xf32>
    %4 = arith.maximumf %2, %3 : vector<512x32xf32>
    %cst_4 = arith.constant 0.000000e+00 : f32
    %5 = vector.broadcast %cst_4 : f32 to vector<512x32xf32>
    %6 = arith.maximumf %4, %5 : vector<512x32xf32>
    %c0_5 = arith.constant 0 : index
    %c0_6 = arith.constant 0 : index
    %7 = vector.load %arg3[%c0_5, %c0_6] : memref<32x32xf32, #tpu.memory_space<vmem>>, vector<32x32xf32>
    %cst_7 = arith.constant dense<0.000000e+00> : vector<512x32xf32>
    %8 = tpu.matmul %6, %7, %cst_7 {dimension_numbers = #tpu.dot_dimension_numbers<[1], [0], [0], [1], [0, 0, 1, 1], [], []>} : vector<512x32xf32>, vector<32x32xf32>, vector<512x32xf32> -> vector<512x32xf32>
    %cst_8 = arith.constant 0.000000e+00 : f32
    %9 = vector.broadcast %cst_8 : f32 to vector<512x32xf32>
    %10 = arith.maximumf %8, %9 : vector<512x32xf32>
    %c0_9 = arith.constant 0 : index
    %c0_10 = arith.constant 0 : index
    %11 = vector.load %arg4[%c0_9, %c0_10] : memref<32x32xf32, #tpu.memory_space<vmem>>, vector<32x32xf32>
    %cst_11 = arith.constant dense<0.000000e+00> : vector<512x32xf32>
    %12 = tpu.matmul %10, %11, %cst_11 {dimension_numbers = #tpu.dot_dimension_numbers<[1], [0], [0], [1], [0, 0, 1, 1], [], []>} : vector<512x32xf32>, vector<32x32xf32>, vector<512x32xf32> -> vector<512x32xf32>
    %13 = arith.addf %12, %4 : vector<512x32xf32>
    %cst_12 = arith.constant 0.000000e+00 : f32
    %14 = vector.broadcast %cst_12 : f32 to vector<512x32xf32>
    %15 = arith.maximumf %13, %14 : vector<512x32xf32>
    %c0_13 = arith.constant 0 : index
    %c0_14 = arith.constant 0 : index
    %16 = vector.load %arg5[%c0_13, %c0_14] : memref<32x32xf32, #tpu.memory_space<vmem>>, vector<32x32xf32>
    %cst_15 = arith.constant dense<0.000000e+00> : vector<512x32xf32>
    %17 = tpu.matmul %15, %16, %cst_15 {dimension_numbers = #tpu.dot_dimension_numbers<[1], [0], [0], [1], [0, 0, 1, 1], [], []>} : vector<512x32xf32>, vector<32x32xf32>, vector<512x32xf32> -> vector<512x32xf32>
    %cst_16 = arith.constant 0.000000e+00 : f32
    %18 = vector.broadcast %cst_16 : f32 to vector<512x32xf32>
    %19 = arith.maximumf %17, %18 : vector<512x32xf32>
    %c0_17 = arith.constant 0 : index
    %c0_18 = arith.constant 0 : index
    %20 = vector.load %arg6[%c0_17, %c0_18] : memref<32x32xf32, #tpu.memory_space<vmem>>, vector<32x32xf32>
    %cst_19 = arith.constant dense<0.000000e+00> : vector<512x32xf32>
    %21 = tpu.matmul %19, %20, %cst_19 {dimension_numbers = #tpu.dot_dimension_numbers<[1], [0], [0], [1], [0, 0, 1, 1], [], []>} : vector<512x32xf32>, vector<32x32xf32>, vector<512x32xf32> -> vector<512x32xf32>
    %22 = arith.addf %21, %13 : vector<512x32xf32>
    %cst_20 = arith.constant 0.000000e+00 : f32
    %23 = vector.broadcast %cst_20 : f32 to vector<512x32xf32>
    %24 = arith.maximumf %22, %23 : vector<512x32xf32>
    %c0_21 = arith.constant 0 : index
    %c0_22 = arith.constant 0 : index
    %25 = vector.load %arg7[%c0_21, %c0_22] : memref<32x32xf32, #tpu.memory_space<vmem>>, vector<32x32xf32>
    %cst_23 = arith.constant dense<0.000000e+00> : vector<512x32xf32>
    %26 = tpu.matmul %24, %25, %cst_23 {dimension_numbers = #tpu.dot_dimension_numbers<[1], [0], [0], [1], [0, 0, 1, 1], [], []>} : vector<512x32xf32>, vector<32x32xf32>, vector<512x32xf32> -> vector<512x32xf32>
    %c0_24 = arith.constant 0 : index
    %c0_25 = arith.constant 0 : index
    %27 = vector.load %arg8[%c0_24, %c0_25] : memref<1x32xf32, #tpu.memory_space<vmem>>, vector<1x32xf32>
    %28 = vector.broadcast %27 : vector<1x32xf32> to vector<512x32xf32>
    %29 = arith.addf %26, %28 : vector<512x32xf32>
    %cst_26 = arith.constant 0.000000e+00 : f32
    %30 = vector.broadcast %cst_26 : f32 to vector<512x32xf32>
    %31 = arith.maximumf %29, %30 : vector<512x32xf32>
    %c0_27 = arith.constant 0 : index
    %c0_28 = arith.constant 0 : index
    %32 = vector.load %arg9[%c0_27, %c0_28] : memref<32x32xf32, #tpu.memory_space<vmem>>, vector<32x32xf32>
    %cst_29 = arith.constant dense<0.000000e+00> : vector<512x32xf32>
    %33 = tpu.matmul %31, %32, %cst_29 {dimension_numbers = #tpu.dot_dimension_numbers<[1], [0], [0], [1], [0, 0, 1, 1], [], []>} : vector<512x32xf32>, vector<32x32xf32>, vector<512x32xf32> -> vector<512x32xf32>
    %c0_30 = arith.constant 0 : index
    %c0_31 = arith.constant 0 : index
    %34 = vector.load %arg10[%c0_30, %c0_31] : memref<1x32xf32, #tpu.memory_space<vmem>>, vector<1x32xf32>
    %35 = vector.broadcast %34 : vector<1x32xf32> to vector<512x32xf32>
    %36 = arith.addf %33, %35 : vector<512x32xf32>
    %cst_32 = arith.constant 0.000000e+00 : f32
    %37 = vector.broadcast %cst_32 : f32 to vector<512x32xf32>
    %38 = arith.maximumf %36, %37 : vector<512x32xf32>
    %c0_33 = arith.constant 0 : index
    %c0_34 = arith.constant 0 : index
    %39 = vector.load %arg11[%c0_33, %c0_34] : memref<32x128xf32, #tpu.memory_space<vmem>>, vector<32x128xf32>
    %cst_35 = arith.constant dense<0.000000e+00> : vector<512x128xf32>
    %40 = tpu.matmul %38, %39, %cst_35 {dimension_numbers = #tpu.dot_dimension_numbers<[1], [0], [0], [1], [0, 0, 1, 1], [], []>} : vector<512x32xf32>, vector<32x128xf32>, vector<512x128xf32> -> vector<512x128xf32>
    %c0_36 = arith.constant 0 : index
    %c0_37 = arith.constant 0 : index
    %41 = vector.load %arg12[%c0_36, %c0_37] : memref<1x128xf32, #tpu.memory_space<vmem>>, vector<1x128xf32>
    %42 = vector.broadcast %41 : vector<1x128xf32> to vector<512x128xf32>
    %43 = arith.addf %40, %42 : vector<512x128xf32>
    %c0_38 = arith.constant 0 : index
    %c0_39 = arith.constant 0 : index
    %44 = vector.load %arg13[%c0_38, %c0_39] : memref<512x128xf32, #tpu.memory_space<vmem>>, vector<512x128xf32>
    tpu.vector_store %arg13[%c0_38, %c0_39], %43 {strides = array<i32>} : memref<512x128xf32, #tpu.memory_space<vmem>>, vector<512x128xf32>,
    return
  }
  func.func @transform_0(%arg0: i32) -> (i32, i32) {
    %c0_i32 = arith.constant 0 : i32
    %c0_i32_0 = arith.constant 0 : i32
    return %arg0, %c0_i32 : i32, i32
  }
  func.func @transform_1(%arg0: i32) -> (i32, i32) {
    %c0_i32 = arith.constant 0 : i32
    %c0_i32_0 = arith.constant 0 : i32
    %c0_i32_1 = arith.constant 0 : i32
    return %c0_i32, %c0_i32_0 : i32, i32
  }
  func.func @transform_2(%arg0: i32) -> (i32, i32) {
    %c0_i32 = arith.constant 0 : i32
    %c0_i32_0 = arith.constant 0 : i32
    %c0_i32_1 = arith.constant 0 : i32
    return %c0_i32, %c0_i32_0 : i32, i32
  }
  func.func @transform_3(%arg0: i32) -> (i32, i32) {
    %c0_i32 = arith.constant 0 : i32
    %c0_i32_0 = arith.constant 0 : i32
    %c0_i32_1 = arith.constant 0 : i32
    return %c0_i32, %c0_i32_0 : i32, i32
  }
  func.func @transform_4(%arg0: i32) -> (i32, i32) {
    %c0_i32 = arith.constant 0 : i32
    %c0_i32_0 = arith.constant 0 : i32
    %c0_i32_1 = arith.constant 0 : i32
    return %c0_i32, %c0_i32_0 : i32, i32
  }
  func.func @transform_5(%arg0: i32) -> (i32, i32) {
    %c0_i32 = arith.constant 0 : i32
    %c0_i32_0 = arith.constant 0 : i32
    %c0_i32_1 = arith.constant 0 : i32
    return %c0_i32, %c0_i32_0 : i32, i32
  }
  func.func @transform_6(%arg0: i32) -> (i32, i32) {
    %c0_i32 = arith.constant 0 : i32
    %c0_i32_0 = arith.constant 0 : i32
    %c0_i32_1 = arith.constant 0 : i32
    return %c0_i32, %c0_i32_0 : i32, i32
  }
  func.func @transform_7(%arg0: i32) -> (i32, i32) {
    %c0_i32 = arith.constant 0 : i32
    %c0_i32_0 = arith.constant 0 : i32
    %c0_i32_1 = arith.constant 0 : i32
    return %c0_i32, %c0_i32_0 : i32, i32
  }
  func.func @transform_8(%arg0: i32) -> (i32, i32) {
    %c0_i32 = arith.constant 0 : i32
    %c0_i32_0 = arith.constant 0 : i32
    %c0_i32_1 = arith.constant 0 : i32
    return %c0_i32, %c0_i32_0 : i32, i32
  }
  func.func @transform_9(%arg0: i32) -> (i32, i32) {
    %c0_i32 = arith.constant 0 : i32
    %c0_i32_0 = arith.constant 0 : i32
    %c0_i32_1 = arith.constant 0 : i32
    return %c0_i32, %c0_i32_0 : i32, i32
  }
  func.func @transform_10(%arg0: i32) -> (i32, i32) {
    %c0_i32 = arith.constant 0 : i32
    %c0_i32_0 = arith.constant 0 : i32
    %c0_i32_1 = arith.constant 0 : i32
    return %c0_i32, %c0_i32_0 : i32, i32
  }
  func.func @transform_11(%arg0: i32) -> (i32, i32) {
    %c0_i32 = arith.constant 0 : i32
    %c0_i32_0 = arith.constant 0 : i32
    %c0_i32_1 = arith.constant 0 : i32
    return %c0_i32, %c0_i32_0 : i32, i32
  }
  func.func @transform_12(%arg0: i32) -> (i32, i32) {
    %c0_i32 = arith.constant 0 : i32
    %c0_i32_0 = arith.constant 0 : i32
    return %arg0, %c0_i32 : i32, i32
  }
}

</mosaic_0001>

<bundles_post_ra>
// kernel: semantic_forward.1
= control target key start
LH: loop header
LB: loop body
LE: loop exit
PB: predicated region body
PF: predicated region fallthrough
CT: control target
= control target key end

     0   :  { %s7816_s21 = smov 0   ;;  %s9482_s0 = inlined_call_operand.vmem [shape: f32[2048,6], index: 0, kind: input, shape index: {}]   ;;  %s9483_s1 = inlined_call_operand.vmem [shape: f32[6,32], index: 1, kind: input, shape index: {}]   ;;  %s9484_s2 = inlined_call_operand.vmem [shape: f32[32,32], index: 2, kind: input, shape index: {}]   ;;  %s9485_s3 = inlined_call_operand.vmem [shape: f32[32,32], index: 3, kind: input, shape index: {}]   ;;  %s9486_s4 = inlined_call_operand.vmem [shape: f32[32,32], index: 4, kind: input, shape index: {}]   ;;  %s9487_s5 = inlined_call_operand.vmem [shape: f32[32,32], index: 5, kind: input, shape index: {}]   ;;  %s9488_s6 = inlined_call_operand.vmem [shape: f32[32,32], index: 6, kind: input, shape index: {}]   ;;  %s9489_s7 = inlined_call_operand.vmem [shape: f32[1,32], index: 7, kind: input, shape index: {}]   ;;  %s9490_s8 = inlined_call_operand.vmem [shape: f32[32,32], index: 8, kind: input, shape index: {}]   ;;  %s9491_s9 = inlined_call_operand.vmem [shape: f32[1,32], index: 9, kind: input, shape index: {}]   ;;  %s9492_s10 = inlined_call_operand.vmem [shape: f32[32,128], index: 10, kind: input, shape index: {}]   ;;  %s9493_s11 = inlined_call_operand.vmem [shape: f32[1,128], index: 11, kind: input, shape index: {}]   ;;  %s9494_s12 = inlined_call_operand.vmem [shape: f32[2048,128], index: 12, kind: output, shape index: {}]  }
   0x1 LB: > { %s5785_s22 = sadd.s32 4294967295, %s7749_s21   ;;  %p5789_p0 = scmp.ge.s32.totalorder %s7749_s21, 1  ;;  %s7749_s21 = sphi %s7816_s21, %s22_s21  }
   0x2   : > { %p363_p1 = scmp.lt.s32.totalorder %s7749_s21, 5 }
   0x4   : > { %p364_p2 = pnand %p5789_p0, %p363_p1 }
   0x6   : > { %367 = sbr.rel (%p364_p2) target bundleno = 1883 (0x75b), region = 68 }
   0xd   : > { %v481_v0 = vld [vmem:[%s9483_s1] sm:$0x3f]  ;;  %vm675_vm0 = vcmask 1045504   ;;  %s5790_s25 = sshll.u32 %s5785_s22, 6  ;;  %vm482_vm1 = vcmask 48128   ;;  %v1193_v2 = vld [vmem:[%s9484_s2 + $0x8] sm:$0xff] }
   0xe   : > { %6853 = vmatprep.subr.msk.mxu0 %vm675_vm0, %v481_v0  ;;  %p406_p3 = scmp.lt.s32.totalorder %s5790_s25, 255  ;;  %v1192_v1 = vld [vmem:[%s9484_s2] sm:$0xff]  ;;  %v1194_v49 = vld [vmem:[%s9484_s2 + $0x10] sm:$0xff]  ;;  %v1195_v50 = vld [vmem:[%s9484_s2 + $0x18] sm:$0xff]  ;;  %vm1196_vm2 = vcmask 261120  }
   0xf   : > { %6854 = vmatpush3.msk.msra.mxu0 %vm675_vm0, %v481_v0  ;;  %v7679_v3 = vpack.c.bf16 %v1193_v2, %v1192_v1  ;;  %v7683_v51 = vpack.c.bf16 %v1195_v50, %v1194_v49 }
  0x10   : > { %s9708_s25 = smov (!%p406_p3, %s5790_s25), 255 }
  0x11   : > { %s5791_s26 = sshll.u32 %s9708_s25, 3  ;;  %7680 = vmatprep.subr.bf16.mxu1 %v7679_v3 }
  0x12   : > { %s7841_s15 = scalar_lea.vmem %s9482_s0, %s5791_s26  ;;  %7682 = vmatpush3.bf16.msra.mxu1 %v7679_v3  ;;  %s9349_s16 = scalar_lea.vmem %s9494_s12, %s5791_s26 }
  0x13   : > { %v417_v4 = vld [vmem:[%s7841_s15] sm:$0xff]  ;;  %v418_v5 = vld [vmem:[%s7841_s15 + $0x8] sm:$0xff]  ;;  %v419_v6 = vld [vmem:[%s7841_s15 + $0x10] sm:$0xff]  ;;  %7684 = vmatprep.subr.bf16.mxu1 %v7683_v51 }
  0x14   : > { %6855 = vmatprep.mubr.msk.f32.mxu0 %vm482_vm1, %v417_v4  ;;  %v420_v7 = vld [vmem:[%s7841_s15 + $0x18] sm:$0xff]  ;;  %v421_v8 = vld [vmem:[%s7841_s15 + $0x20] sm:$0xff]  ;;  %v422_v9 = vld [vmem:[%s7841_s15 + $0x28] sm:$0xff] }
  0x15   : > { %6856 = vmatmul.mubr.msk.f32.vlgmr.msra.gmra.mrb[0].mxu0 %vm482_vm1, %v418_v5  ;;  %v423_v10 = vld [vmem:[%s7841_s15 + $0x30] sm:$0xff]  ;;  %v424_v11 = vld [vmem:[%s7841_s15 + $0x38] sm:$0xff]  ;;  %v425_v12 = vld [vmem:[%s7841_s15 + $0x40] sm:$0xff] }
  0x16   : > { %6858 = vmatprep.mubr.msk.f32.mxu0 %vm482_vm1, %v419_v6  ;;  %v426_v13 = vld [vmem:[%s7841_s15 + $0x48] sm:$0xff]  ;;  %v427_v14 = vld [vmem:[%s7841_s15 + $0x50] sm:$0xff]  ;;  %v428_v15 = vld [vmem:[%s7841_s15 + $0x58] sm:$0xff]  ;;  %7686 = vmatpush3.bf16.msra.mxu1 %v7683_v51 }
  0x17   : > { %v429_v16 = vld [vmem:[%s7841_s15 + $0x60] sm:$0xff]  ;;  %v430_v17 = vld [vmem:[%s7841_s15 + $0x68] sm:$0xff]  ;;  %v431_v18 = vld [vmem:[%s7841_s15 + $0x70] sm:$0xff] }
  0x18   : > { %v432_v19 = vld [vmem:[%s7841_s15 + $0x78] sm:$0xff]  ;;  %v433_v20 = vld [vmem:[%s7841_s15 + $0x80] sm:$0xff]  ;;  %v434_v21 = vld [vmem:[%s7841_s15 + $0x88] sm:$0xff] }
  0x19   : > { %6859 = vmatmul.mubr.msk.f32.gmra.mrb[2].mxu0 %vm482_vm1, %v420_v7  ;;  %v435_v22 = vld [vmem:[%s7841_s15 + $0x90] sm:$0xff]  ;;  %v436_v23 = vld [vmem:[%s7841_s15 + $0x98] sm:$0xff]  ;;  %v437_v24 = vld [vmem:[%s7841_s15 + $0xa0] sm:$0xff] }
  0x1a   : > { %6861 = vmatprep.mubr.msk.f32.mxu0 %vm482_vm1, %v421_v8  ;;  %v438_v25 = vld [vmem:[%s7841_s15 + $0xa8] sm:$0xff]  ;;  %v439_v26 = vld [vmem:[%s7841_s15 + $0xb0] sm:$0xff]  ;;  %v440_v27 = vld [vmem:[%s7841_s15 + $0xb8] sm:$0xff] }
  0x1b   : > { %v441_v28 = vld [vmem:[%s7841_s15 + $0xc0] sm:$0xff]  ;;  %v442_v29 = vld [vmem:[%s7841_s15 + $0xc8] sm:$0xff]  ;;  %v443_v30 = vld [vmem:[%s7841_s15 + $0xd0] sm:$0xff] }
  0x1c   : > { %v444_v31 = vld [vmem:[%s7841_s15 + $0xd8] sm:$0xff]  ;;  %v445_v32 = vld [vmem:[%s7841_s15 + $0xe0] sm:$0xff]  ;;  %v446_v33 = vld [vmem:[%s7841_s15 + $0xe8] sm:$0xff] }
  0x1d   : > { %6862 = vmatmul.mubr.msk.f32.gmra.mrb[4].mxu0 %vm482_vm1, %v422_v9  ;;  %v447_v34 = vld [vmem:[%s7841_s15 + $0xf0] sm:$0xff]  ;;  %v448_v35 = vld [vmem:[%s7841_s15 + $0xf8] sm:$0xff]  ;;  %v449_v36 = vld [vmem:[%s7841_s15 + $0x100] sm:$0xff] }
  0x1e   : > { %6864 = vmatprep.mubr.msk.f32.mxu0 %vm482_vm1, %v423_v10  ;;  %v450_v37 = vld [vmem:[%s7841_s15 + $0x108] sm:$0xff]  ;;  %v451_v38 = vld [vmem:[%s7841_s15 + $0x110] sm:$0xff]  ;;  %v452_v39 = vld [vmem:[%s7841_s15 + $0x118] sm:$0xff] }
  0x1f   : > { %v453_v40 = vld [vmem:[%s7841_s15 + $0x120] sm:$0xff]  ;;  %v454_v41 = vld [vmem:[%s7841_s15 + $0x128] sm:$0xff]  ;;  %v455_v42 = vld [vmem:[%s7841_s15 + $0x130] sm:$0xff] }
  0x20   : > { %v456_v43 = vld [vmem:[%s7841_s15 + $0x138] sm:$0xff]  ;;  %v457_v44 = vld [vmem:[%s7841_s15 + $0x140] sm:$0xff]  ;;  %v458_v45 = vld [vmem:[%s7841_s15 + $0x148] sm:$0xff] }
  0x21   : > { %6865 = vmatmul.mubr.msk.f32.gmra.mrb[6].mxu0 %vm482_vm1, %v424_v11  ;;  %v459_v46 = vld [vmem:[%s7841_s15 + $0x150] sm:$0xff]  ;;  %v460_v47 = vld [vmem:[%s7841_s15 + $0x158] sm:$0xff]  ;;  %v461_v48 = vld [vmem:[%s7841_s15 + $0x160] sm:$0xff] }
  0x22   : > { %6867 = vmatprep.mubr.msk.f32.mxu0 %vm482_vm1, %v425_v12  ;;  %v462_v52 = vld [vmem:[%s7841_s15 + $0x168] sm:$0xff]  ;;  %v463_v53 = vld [vmem:[%s7841_s15 + $0x170] sm:$0xff]  ;;  %v464_v54 = vld [vmem:[%s7841_s15 + $0x178] sm:$0xff] }
  0x23   : > { %v465_v55 = vld [vmem:[%s7841_s15 + $0x180] sm:$0xff]  ;;  %v466_v56 = vld [vmem:[%s7841_s15 + $0x188] sm:$0xff]  ;;  %v467_v57 = vld [vmem:[%s7841_s15 + $0x190] sm:$0xff] }
  0x24   : > { %v468_v58 = vld [vmem:[%s7841_s15 + $0x198] sm:$0xff]  ;;  %v469_v59 = vld [vmem:[%s7841_s15 + $0x1a0] sm:$0xff]  ;;  %v470_v60 = vld [vmem:[%s7841_s15 + $0x1a8] sm:$0xff] }
  0x25   : > { %6868 = vmatmul.mubr.msk.f32.gmra.mrb[8].mxu0 %vm482_vm1, %v426_v13  ;;  %v471_v61 = vld [vmem:[%s7841_s15 + $0x1b0] sm:$0xff]  ;;  %v472_v62 = vld [vmem:[%s7841_s15 + $0x1b8] sm:$0xff]  ;;  %v473_v63 = vld [vmem:[%s7841_s15 + $0x1c0] sm:$0xff] }
  0x26   : > { %6870 = vmatprep.mubr.msk.f32.mxu0 %vm482_vm1, %v427_v14  ;;  %v474_v0 = vld [vmem:[%s7841_s15 + $0x1c8] sm:$0xff]  ;;  %v475_v1 = vld [vmem:[%s7841_s15 + $0x1d0] sm:$0xff]  ;;  %v476_v2 = vld [vmem:[%s7841_s15 + $0x1d8] sm:$0xff] }
  0x27   : > { %v477_v3 = vld [vmem:[%s7841_s15 + $0x1e0] sm:$0xff]  ;;  %v478_v4 = vld [vmem:[%s7841_s15 + $0x1e8] sm:$0xff]  ;;  %v479_v5 = vld [vmem:[%s7841_s15 + $0x1f0] sm:$0xff] }
  0x28   : > { %v480_v6 = vld [vmem:[%s7841_s15 + $0x1f8] sm:$0xff]  ;;  %v1838_v7 = vld [vmem:[%s9485_s3] sm:$0xff]  ;;  %v1839_v8 = vld [vmem:[%s9485_s3 + $0x8] sm:$0xff] }
  0x29   : > { %6871 = vmatmul.mubr.msk.f32.gmra.mrb[10].mxu0 %vm482_vm1, %v428_v15  ;;  %v7687_v9 = vpack.c.bf16 %v1839_v8, %v1838_v7  ;;  %v1840_v14 = vld [vmem:[%s9485_s3 + $0x10] sm:$0xff]  ;;  %v1841_v15 = vld [vmem:[%s9485_s3 + $0x18] sm:$0xff] }
  0x2a   : > { %6873 = vmatprep.mubr.msk.f32.mxu0 %vm482_vm1, %v429_v16 }
  0x2b   : > { %7688 = vmatprep.subr.bf16.mxu0 %v7687_v9 }
  0x2c   : > { %7690 = vmatpush3.bf16.msra.mxu0 %v7687_v9 }
  0x2d   : > { %6874 = vmatmul.mubr.msk.f32.gmra.mrb[12].mxu0 %vm482_vm1, %v430_v17 }
  0x2e   : > { %6876 = vmatprep.mubr.msk.f32.mxu0 %vm482_vm1, %v431_v18  ;;  %v7691_v18 = vpack.c.bf16 %v1841_v15, %v1840_v14 }
  0x30   : > { %7692 = vmatprep.subr.bf16.mxu0 %v7691_v18 }
  0x31   : > { %6877 = vmatmul.mubr.msk.f32.gmra.mrb[14].mxu0 %vm482_vm1, %v432_v19 }
  0x32   : > { %6879 = vmatprep.mubr.msk.f32.mxu0 %vm482_vm1, %v433_v20  ;;  %7694 = vmatpush3.bf16.msra.mxu0 %v7691_v18 }
  0x35   : > { %6880 = vmatmul.mubr.msk.f32.gmra.mrb[16].mxu0 %vm482_vm1, %v434_v21 }
  0x36   : > { %6882 = vmatprep.mubr.msk.f32.mxu0 %vm482_vm1, %v435_v22 }
  0x39   : > { %6883 = vmatmul.mubr.msk.f32.gmra.mrb[18].mxu0 %vm482_vm1, %v436_v23 }
  0x3a   : > { %6885 = vmatprep.mubr.msk.f32.mxu0 %vm482_vm1, %v437_v24 }
  0x3d   : > { %6886 = vmatmul.mubr.msk.f32.gmra.mrb[20].mxu0 %vm482_vm1, %v438_v25 }
  0x3e   : > { %6888 = vmatprep.mubr.msk.f32.mxu0 %vm482_vm1, %v439_v26 }
  0x41   : > { %6889 = vmatmul.mubr.msk.f32.gmra.mrb[22].mxu0 %vm482_vm1, %v440_v27 }
  0x42   : > { %6891 = vmatprep.mubr.msk.f32.mxu0 %vm482_vm1, %v441_v28 }
  0x45   : > { %6892 = vmatmul.mubr.msk.f32.gmra.mrb[24].mxu0 %vm482_vm1, %v442_v29 }
  0x46   : > { %6894 = vmatprep.mubr.msk.f32.mxu0 %vm482_vm1, %v443_v30 }
  0x49   : > { %6895 = vmatmul.mubr.msk.f32.gmra.mrb[26].mxu0 %vm482_vm1, %v444_v31 }
  0x4a   : > { %6897 = vmatprep.mubr.msk.f32.mxu0 %vm482_vm1, %v445_v32 }
  0x4d   : > { %6898 = vmatmul.mubr.msk.f32.gmra.mrb[28].mxu0 %vm482_vm1, %v446_v33 }
  0x4e   : > { %6900 = vmatprep.mubr.msk.f32.mxu0 %vm482_vm1, %v447_v34 }
  0x51   : > { %6901 = vmatmul.mubr.msk.f32.gmra.mrb[30].mxu0 %vm482_vm1, %v448_v35 }
  0x52   : > { %6903 = vmatprep.mubr.msk.f32.mxu0 %vm482_vm1, %v449_v36 }
  0x55   : > { %6904 = vmatmul.mubr.msk.f32.gmra.mrb[32].mxu0 %vm482_vm1, %v450_v37 }
  0x56   : > { %6906 = vmatprep.mubr.msk.f32.mxu0 %vm482_vm1, %v451_v38 }
  0x59   : > { %6907 = vmatmul.mubr.msk.f32.gmra.mrb[34].mxu0 %vm482_vm1, %v452_v39 }
  0x5a   : > { %6909 = vmatprep.mubr.msk.f32.mxu0 %vm482_vm1, %v453_v40 }
  0x5d   : > { %6910 = vmatmul.mubr.msk.f32.gmra.mrb[36].mxu0 %vm482_vm1, %v454_v41 }
  0x5e   : > { %6912 = vmatprep.mubr.msk.f32.mxu0 %vm482_vm1, %v455_v42 }
  0x61   : > { %6913 = vmatmul.mubr.msk.f32.gmra.mrb[38].mxu0 %vm482_vm1, %v456_v43 }
  0x62   : > { %6915 = vmatprep.mubr.msk.f32.mxu0 %vm482_vm1, %v457_v44 }
  0x65   : > { %6916 = vmatmul.mubr.msk.f32.gmra.mrb[40].mxu0 %vm482_vm1, %v458_v45 }
  0x66   : > { %6918 = vmatprep.mubr.msk.f32.mxu0 %vm482_vm1, %v459_v46 }
  0x69   : > { %6919 = vmatmul.mubr.msk.f32.gmra.mrb[42].mxu0 %vm482_vm1, %v460_v47 }
  0x6a   : > { %6921 = vmatprep.mubr.msk.f32.mxu0 %vm482_vm1, %v461_v48 }
  0x6d   : > { %6922 = vmatmul.mubr.msk.f32.gmra.mrb[44].mxu0 %vm482_vm1, %v462_v52 }
  0x6e   : > { %6924 = vmatprep.mubr.msk.f32.mxu0 %vm482_vm1, %v463_v53 }
  0x71   : > { %6925 = vmatmul.mubr.msk.f32.gmra.mrb[46].mxu0 %vm482_vm1, %v464_v54 }
  0x72   : > { %6927 = vmatprep.mubr.msk.f32.mxu0 %vm482_vm1, %v465_v55 }
  0x75   : > { %6928 = vmatmul.mubr.msk.f32.gmra.mrb[48].mxu0 %vm482_vm1, %v466_v56 }
  0x76   : > { %6930 = vmatprep.mubr.msk.f32.mxu0 %vm482_vm1, %v467_v57 }
  0x79   : > { %6931 = vmatmul.mubr.msk.f32.gmra.mrb[50].mxu0 %vm482_vm1, %v468_v58 }
  0x7a   : > { %6933 = vmatprep.mubr.msk.f32.mxu0 %vm482_vm1, %v469_v59 }
  0x7d   : > { %6934 = vmatmul.mubr.msk.f32.gmra.mrb[52].mxu0 %vm482_vm1, %v470_v60 }
  0x7e   : > { %6936 = vmatprep.mubr.msk.f32.mxu0 %vm482_vm1, %v471_v61 }
  0x81   : > { %6937 = vmatmul.mubr.msk.f32.gmra.mrb[54].mxu0 %vm482_vm1, %v472_v62 }
  0x82   : > { %6939 = vmatprep.mubr.msk.f32.mxu0 %vm482_vm1, %v473_v63 }
  0x85   : > { %6940 = vmatmul.mubr.msk.f32.gmra.mrb[56].mxu0 %vm482_vm1, %v474_v0 }
  0x86   : > { %6942 = vmatprep.mubr.msk.f32.mxu0 %vm482_vm1, %v475_v1 }
  0x89   : > { %6943 = vmatmul.mubr.msk.f32.gmra.mrb[58].mxu0 %vm482_vm1, %v476_v2 }
  0x8a   : > { %6945 = vmatprep.mubr.msk.f32.mxu0 %vm482_vm1, %v477_v3 }
  0x8d   : > { %6946 = vmatmul.mubr.msk.f32.gmra.mrb[60].mxu0 %vm482_vm1, %v478_v4 }
  0x8e   : > { %6948 = vmatprep.mubr.msk.f32.mxu0 %vm482_vm1, %v479_v5 }
  0x91   : > { %6949 = vmatmul.mubr.msk.f32.gmra.mrb[62].mxu0 %vm482_vm1, %v480_v6 }
  0xe8   : > { %v7983_v10 = vpop.f32.mrb[0].mxu0 }
  0xe9   : > { %v9546_v11 = vmax.f32 %v7983_v10, 0.0  ;;  %v7986_v12 = vpop.f32.mrb[1].mxu0 }
  0xea   : > { %v9545_v13 = vmax.f32 %v7986_v12, 0.0 }
  0xeb   : > { %v1129_v19 = vmax.f32 %v9546_v11, 0.0 }
  0xec   : > { %v7995_v16 = vpop.f32.mrb[2].mxu0  ;;  %v1128_v17 = vmax.f32 %v9545_v13, 0.0 }
  0xed   : > { %v9542_v20 = vmax.f32 %v7995_v16, 0.0  ;;  %v8002_v21 = vpop.f32.mrb[3].mxu0 }
  0xee   : > { %v9541_v22 = vmax.f32 %v8002_v21, 0.0  ;;  %6959 = vmatprep.mubr.msk.f32.mxu1 %vm1196_vm2, %v1128_v17 }
  0xef   : > { %6960 = vmatmul.mubr.msk.f32.vlgmr.msra.gmra.mrb[0].mxu1 %vm1196_vm2, %v1129_v19  ;;  %v1131_v25 = vmax.f32 %v9542_v20, 0.0 }
  0xf0   : > { %v1130_v23 = vmax.f32 %v9541_v22, 0.0  ;;  %v8009_v24 = vpop.f32.mrb[4].mxu0 }
  0xf1   : > { %v9538_v26 = vmax.f32 %v8009_v24, 0.0  ;;  %v8014_v27 = vpop.f32.mrb[5].mxu0 }
  0xf2   : > { %v9537_v28 = vmax.f32 %v8014_v27, 0.0  ;;  %6962 = vmatprep.mubr.msk.f32.mxu1 %vm1196_vm2, %v1130_v23 }
  0xf3   : > { %6963 = vmatmul.mubr.msk.f32.gmra.mrb[2].mxu1 %vm1196_vm2, %v1131_v25  ;;  %v1133_v31 = vmax.f32 %v9538_v26, 0.0 }
  0xf4   : > { %v1132_v29 = vmax.f32 %v9537_v28, 0.0  ;;  %v8021_v30 = vpop.f32.mrb[6].mxu0 }
  0xf5   : > { %v9534_v32 = vmax.f32 %v8021_v30, 0.0  ;;  %v8026_v33 = vpop.f32.mrb[7].mxu0 }
  0xf6   : > { %v9533_v34 = vmax.f32 %v8026_v33, 0.0  ;;  %6965 = vmatprep.mubr.msk.f32.mxu1 %vm1196_vm2, %v1132_v29 }
  0xf7   : > { %6966 = vmatmul.mubr.msk.f32.gmra.mrb[4].mxu1 %vm1196_vm2, %v1133_v31  ;;  %v1135_v37 = vmax.f32 %v9534_v32, 0.0 }
  0xf8   : > { %v1134_v35 = vmax.f32 %v9533_v34, 0.0  ;;  %v8033_v36 = vpop.f32.mrb[8].mxu0 }
  0xf9   : > { %v9530_v38 = vmax.f32 %v8033_v36, 0.0  ;;  %v8038_v39 = vpop.f32.mrb[9].mxu0 }
  0xfa   : > { %v9529_v40 = vmax.f32 %v8038_v39, 0.0  ;;  %6968 = vmatprep.mubr.msk.f32.mxu1 %vm1196_vm2, %v1134_v35 }
  0xfb   : > { %6969 = vmatmul.mubr.msk.f32.gmra.mrb[6].mxu1 %vm1196_vm2, %v1135_v37  ;;  %v1137_v43 = vmax.f32 %v9530_v38, 0.0 }
  0xfc   : > { %v1136_v41 = vmax.f32 %v9529_v40, 0.0  ;;  %v8045_v42 = vpop.f32.mrb[10].mxu0 }
  0xfd   : > { %v9526_v44 = vmax.f32 %v8045_v42, 0.0  ;;  %v8050_v45 = vpop.f32.mrb[11].mxu0 }
  0xfe   : > { %v9525_v46 = vmax.f32 %v8050_v45, 0.0  ;;  %6971 = vmatprep.mubr.msk.f32.mxu1 %vm1196_vm2, %v1136_v41 }
  0xff   : > { %6972 = vmatmul.mubr.msk.f32.gmra.mrb[8].mxu1 %vm1196_vm2, %v1137_v43  ;;  %v1139_v49 = vmax.f32 %v9526_v44, 0.0 }
 0x100   : > { %v1138_v47 = vmax.f32 %v9525_v46, 0.0  ;;  %v8057_v48 = vpop.f32.mrb[12].mxu0 }
 0x101   : > { %v9522_v50 = vmax.f32 %v8057_v48, 0.0  ;;  %v8062_v51 = vpop.f32.mrb[13].mxu0 }
 0x102   : > { %v9521_v52 = vmax.f32 %v8062_v51, 0.0  ;;  %6974 = vmatprep.mubr.msk.f32.mxu1 %vm1196_vm2, %v1138_v47 }
 0x103   : > { %6975 = vmatmul.mubr.msk.f32.gmra.mrb[10].mxu1 %vm1196_vm2, %v1139_v49  ;;  %v1141_v55 = vmax.f32 %v9522_v50, 0.0 }
 0x104   : > { %v1140_v53 = vmax.f32 %v9521_v52, 0.0  ;;  %v8069_v54 = vpop.f32.mrb[14].mxu0 }
 0x105   : > { %v9518_v56 = vmax.f32 %v8069_v54, 0.0  ;;  %v8074_v57 = vpop.f32.mrb[15].mxu0 }
 0x106   : > { %v9517_v58 = vmax.f32 %v8074_v57, 0.0  ;;  %6977 = vmatprep.mubr.msk.f32.mxu1 %vm1196_vm2, %v1140_v53 }
 0x107   : > { %6978 = vmatmul.mubr.msk.f32.gmra.mrb[12].mxu1 %vm1196_vm2, %v1141_v55  ;;  %v1143_v61 = vmax.f32 %v9518_v56, 0.0 }
 0x108   : > { %v1142_v59 = vmax.f32 %v9517_v58, 0.0  ;;  %v8081_v60 = vpop.f32.mrb[16].mxu0 }
 0x109   : > { %v9514_v62 = vmax.f32 %v8081_v60, 0.0  ;;  %v8086_v63 = vpop.f32.mrb[17].mxu0 }
 0x10a   : > { %v9513_v0 = vmax.f32 %v8086_v63, 0.0  ;;  %6980 = vmatprep.mubr.msk.f32.mxu1 %vm1196_vm2, %v1142_v59 }
 0x10b   : > { %6981 = vmatmul.mubr.msk.f32.gmra.mrb[14].mxu1 %vm1196_vm2, %v1143_v61  ;;  %v1145_v3 = vmax.f32 %v9514_v62, 0.0 }
 0x10c   : > { %v1144_v1 = vmax.f32 %v9513_v0, 0.0  ;;  %v8093_v2 = vpop.f32.mrb[18].mxu0 }
 0x10d   : > { %v9510_v4 = vmax.f32 %v8093_v2, 0.0  ;;  %v8098_v5 = vpop.f32.mrb[19].mxu0 }
 0x10e   : > { %v9509_v6 = vmax.f32 %v8098_v5, 0.0  ;;  %6983 = vmatprep.mubr.msk.f32.mxu1 %vm1196_vm2, %v1144_v1 }
 0x10f   : > { %6984 = vmatmul.mubr.msk.f32.gmra.mrb[16].mxu1 %vm1196_vm2, %v1145_v3  ;;  %v1147_v9 = vmax.f32 %v9510_v4, 0.0 }
 0x110   : > { %v1146_v7 = vmax.f32 %v9509_v6, 0.0  ;;  %v8105_v8 = vpop.f32.mrb[20].mxu0 }
 0x111   : > { %v9506_v14 = vmax.f32 %v8105_v8, 0.0  ;;  %v8110_v15 = vpop.f32.mrb[21].mxu0 }
 0x112   : > { %v9505_v17 = vmax.f32 %v8110_v15, 0.0  ;;  %6986 = vmatprep.mubr.msk.f32.mxu1 %vm1196_vm2, %v1146_v7 }
 0x113   : > { %6987 = vmatmul.mubr.msk.f32.gmra.mrb[18].mxu1 %vm1196_vm2, %v1147_v9  ;;  %v1149_v23 = vmax.f32 %v9506_v14, 0.0 }
 0x114   : > { %v1148_v18 = vmax.f32 %v9505_v17, 0.0  ;;  %v8117_v19 = vpop.f32.mrb[22].mxu0 }
 0x115   : > { %v9502_v25 = vmax.f32 %v8117_v19, 0.0  ;;  %v8122_v29 = vpop.f32.mrb[23].mxu0 }
 0x116   : > { %v9501_v31 = vmax.f32 %v8122_v29, 0.0  ;;  %6989 = vmatprep.mubr.msk.f32.mxu1 %vm1196_vm2, %v1148_v18 }
 0x117   : > { %6990 = vmatmul.mubr.msk.f32.gmra.mrb[20].mxu1 %vm1196_vm2, %v1149_v23  ;;  %v1151_v41 = vmax.f32 %v9502_v25, 0.0 }
 0x118   : > { %v1150_v35 = vmax.f32 %v9501_v31, 0.0  ;;  %v8129_v37 = vpop.f32.mrb[24].mxu0 }
 0x119   : > { %v9498_v43 = vmax.f32 %v8129_v37, 0.0  ;;  %v8134_v47 = vpop.f32.mrb[25].mxu0 }
 0x11a   : > { %v9497_v49 = vmax.f32 %v8134_v47, 0.0  ;;  %6992 = vmatprep.mubr.msk.f32.mxu1 %vm1196_vm2, %v1150_v35 }
 0x11b   : > { %6993 = vmatmul.mubr.msk.f32.gmra.mrb[22].mxu1 %vm1196_vm2, %v1151_v41  ;;  %v1153_v59 = vmax.f32 %v9498_v43, 0.0 }
 0x11c   : > { %v1152_v53 = vmax.f32 %v9497_v49, 0.0  ;;  %v8141_v55 = vpop.f32.mrb[26].mxu0 }
 0x11d   : > { %v9496_v61 = vmax.f32 %v8141_v55, 0.0  ;;  %v8146_v1 = vpop.f32.mrb[27].mxu0 }
 0x11e   : > { %v9495_v3 = vmax.f32 %v8146_v1, 0.0  ;;  %6995 = vmatprep.mubr.msk.f32.mxu1 %vm1196_vm2, %v1152_v53 }
 0x11f   : > { %6996 = vmatmul.mubr.msk.f32.gmra.mrb[24].mxu1 %vm1196_vm2, %v1153_v59  ;;  %v1155_v18 = vmax.f32 %v9496_v61, 0.0 }
 0x120   : > { %v1154_v7 = vmax.f32 %v9495_v3, 0.0  ;;  %v8153_v9 = vpop.f32.mrb[28].mxu0 }
 0x121   : > { %v9500_v23 = vmax.f32 %v8153_v9, 0.0  ;;  %v8158_v35 = vpop.f32.mrb[29].mxu0 }
 0x122   : > { %v9499_v41 = vmax.f32 %v8158_v35, 0.0  ;;  %6998 = vmatprep.mubr.msk.f32.mxu1 %vm1196_vm2, %v1154_v7 }
 0x123   : > { %6999 = vmatmul.mubr.msk.f32.gmra.mrb[26].mxu1 %vm1196_vm2, %v1155_v18  ;;  %v1157_v3 = vmax.f32 %v9500_v23, 0.0 }
 0x124   : > { %v1156_v53 = vmax.f32 %v9499_v41, 0.0  ;;  %v8165_v59 = vpop.f32.mrb[30].mxu0 }
 0x125   : > { %v9504_v61 = vmax.f32 %v8165_v59, 0.0  ;;  %v8170_v49 = vpop.f32.mrb[31].mxu0 }
 0x126   : > { %v9503_v43 = vmax.f32 %v8170_v49, 0.0  ;;  %7001 = vmatprep.mubr.msk.f32.mxu1 %vm1196_vm2, %v1156_v53 }
 0x127   : > { %7002 = vmatmul.mubr.msk.f32.gmra.mrb[28].mxu1 %vm1196_vm2, %v1157_v3  ;;  %v1159_v41 = vmax.f32 %v9504_v61, 0.0 }
 0x128   : > { %v1158_v7 = vmax.f32 %v9503_v43, 0.0  ;;  %v8177_v18 = vpop.f32.mrb[32].mxu0 }
 0x129   : > { %v9508_v23 = vmax.f32 %v8177_v18, 0.0  ;;  %v8182_v31 = vpop.f32.mrb[33].mxu0 }
 0x12a   : > { %v9507_v25 = vmax.f32 %v8182_v31, 0.0  ;;  %7004 = vmatprep.mubr.msk.f32.mxu1 %vm1196_vm2, %v1158_v7 }
 0x12b   : > { %7005 = vmatmul.mubr.msk.f32.gmra.mrb[30].mxu1 %vm1196_vm2, %v1159_v41  ;;  %v1161_v43 = vmax.f32 %v9508_v23, 0.0 }
 0x12c   : > { %v1160_v3 = vmax.f32 %v9507_v25, 0.0  ;;  %v8189_v53 = vpop.f32.mrb[34].mxu0 }
 0x12d   : > { %v9512_v61 = vmax.f32 %v8189_v53, 0.0  ;;  %v8194_v17 = vpop.f32.mrb[35].mxu0 }
 0x12e   : > { %v9511_v14 = vmax.f32 %v8194_v17, 0.0  ;;  %7007 = vmatprep.mubr.msk.f32.mxu1 %vm1196_vm2, %v1160_v3 }
 0x12f   : > { %7008 = vmatmul.mubr.msk.f32.gmra.mrb[32].mxu1 %vm1196_vm2, %v1161_v43  ;;  %v1163_v25 = vmax.f32 %v9512_v61, 0.0 }
 0x130   : > { %v1162_v41 = vmax.f32 %v9511_v14, 0.0  ;;  %v8201_v7 = vpop.f32.mrb[36].mxu0 }
 0x131   : > { %v9516_v23 = vmax.f32 %v8201_v7, 0.0  ;;  %v8206_v6 = vpop.f32.mrb[37].mxu0 }
 0x132   : > { %v9515_v4 = vmax.f32 %v8206_v6, 0.0  ;;  %7010 = vmatprep.mubr.msk.f32.mxu1 %vm1196_vm2, %v1162_v41 }
 0x133   : > { %7011 = vmatmul.mubr.msk.f32.gmra.mrb[34].mxu1 %vm1196_vm2, %v1163_v25  ;;  %v1165_v14 = vmax.f32 %v9516_v23, 0.0 }
 0x134   : > { %v1164_v43 = vmax.f32 %v9515_v4, 0.0  ;;  %v8213_v3 = vpop.f32.mrb[38].mxu0 }
 0x135   : > { %v9520_v61 = vmax.f32 %v8213_v3, 0.0  ;;  %v8218_v0 = vpop.f32.mrb[39].mxu0 }
 0x136   : > { %v9519_v62 = vmax.f32 %v8218_v0, 0.0  ;;  %7013 = vmatprep.mubr.msk.f32.mxu1 %vm1196_vm2, %v1164_v43 }
 0x137   : > { %7014 = vmatmul.mubr.msk.f32.gmra.mrb[36].mxu1 %vm1196_vm2, %v1165_v14  ;;  %v1167_v4 = vmax.f32 %v9520_v61, 0.0 }
 0x138   : > { %v1166_v25 = vmax.f32 %v9519_v62, 0.0  ;;  %v8225_v41 = vpop.f32.mrb[40].mxu0 }
 0x139   : > { %v9524_v23 = vmax.f32 %v8225_v41, 0.0  ;;  %v8230_v58 = vpop.f32.mrb[41].mxu0 }
 0x13a   : > { %v9523_v56 = vmax.f32 %v8230_v58, 0.0  ;;  %7016 = vmatprep.mubr.msk.f32.mxu1 %vm1196_vm2, %v1166_v25 }
 0x13b   : > { %7017 = vmatmul.mubr.msk.f32.gmra.mrb[38].mxu1 %vm1196_vm2, %v1167_v4  ;;  %v1169_v62 = vmax.f32 %v9524_v23, 0.0 }
 0x13c   : > { %v1168_v14 = vmax.f32 %v9523_v56, 0.0  ;;  %v8237_v43 = vpop.f32.mrb[42].mxu0 }
 0x13d   : > { %v9528_v61 = vmax.f32 %v8237_v43, 0.0  ;;  %v8242_v52 = vpop.f32.mrb[43].mxu0 }
 0x13e   : > { %v9527_v50 = vmax.f32 %v8242_v52, 0.0  ;;  %7019 = vmatprep.mubr.msk.f32.mxu1 %vm1196_vm2, %v1168_v14 }
 0x13f   : > { %7020 = vmatmul.mubr.msk.f32.gmra.mrb[40].mxu1 %vm1196_vm2, %v1169_v62  ;;  %v1171_v56 = vmax.f32 %v9528_v61, 0.0 }
 0x140   : > { %v1170_v4 = vmax.f32 %v9527_v50, 0.0  ;;  %v8249_v25 = vpop.f32.mrb[44].mxu0 }
 0x141   : > { %v9532_v23 = vmax.f32 %v8249_v25, 0.0  ;;  %v8254_v46 = vpop.f32.mrb[45].mxu0 }
 0x142   : > { %v9531_v44 = vmax.f32 %v8254_v46, 0.0  ;;  %7022 = vmatprep.mubr.msk.f32.mxu1 %vm1196_vm2, %v1170_v4 }
 0x143   : > { %7023 = vmatmul.mubr.msk.f32.gmra.mrb[42].mxu1 %vm1196_vm2, %v1171_v56  ;;  %v1173_v50 = vmax.f32 %v9532_v23, 0.0 }
 0x144   : > { %v1172_v62 = vmax.f32 %v9531_v44, 0.0  ;;  %v8261_v14 = vpop.f32.mrb[46].mxu0 }
 0x145   : > { %v9536_v61 = vmax.f32 %v8261_v14, 0.0  ;;  %v8266_v40 = vpop.f32.mrb[47].mxu0 }
 0x146   : > { %v9535_v38 = vmax.f32 %v8266_v40, 0.0  ;;  %7025 = vmatprep.mubr.msk.f32.mxu1 %vm1196_vm2, %v1172_v62 }
 0x147   : > { %7026 = vmatmul.mubr.msk.f32.gmra.mrb[44].mxu1 %vm1196_vm2, %v1173_v50  ;;  %v1175_v44 = vmax.f32 %v9536_v61, 0.0 }
 0x148   : > { %v1174_v56 = vmax.f32 %v9535_v38, 0.0  ;;  %v8273_v4 = vpop.f32.mrb[48].mxu0 }
 0x149   : > { %v9540_v23 = vmax.f32 %v8273_v4, 0.0  ;;  %v8278_v34 = vpop.f32.mrb[49].mxu0 }
 0x14a   : > { %v9539_v32 = vmax.f32 %v8278_v34, 0.0  ;;  %7028 = vmatprep.mubr.msk.f32.mxu1 %vm1196_vm2, %v1174_v56 }
 0x14b   : > { %7029 = vmatmul.mubr.msk.f32.gmra.mrb[46].mxu1 %vm1196_vm2, %v1175_v44  ;;  %v1177_v38 = vmax.f32 %v9540_v23, 0.0 }
 0x14c   : > { %v1176_v50 = vmax.f32 %v9539_v32, 0.0  ;;  %v8285_v62 = vpop.f32.mrb[50].mxu0 }
 0x14d   : > { %9587 = vst [vmem:[#allocation2_spill] sm:$0xff] %v8285_v62  ;;  %v9544_v61 = vmax.f32 %v8285_v62, 0.0  ;;  %v8290_v28 = vpop.f32.mrb[51].mxu0 }
 0x14e   : > { %9588 = vst [vmem:[#allocation3_spill] sm:$0xff] %v8290_v28  ;;  %v9543_v26 = vmax.f32 %v8290_v28, 0.0  ;;  %7031 = vmatprep.mubr.msk.f32.mxu1 %vm1196_vm2, %v1176_v50 }
 0x14f   : > { %7032 = vmatmul.mubr.msk.f32.gmra.mrb[48].mxu1 %vm1196_vm2, %v1177_v38  ;;  %v1179_v32 = vmax.f32 %v9544_v61, 0.0 }
 0x150   : > { %v1178_v44 = vmax.f32 %v9543_v26, 0.0  ;;  %v8297_v56 = vpop.f32.mrb[52].mxu0 }
 0x151   : > { %9589 = vst [vmem:[#allocation4_spill] sm:$0xff] %v8297_v56  ;;  %v9548_v23 = vmax.f32 %v8297_v56, 0.0  ;;  %v8302_v22 = vpop.f32.mrb[53].mxu0 }
 0x152   : > { %9590 = vst [vmem:[#allocation5_spill] sm:$0xff] %v8302_v22  ;;  %v9547_v20 = vmax.f32 %v8302_v22, 0.0  ;;  %7034 = vmatprep.mubr.msk.f32.mxu1 %vm1196_vm2, %v1178_v44 }
 0x153   : > { %7035 = vmatmul.mubr.msk.f32.gmra.mrb[50].mxu1 %vm1196_vm2, %v1179_v32  ;;  %v1181_v26 = vmax.f32 %v9548_v23, 0.0 }
 0x154   : > { %v1180_v38 = vmax.f32 %v9547_v20, 0.0  ;;  %v8309_v50 = vpop.f32.mrb[54].mxu0 }
 0x155   : > { %9591 = vst [vmem:[#allocation6_spill] sm:$0xff] %v8309_v50  ;;  %v9552_v61 = vmax.f32 %v8309_v50, 0.0  ;;  %v8314_v13 = vpop.f32.mrb[55].mxu0 }
 0x156   : > { %9592 = vst [vmem:[#allocation7_spill] sm:$0xff] %v8314_v13  ;;  %v9551_v11 = vmax.f32 %v8314_v13, 0.0  ;;  %7037 = vmatprep.mubr.msk.f32.mxu1 %vm1196_vm2, %v1180_v38 }
 0x157   : > { %7038 = vmatmul.mubr.msk.f32.gmra.mrb[52].mxu1 %vm1196_vm2, %v1181_v26  ;;  %v1183_v20 = vmax.f32 %v9552_v61, 0.0 }
 0x158   : > { %v1182_v32 = vmax.f32 %v9551_v11, 0.0  ;;  %v8321_v44 = vpop.f32.mrb[56].mxu0 }
 0x159   : > { %9593 = vst [vmem:[#allocation8_spill] sm:$0xff] %v8321_v44  ;;  %v9556_v23 = vmax.f32 %v8321_v44, 0.0  ;;  %v8326_v22 = vpop.f32.mrb[57].mxu0 }
 0x15a   : > { %9594 = vst [vmem:[#allocation9_spill] sm:$0xff] %v8326_v22  ;;  %v9555_v56 = vmax.f32 %v8326_v22, 0.0  ;;  %7040 = vmatprep.mubr.msk.f32.mxu1 %vm1196_vm2, %v1182_v32 }
 0x15b   : > { %7041 = vmatmul.mubr.msk.f32.gmra.mrb[54].mxu1 %vm1196_vm2, %v1183_v20  ;;  %v1185_v11 = vmax.f32 %v9556_v23, 0.0 }
 0x15c   : > { %v1184_v26 = vmax.f32 %v9555_v56, 0.0  ;;  %v8333_v38 = vpop.f32.mrb[58].mxu0 }
 0x15d   : > { %9595 = vst [vmem:[#allocation10_spill] sm:$0xff] %v8333_v38  ;;  %v9560_v61 = vmax.f32 %v8333_v38, 0.0  ;;  %v8338_v13 = vpop.f32.mrb[59].mxu0 }
 0x15e   : > { %9596 = vst [vmem:[#allocation11_spill] sm:$0xff] %v8338_v13  ;;  %v9559_v50 = vmax.f32 %v8338_v13, 0.0  ;;  %7043 = vmatprep.mubr.msk.f32.mxu1 %vm1196_vm2, %v1184_v26 }
 0x15f   : > { %7044 = vmatmul.mubr.msk.f32.gmra.mrb[56].mxu1 %vm1196_vm2, %v1185_v11  ;;  %v1187_v56 = vmax.f32 %v9560_v61, 0.0 }
 0x160   : > { %v1186_v20 = vmax.f32 %v9559_v50, 0.0  ;;  %v8345_v32 = vpop.f32.mrb[60].mxu0 }
 0x161   : > { %9597 = vst [vmem:[#allocation12_spill] sm:$0xff] %v8345_v32  ;;  %v9564_v23 = vmax.f32 %v8345_v32, 0.0  ;;  %v8350_v22 = vpop.f32.mrb[61].mxu0 }
 0x162   : > { %9598 = vst [vmem:[#allocation13_spill] sm:$0xff] %v8350_v22  ;;  %v9563_v44 = vmax.f32 %v8350_v22, 0.0  ;;  %7046 = vmatprep.mubr.msk.f32.mxu1 %vm1196_vm2, %v1186_v20 }
 0x163   : > { %7047 = vmatmul.mubr.msk.f32.gmra.mrb[58].mxu1 %vm1196_vm2, %v1187_v56  ;;  %v1189_v50 = vmax.f32 %v9564_v23, 0.0 }
 0x164   : > { %v1188_v11 = vmax.f32 %v9563_v44, 0.0  ;;  %v8357_v26 = vpop.f32.mrb[62].mxu0  ;;  %v2483_v44 = vld [vmem:[%s9486_s4] sm:$0xff] }
 0x165   : > { %9599 = vst [vmem:[#allocation14_spill] sm:$0xff] %v8357_v26  ;;  %v9566_v61 = vmax.f32 %v8357_v26, 0.0  ;;  %v8362_v13 = vpop.f32.mrb[63].mxu0 }
 0x166   : > { %9600 = vst [vmem:[#allocation15_spill] sm:$0xff] %v8362_v13  ;;  %v9565_v38 = vmax.f32 %v8362_v13, 0.0  ;;  %7049 = vmatprep.mubr.msk.f32.mxu1 %vm1196_vm2, %v1188_v11  ;;  %v2484_v11 = vld [vmem:[%s9486_s4 + $0x8] sm:$0xff] }
 0x167   : > { %7050 = vmatmul.mubr.msk.f32.gmra.mrb[60].mxu1 %vm1196_vm2, %v1189_v50  ;;  %v1191_v20 = vmax.f32 %v9566_v61, 0.0  ;;  %v7695_v23 = vpack.c.bf16 %v2484_v11, %v2483_v44  ;;  %v2485_v61 = vld [vmem:[%s9486_s4 + $0x10] sm:$0xff] }
 0x168   : > { %v1190_v56 = vmax.f32 %v9565_v38, 0.0 }
 0x169   : > { %7696 = vmatprep.subr.bf16.mxu1 %v7695_v23 }
 0x16a   : > { %7052 = vmatprep.mubr.msk.f32.mxu1 %vm1196_vm2, %v1190_v56  ;;  %7698 = vmatpush3.bf16.msra.mxu1 %v7695_v23  ;;  %v2486_v56 = vld [vmem:[%s9486_s4 + $0x18] sm:$0xff] }
 0x16b   : > { %7053 = vmatmul.mubr.msk.f32.gmra.mrb[62].mxu1 %vm1196_vm2, %v1191_v20  ;;  %v7699_v13 = vpack.c.bf16 %v2486_v56, %v2485_v61 }
 0x16d   : > { %7700 = vmatprep.subr.bf16.mxu1 %v7699_v13 }
 0x16e   : > { %7702 = vmatpush3.bf16.msra.mxu1 %v7699_v13 }
 0x1c2   : > { %v6961_v50 = vpop.f32.mrb[0].mxu1 }
 0x1c3   : > { %v1455_v38 = vpop.f32.mrb[1].mxu1  ;;  %v1775_v26 = vmax.f32 %v6961_v50, 0.0 }
 0x1c4   : > { %v1774_v20 = vmax.f32 %v1455_v38, 0.0 }
 0x1c6   : > { %v6964_v22 = vpop.f32.mrb[2].mxu1  ;;  %7063 = vmatprep.mubr.msk.f32.mxu0 %vm1196_vm2, %v1774_v20 }
 0x1c7   : > { %v1465_v44 = vpop.f32.mrb[3].mxu1  ;;  %7064 = vmatmul.mubr.msk.f32.vlgmr.msra.gmra.mrb[64].mxu0 %vm1196_vm2, %v1775_v26  ;;  %v1777_v11 = vmax.f32 %v6964_v22, 0.0 }
 0x1c8   : > { %v1776_v23 = vmax.f32 %v1465_v44, 0.0 }
 0x1ca   : > { %v6967_v32 = vpop.f32.mrb[4].mxu1  ;;  %7066 = vmatprep.mubr.msk.f32.mxu0 %vm1196_vm2, %v1776_v23 }
 0x1cb   : > { %v1475_v28 = vpop.f32.mrb[5].mxu1  ;;  %7067 = vmatmul.mubr.msk.f32.gmra.mrb[66].mxu0 %vm1196_vm2, %v1777_v11  ;;  %v1779_v38 = vmax.f32 %v6967_v32, 0.0 }
 0x1cc   : > { %v1778_v62 = vmax.f32 %v1475_v28, 0.0 }
 0x1ce   : > { %v6970_v61 = vpop.f32.mrb[6].mxu1  ;;  %7069 = vmatprep.mubr.msk.f32.mxu0 %vm1196_vm2, %v1778_v62 }
 0x1cf   : > { %v1485_v50 = vpop.f32.mrb[7].mxu1  ;;  %7070 = vmatmul.mubr.msk.f32.gmra.mrb[68].mxu0 %vm1196_vm2, %v1779_v38  ;;  %v1781_v20 = vmax.f32 %v6970_v61, 0.0 }
 0x1d0   : > { %v1780_v56 = vmax.f32 %v1485_v50, 0.0 }
 0x1d2   : > { %v6973_v26 = vpop.f32.mrb[8].mxu1  ;;  %7072 = vmatprep.mubr.msk.f32.mxu0 %vm1196_vm2, %v1780_v56 }
 0x1d3   : > { %v1495_v13 = vpop.f32.mrb[9].mxu1  ;;  %7073 = vmatmul.mubr.msk.f32.gmra.mrb[70].mxu0 %vm1196_vm2, %v1781_v20  ;;  %v1783_v44 = vmax.f32 %v6973_v26, 0.0 }
 0x1d4   : > { %v1782_v22 = vmax.f32 %v1495_v13, 0.0 }
 0x1d6   : > { %v6976_v23 = vpop.f32.mrb[10].mxu1  ;;  %7075 = vmatprep.mubr.msk.f32.mxu0 %vm1196_vm2, %v1782_v22 }
 0x1d7   : > { %v1505_v28 = vpop.f32.mrb[11].mxu1  ;;  %7076 = vmatmul.mubr.msk.f32.gmra.mrb[72].mxu0 %vm1196_vm2, %v1783_v44  ;;  %v1785_v32 = vmax.f32 %v6976_v23, 0.0 }
 0x1d8   : > { %v1784_v62 = vmax.f32 %v1505_v28, 0.0 }
 0x1da   : > { %v6979_v11 = vpop.f32.mrb[12].mxu1  ;;  %7078 = vmatprep.mubr.msk.f32.mxu0 %vm1196_vm2, %v1784_v62 }
 0x1db   : > { %v1515_v38 = vpop.f32.mrb[13].mxu1  ;;  %7079 = vmatmul.mubr.msk.f32.gmra.mrb[74].mxu0 %vm1196_vm2, %v1785_v32  ;;  %v1787_v50 = vmax.f32 %v6979_v11, 0.0 }
 0x1dc   : > { %v1786_v61 = vmax.f32 %v1515_v38, 0.0 }
 0x1de   : > { %v6982_v56 = vpop.f32.mrb[14].mxu1  ;;  %7081 = vmatprep.mubr.msk.f32.mxu0 %vm1196_vm2, %v1786_v61 }
 0x1df   : > { %v1525_v20 = vpop.f32.mrb[15].mxu1  ;;  %7082 = vmatmul.mubr.msk.f32.gmra.mrb[76].mxu0 %vm1196_vm2, %v1787_v50  ;;  %v1789_v13 = vmax.f32 %v6982_v56, 0.0 }
 0x1e0   : > { %v1788_v26 = vmax.f32 %v1525_v20, 0.0 }
 0x1e2   : > { %v6985_v22 = vpop.f32.mrb[16].mxu1  ;;  %7084 = vmatprep.mubr.msk.f32.mxu0 %vm1196_vm2, %v1788_v26 }
 0x1e3   : > { %v1535_v44 = vpop.f32.mrb[17].mxu1  ;;  %7085 = vmatmul.mubr.msk.f32.gmra.mrb[78].mxu0 %vm1196_vm2, %v1789_v13  ;;  %v1791_v28 = vmax.f32 %v6985_v22, 0.0 }
 0x1e4   : > { %v1790_v23 = vmax.f32 %v1535_v44, 0.0 }
 0x1e6   : > { %v6988_v62 = vpop.f32.mrb[18].mxu1  ;;  %7087 = vmatprep.mubr.msk.f32.mxu0 %vm1196_vm2, %v1790_v23 }
 0x1e7   : > { %v1545_v32 = vpop.f32.mrb[19].mxu1  ;;  %7088 = vmatmul.mubr.msk.f32.gmra.mrb[80].mxu0 %vm1196_vm2, %v1791_v28  ;;  %v1793_v38 = vmax.f32 %v6988_v62, 0.0 }
 0x1e8   : > { %v1792_v11 = vmax.f32 %v1545_v32, 0.0 }
 0x1ea   : > { %v6991_v61 = vpop.f32.mrb[20].mxu1  ;;  %7090 = vmatprep.mubr.msk.f32.mxu0 %vm1196_vm2, %v1792_v11 }
 0x1eb   : > { %v1555_v50 = vpop.f32.mrb[21].mxu1  ;;  %7091 = vmatmul.mubr.msk.f32.gmra.mrb[82].mxu0 %vm1196_vm2, %v1793_v38  ;;  %v1795_v20 = vmax.f32 %v6991_v61, 0.0 }
 0x1ec   : > { %v1794_v56 = vmax.f32 %v1555_v50, 0.0 }
 0x1ee   : > { %v6994_v26 = vpop.f32.mrb[22].mxu1  ;;  %7093 = vmatprep.mubr.msk.f32.mxu0 %vm1196_vm2, %v1794_v56 }
 0x1ef   : > { %v1565_v13 = vpop.f32.mrb[23].mxu1  ;;  %7094 = vmatmul.mubr.msk.f32.gmra.mrb[84].mxu0 %vm1196_vm2, %v1795_v20  ;;  %v1797_v44 = vmax.f32 %v6994_v26, 0.0 }
 0x1f0   : > { %v1796_v22 = vmax.f32 %v1565_v13, 0.0 }
 0x1f2   : > { %v6997_v23 = vpop.f32.mrb[24].mxu1  ;;  %7096 = vmatprep.mubr.msk.f32.mxu0 %vm1196_vm2, %v1796_v22 }
 0x1f3   : > { %v1575_v28 = vpop.f32.mrb[25].mxu1  ;;  %7097 = vmatmul.mubr.msk.f32.gmra.mrb[86].mxu0 %vm1196_vm2, %v1797_v44  ;;  %v1799_v32 = vmax.f32 %v6997_v23, 0.0 }
 0x1f4   : > { %v1798_v62 = vmax.f32 %v1575_v28, 0.0 }
 0x1f6   : > { %v7000_v11 = vpop.f32.mrb[26].mxu1  ;;  %7099 = vmatprep.mubr.msk.f32.mxu0 %vm1196_vm2, %v1798_v62 }
 0x1f7   : > { %v1585_v38 = vpop.f32.mrb[27].mxu1  ;;  %7100 = vmatmul.mubr.msk.f32.gmra.mrb[88].mxu0 %vm1196_vm2, %v1799_v32  ;;  %v1801_v50 = vmax.f32 %v7000_v11, 0.0 }
 0x1f8   : > { %v1800_v61 = vmax.f32 %v1585_v38, 0.0 }
 0x1fa   : > { %v7003_v56 = vpop.f32.mrb[28].mxu1  ;;  %7102 = vmatprep.mubr.msk.f32.mxu0 %vm1196_vm2, %v1800_v61 }
 0x1fb   : > { %v1595_v20 = vpop.f32.mrb[29].mxu1  ;;  %7103 = vmatmul.mubr.msk.f32.gmra.mrb[90].mxu0 %vm1196_vm2, %v1801_v50  ;;  %v1803_v13 = vmax.f32 %v7003_v56, 0.0 }
 0x1fc   : > { %v1802_v26 = vmax.f32 %v1595_v20, 0.0 }
 0x1fe   : > { %v7006_v22 = vpop.f32.mrb[30].mxu1  ;;  %7105 = vmatprep.mubr.msk.f32.mxu0 %vm1196_vm2, %v1802_v26 }
 0x1ff   : > { %v1605_v44 = vpop.f32.mrb[31].mxu1  ;;  %7106 = vmatmul.mubr.msk.f32.gmra.mrb[92].mxu0 %vm1196_vm2, %v1803_v13  ;;  %v1805_v28 = vmax.f32 %v7006_v22, 0.0 }
 0x200   : > { %v1804_v23 = vmax.f32 %v1605_v44, 0.0 }
 0x202   : > { %v7009_v62 = vpop.f32.mrb[32].mxu1  ;;  %7108 = vmatprep.mubr.msk.f32.mxu0 %vm1196_vm2, %v1804_v23 }
 0x203   : > { %v1615_v32 = vpop.f32.mrb[33].mxu1  ;;  %7109 = vmatmul.mubr.msk.f32.gmra.mrb[94].mxu0 %vm1196_vm2, %v1805_v28  ;;  %v1807_v38 = vmax.f32 %v7009_v62, 0.0 }
 0x204   : > { %v1806_v11 = vmax.f32 %v1615_v32, 0.0 }
 0x206   : > { %v7012_v61 = vpop.f32.mrb[34].mxu1  ;;  %7111 = vmatprep.mubr.msk.f32.mxu0 %vm1196_vm2, %v1806_v11 }
 0x207   : > { %v1625_v50 = vpop.f32.mrb[35].mxu1  ;;  %7112 = vmatmul.mubr.msk.f32.gmra.mrb[96].mxu0 %vm1196_vm2, %v1807_v38  ;;  %v1809_v20 = vmax.f32 %v7012_v61, 0.0 }
 0x208   : > { %v1808_v56 = vmax.f32 %v1625_v50, 0.0 }
 0x20a   : > { %v7015_v26 = vpop.f32.mrb[36].mxu1  ;;  %7114 = vmatprep.mubr.msk.f32.mxu0 %vm1196_vm2, %v1808_v56 }
 0x20b   : > { %v1635_v13 = vpop.f32.mrb[37].mxu1  ;;  %7115 = vmatmul.mubr.msk.f32.gmra.mrb[98].mxu0 %vm1196_vm2, %v1809_v20  ;;  %v1811_v44 = vmax.f32 %v7015_v26, 0.0 }
 0x20c   : > { %v1810_v22 = vmax.f32 %v1635_v13, 0.0 }
 0x20e   : > { %v7018_v23 = vpop.f32.mrb[38].mxu1  ;;  %7117 = vmatprep.mubr.msk.f32.mxu0 %vm1196_vm2, %v1810_v22 }
 0x20f   : > { %v1645_v28 = vpop.f32.mrb[39].mxu1  ;;  %7118 = vmatmul.mubr.msk.f32.gmra.mrb[100].mxu0 %vm1196_vm2, %v1811_v44  ;;  %v1813_v32 = vmax.f32 %v7018_v23, 0.0 }
 0x210   : > { %v1812_v62 = vmax.f32 %v1645_v28, 0.0 }
 0x212   : > { %v7021_v11 = vpop.f32.mrb[40].mxu1  ;;  %7120 = vmatprep.mubr.msk.f32.mxu0 %vm1196_vm2, %v1812_v62 }
 0x213   : > { %v1655_v38 = vpop.f32.mrb[41].mxu1  ;;  %7121 = vmatmul.mubr.msk.f32.gmra.mrb[102].mxu0 %vm1196_vm2, %v1813_v32  ;;  %v1815_v50 = vmax.f32 %v7021_v11, 0.0 }
 0x214   : > { %v1814_v61 = vmax.f32 %v1655_v38, 0.0 }
 0x216   : > { %v7024_v56 = vpop.f32.mrb[42].mxu1  ;;  %7123 = vmatprep.mubr.msk.f32.mxu0 %vm1196_vm2, %v1814_v61 }
 0x217   : > { %v1665_v20 = vpop.f32.mrb[43].mxu1  ;;  %7124 = vmatmul.mubr.msk.f32.gmra.mrb[104].mxu0 %vm1196_vm2, %v1815_v50  ;;  %v1817_v13 = vmax.f32 %v7024_v56, 0.0 }
 0x218   : > { %v1816_v26 = vmax.f32 %v1665_v20, 0.0 }
 0x21a   : > { %v7027_v22 = vpop.f32.mrb[44].mxu1  ;;  %7126 = vmatprep.mubr.msk.f32.mxu0 %vm1196_vm2, %v1816_v26 }
 0x21b   : > { %v1675_v44 = vpop.f32.mrb[45].mxu1  ;;  %7127 = vmatmul.mubr.msk.f32.gmra.mrb[106].mxu0 %vm1196_vm2, %v1817_v13  ;;  %v1819_v28 = vmax.f32 %v7027_v22, 0.0 }
 0x21c   : > { %v1818_v23 = vmax.f32 %v1675_v44, 0.0 }
 0x21e   : > { %v7030_v62 = vpop.f32.mrb[46].mxu1  ;;  %7129 = vmatprep.mubr.msk.f32.mxu0 %vm1196_vm2, %v1818_v23 }
 0x21f   : > { %v1685_v32 = vpop.f32.mrb[47].mxu1  ;;  %7130 = vmatmul.mubr.msk.f32.gmra.mrb[108].mxu0 %vm1196_vm2, %v1819_v28  ;;  %v1821_v38 = vmax.f32 %v7030_v62, 0.0 }
 0x220   : > { %v1820_v11 = vmax.f32 %v1685_v32, 0.0 }
 0x222   : > { %v7033_v61 = vpop.f32.mrb[48].mxu1  ;;  %7132 = vmatprep.mubr.msk.f32.mxu0 %vm1196_vm2, %v1820_v11 }
 0x223   : > { %v1695_v50 = vpop.f32.mrb[49].mxu1  ;;  %7133 = vmatmul.mubr.msk.f32.gmra.mrb[110].mxu0 %vm1196_vm2, %v1821_v38  ;;  %v1823_v20 = vmax.f32 %v7033_v61, 0.0 }
 0x224   : > { %v1822_v56 = vmax.f32 %v1695_v50, 0.0 }
 0x226   : > { %v7036_v26 = vpop.f32.mrb[50].mxu1  ;;  %7135 = vmatprep.mubr.msk.f32.mxu0 %vm1196_vm2, %v1822_v56 }
 0x227   : > { %v1705_v13 = vpop.f32.mrb[51].mxu1  ;;  %7136 = vmatmul.mubr.msk.f32.gmra.mrb[112].mxu0 %vm1196_vm2, %v1823_v20  ;;  %v1825_v44 = vmax.f32 %v7036_v26, 0.0 }
 0x228   : > { %v1824_v22 = vmax.f32 %v1705_v13, 0.0 }
 0x22a   : > { %v7039_v23 = vpop.f32.mrb[52].mxu1  ;;  %7138 = vmatprep.mubr.msk.f32.mxu0 %vm1196_vm2, %v1824_v22 }
 0x22b   : > { %v1715_v28 = vpop.f32.mrb[53].mxu1  ;;  %7139 = vmatmul.mubr.msk.f32.gmra.mrb[114].mxu0 %vm1196_vm2, %v1825_v44  ;;  %v1827_v32 = vmax.f32 %v7039_v23, 0.0 }
 0x22c   : > { %v1826_v62 = vmax.f32 %v1715_v28, 0.0 }
 0x22e   : > { %v7042_v11 = vpop.f32.mrb[54].mxu1  ;;  %7141 = vmatprep.mubr.msk.f32.mxu0 %vm1196_vm2, %v1826_v62 }
 0x22f   : > { %v1725_v38 = vpop.f32.mrb[55].mxu1  ;;  %7142 = vmatmul.mubr.msk.f32.gmra.mrb[116].mxu0 %vm1196_vm2, %v1827_v32  ;;  %v1829_v50 = vmax.f32 %v7042_v11, 0.0 }
 0x230   : > { %v1828_v61 = vmax.f32 %v1725_v38, 0.0 }
 0x232   : > { %v7045_v56 = vpop.f32.mrb[56].mxu1  ;;  %7144 = vmatprep.mubr.msk.f32.mxu0 %vm1196_vm2, %v1828_v61 }
 0x233   : > { %v1735_v20 = vpop.f32.mrb[57].mxu1  ;;  %7145 = vmatmul.mubr.msk.f32.gmra.mrb[118].mxu0 %vm1196_vm2, %v1829_v50  ;;  %v1831_v13 = vmax.f32 %v7045_v56, 0.0 }
 0x234   : > { %v1830_v26 = vmax.f32 %v1735_v20, 0.0 }
 0x236   : > { %v7048_v22 = vpop.f32.mrb[58].mxu1  ;;  %7147 = vmatprep.mubr.msk.f32.mxu0 %vm1196_vm2, %v1830_v26  ;;  %v3128_v26 = vld [vmem:[%s9487_s5] sm:$0xff] }
 0x237   : > { %v1745_v44 = vpop.f32.mrb[59].mxu1  ;;  %7148 = vmatmul.mubr.msk.f32.gmra.mrb[120].mxu0 %vm1196_vm2, %v1831_v13  ;;  %v1833_v28 = vmax.f32 %v7048_v22, 0.0  ;;  %v3129_v13 = vld [vmem:[%s9487_s5 + $0x8] sm:$0xff] }
 0x238   : > { %v1832_v23 = vmax.f32 %v1745_v44, 0.0  ;;  %v7703_v22 = vpack.c.bf16 %v3129_v13, %v3128_v26  ;;  %v9603_v26 = vmax.f32 %v7995_v16, 0.0  ;;  %v9605_v16 = vmax.f32 %v8009_v24, 0.0 }
 0x23a   : > { %v7051_v62 = vpop.f32.mrb[60].mxu1  ;;  %7150 = vmatprep.mubr.msk.f32.mxu0 %vm1196_vm2, %v1832_v23  ;;  %7704 = vmatprep.subr.bf16.mxu0 %v7703_v22  ;;  %v9601_v23 = vmax.f32 %v7983_v10, 0.0 }
 0x23b   : > { %v1755_v32 = vpop.f32.mrb[61].mxu1  ;;  %7151 = vmatmul.mubr.msk.f32.gmra.mrb[122].mxu0 %vm1196_vm2, %v1833_v28  ;;  %v1835_v38 = vmax.f32 %v7051_v62, 0.0 }
 0x23c   : > { %v1834_v11 = vmax.f32 %v1755_v32, 0.0  ;;  %7706 = vmatpush3.bf16.msra.mxu0 %v7703_v22  ;;  %v9602_v32 = vmax.f32 %v7986_v12, 0.0  ;;  %v9604_v22 = vmax.f32 %v8002_v21, 0.0  ;;  %v9606_v21 = vmax.f32 %v8014_v27, 0.0 }
 0x23e   : > { %v7054_v61 = vpop.f32.mrb[62].mxu1  ;;  %7153 = vmatprep.mubr.msk.f32.mxu0 %vm1196_vm2, %v1834_v11 }
 0x23f   : > { %v1765_v50 = vpop.f32.mrb[63].mxu1  ;;  %7154 = vmatmul.mubr.msk.f32.gmra.mrb[124].mxu0 %vm1196_vm2, %v1835_v38  ;;  %v1837_v20 = vmax.f32 %v7054_v61, 0.0  ;;  %v3130_v38 = vld [vmem:[%s9487_s5 + $0x10] sm:$0xff]  ;;  %v3131_v61 = vld [vmem:[%s9487_s5 + $0x18] sm:$0xff] }
 0x240   : > { %v1836_v56 = vmax.f32 %v1765_v50, 0.0 }
 0x242   : > { %7156 = vmatprep.mubr.msk.f32.mxu0 %vm1196_vm2, %v1836_v56 }
 0x243   : > { %7157 = vmatmul.mubr.msk.f32.gmra.mrb[126].mxu0 %vm1196_vm2, %v1837_v20  ;;  %v7707_v20 = vpack.c.bf16 %v3131_v61, %v3130_v38 }
 0x245   : > { %7708 = vmatprep.subr.bf16.mxu0 %v7707_v20 }
 0x246   : > { %7710 = vmatpush3.bf16.msra.mxu0 %v7707_v20 }
 0x29a   : > { %v7065_v44 = vpop.f32.mrb[64].mxu0 }
 0x29b   : > { %v8457_v28 = vadd.f32 %v7065_v44, %v9601_v23  ;;  %v2100_v62 = vpop.f32.mrb[65].mxu0 }
 0x29c   : > { %v8461_v11 = vadd.f32 %v2100_v62, %v9602_v32 }
 0x29d   : > { %v2420_v10 = vmax.f32 %v8457_v28, 0.0 }
 0x29e   : > { %v2419_v50 = vmax.f32 %v8461_v11, 0.0  ;;  %v7068_v56 = vpop.f32.mrb[66].mxu0 }
 0x29f   : > { %v8473_v13 = vadd.f32 %v7068_v56, %v9603_v26  ;;  %v2110_v12 = vpop.f32.mrb[67].mxu0  ;;  %v9607_v26 = vmax.f32 %v8021_v30, 0.0 }
 0x2a0   : > { %v8477_v44 = vadd.f32 %v2110_v12, %v9604_v22  ;;  %7167 = vmatprep.mubr.msk.f32.mxu1 %vm1196_vm2, %v2419_v50  ;;  %v9608_v22 = vmax.f32 %v8026_v33, 0.0 }
 0x2a1   : > { %7168 = vmatmul.mubr.msk.f32.vlgmr.msra.gmra.mrb[64].mxu1 %vm1196_vm2, %v2420_v10  ;;  %v2422_v32 = vmax.f32 %v8473_v13, 0.0 }
 0x2a2   : > { %v2421_v23 = vmax.f32 %v8477_v44, 0.0  ;;  %v7071_v62 = vpop.f32.mrb[68].mxu0 }
 0x2a3   : > { %v8485_v38 = vadd.f32 %v7071_v62, %v9605_v16  ;;  %v2120_v61 = vpop.f32.mrb[69].mxu0  ;;  %v9609_v16 = vmax.f32 %v8033_v36, 0.0 }
 0x2a4   : > { %v8489_v56 = vadd.f32 %v2120_v61, %v9606_v21  ;;  %7170 = vmatprep.mubr.msk.f32.mxu1 %vm1196_vm2, %v2421_v23  ;;  %v9610_v21 = vmax.f32 %v8038_v39, 0.0 }
 0x2a5   : > { %7171 = vmatmul.mubr.msk.f32.gmra.mrb[66].mxu1 %vm1196_vm2, %v2422_v32  ;;  %v2424_v10 = vmax.f32 %v8485_v38, 0.0 }
 0x2a6   : > { %v2423_v50 = vmax.f32 %v8489_v56, 0.0  ;;  %v7074_v20 = vpop.f32.mrb[70].mxu0 }
 0x2a7   : > { %v8497_v12 = vadd.f32 %v7074_v20, %v9607_v26  ;;  %v2130_v24 = vpop.f32.mrb[71].mxu0  ;;  %v9611_v26 = vmax.f32 %v8045_v42, 0.0 }
 0x2a8   : > { %v8501_v62 = vadd.f32 %v2130_v24, %v9608_v22  ;;  %7173 = vmatprep.mubr.msk.f32.mxu1 %vm1196_vm2, %v2423_v50  ;;  %v9612_v22 = vmax.f32 %v8050_v45, 0.0 }
 0x2a9   : > { %7174 = vmatmul.mubr.msk.f32.gmra.mrb[68].mxu1 %vm1196_vm2, %v2424_v10  ;;  %v2426_v32 = vmax.f32 %v8497_v12, 0.0 }
 0x2aa   : > { %v2425_v27 = vmax.f32 %v8501_v62, 0.0  ;;  %v7077_v23 = vpop.f32.mrb[72].mxu0 }
 0x2ab   : > { %v8509_v61 = vadd.f32 %v7077_v23, %v9609_v16  ;;  %v2140_v30 = vpop.f32.mrb[73].mxu0  ;;  %v9613_v16 = vmax.f32 %v8057_v48, 0.0 }
 0x2ac   : > { %v8513_v20 = vadd.f32 %v2140_v30, %v9610_v21  ;;  %7176 = vmatprep.mubr.msk.f32.mxu1 %vm1196_vm2, %v2425_v27  ;;  %v9614_v21 = vmax.f32 %v8062_v51, 0.0 }
 0x2ad   : > { %7177 = vmatmul.mubr.msk.f32.gmra.mrb[70].mxu1 %vm1196_vm2, %v2426_v32  ;;  %v2428_v10 = vmax.f32 %v8509_v61, 0.0 }
 0x2ae   : > { %v2427_v33 = vmax.f32 %v8513_v20, 0.0  ;;  %v7080_v50 = vpop.f32.mrb[74].mxu0 }
 0x2af   : > { %v8521_v24 = vadd.f32 %v7080_v50, %v9611_v26  ;;  %v2150_v36 = vpop.f32.mrb[75].mxu0  ;;  %v9615_v26 = vmax.f32 %v8069_v54, 0.0 }
 0x2b0   : > { %v8525_v23 = vadd.f32 %v2150_v36, %v9612_v22  ;;  %7179 = vmatprep.mubr.msk.f32.mxu1 %vm1196_vm2, %v2427_v33  ;;  %v9616_v22 = vmax.f32 %v8074_v57, 0.0 }
 0x2b1   : > { %7180 = vmatmul.mubr.msk.f32.gmra.mrb[72].mxu1 %vm1196_vm2, %v2428_v10  ;;  %v2430_v32 = vmax.f32 %v8521_v24, 0.0 }
 0x2b2   : > { %v2429_v39 = vmax.f32 %v8525_v23, 0.0  ;;  %v7083_v27 = vpop.f32.mrb[76].mxu0 }
 0x2b3   : > { %v8533_v30 = vadd.f32 %v7083_v27, %v9613_v16  ;;  %v2160_v42 = vpop.f32.mrb[77].mxu0  ;;  %v9617_v16 = vmax.f32 %v8081_v60, 0.0 }
 0x2b4   : > { %v8537_v50 = vadd.f32 %v2160_v42, %v9614_v21  ;;  %7182 = vmatprep.mubr.msk.f32.mxu1 %vm1196_vm2, %v2429_v39  ;;  %v9618_v21 = vmax.f32 %v8086_v63, 0.0 }
 0x2b5   : > { %7183 = vmatmul.mubr.msk.f32.gmra.mrb[74].mxu1 %vm1196_vm2, %v2430_v32  ;;  %v2432_v10 = vmax.f32 %v8533_v30, 0.0 }
 0x2b6   : > { %v2431_v45 = vmax.f32 %v8537_v50, 0.0  ;;  %v7086_v33 = vpop.f32.mrb[78].mxu0 }
 0x2b7   : > { %v8545_v36 = vadd.f32 %v7086_v33, %v9615_v26  ;;  %v2170_v48 = vpop.f32.mrb[79].mxu0  ;;  %v9619_v26 = vmax.f32 %v8093_v2, 0.0 }
 0x2b8   : > { %v8549_v27 = vadd.f32 %v2170_v48, %v9616_v22  ;;  %7185 = vmatprep.mubr.msk.f32.mxu1 %vm1196_vm2, %v2431_v45  ;;  %v9620_v22 = vmax.f32 %v8098_v5, 0.0 }
 0x2b9   : > { %7186 = vmatmul.mubr.msk.f32.gmra.mrb[76].mxu1 %vm1196_vm2, %v2432_v10  ;;  %v2434_v32 = vmax.f32 %v8545_v36, 0.0 }
 0x2ba   : > { %v2433_v51 = vmax.f32 %v8549_v27, 0.0  ;;  %v7089_v39 = vpop.f32.mrb[80].mxu0 }
 0x2bb   : > { %v8557_v42 = vadd.f32 %v7089_v39, %v9617_v16  ;;  %v2180_v54 = vpop.f32.mrb[81].mxu0  ;;  %v9621_v16 = vmax.f32 %v8105_v8, 0.0 }
 0x2bc   : > { %v8561_v33 = vadd.f32 %v2180_v54, %v9618_v21  ;;  %7188 = vmatprep.mubr.msk.f32.mxu1 %vm1196_vm2, %v2433_v51  ;;  %v9622_v21 = vmax.f32 %v8110_v15, 0.0 }
 0x2bd   : > { %7189 = vmatmul.mubr.msk.f32.gmra.mrb[78].mxu1 %vm1196_vm2, %v2434_v32  ;;  %v2436_v10 = vmax.f32 %v8557_v42, 0.0 }
 0x2be   : > { %v2435_v57 = vmax.f32 %v8561_v33, 0.0  ;;  %v7092_v45 = vpop.f32.mrb[82].mxu0 }
 0x2bf   : > { %v8569_v48 = vadd.f32 %v7092_v45, %v9619_v26  ;;  %v2190_v60 = vpop.f32.mrb[83].mxu0  ;;  %v9623_v26 = vmax.f32 %v8117_v19, 0.0 }
 0x2c0   : > { %v8573_v39 = vadd.f32 %v2190_v60, %v9620_v22  ;;  %7191 = vmatprep.mubr.msk.f32.mxu1 %vm1196_vm2, %v2435_v57  ;;  %v9624_v22 = vmax.f32 %v8122_v29, 0.0 }
 0x2c1   : > { %7192 = vmatmul.mubr.msk.f32.gmra.mrb[80].mxu1 %vm1196_vm2, %v2436_v10  ;;  %v2438_v32 = vmax.f32 %v8569_v48, 0.0 }
 0x2c2   : > { %v2437_v63 = vmax.f32 %v8573_v39, 0.0  ;;  %v7095_v51 = vpop.f32.mrb[84].mxu0 }
 0x2c3   : > { %v8581_v54 = vadd.f32 %v7095_v51, %v9621_v16  ;;  %v2200_v2 = vpop.f32.mrb[85].mxu0  ;;  %v9625_v16 = vmax.f32 %v8129_v37, 0.0 }
 0x2c4   : > { %v8585_v45 = vadd.f32 %v2200_v2, %v9622_v21  ;;  %7194 = vmatprep.mubr.msk.f32.mxu1 %vm1196_vm2, %v2437_v63  ;;  %v9626_v21 = vmax.f32 %v8134_v47, 0.0 }
 0x2c5   : > { %7195 = vmatmul.mubr.msk.f32.gmra.mrb[82].mxu1 %vm1196_vm2, %v2438_v32  ;;  %v2440_v10 = vmax.f32 %v8581_v54, 0.0 }
 0x2c6   : > { %v2439_v5 = vmax.f32 %v8585_v45, 0.0  ;;  %v7098_v57 = vpop.f32.mrb[86].mxu0 }
 0x2c7   : > { %v8593_v60 = vadd.f32 %v7098_v57, %v9623_v26  ;;  %v2210_v8 = vpop.f32.mrb[87].mxu0  ;;  %v9627_v26 = vmax.f32 %v8141_v55, 0.0 }
 0x2c8   : > { %v8597_v51 = vadd.f32 %v2210_v8, %v9624_v22  ;;  %7197 = vmatprep.mubr.msk.f32.mxu1 %vm1196_vm2, %v2439_v5  ;;  %v9628_v22 = vmax.f32 %v8146_v1, 0.0 }
 0x2c9   : > { %7198 = vmatmul.mubr.msk.f32.gmra.mrb[84].mxu1 %vm1196_vm2, %v2440_v10  ;;  %v2442_v32 = vmax.f32 %v8593_v60, 0.0 }
 0x2ca   : > { %v2441_v15 = vmax.f32 %v8597_v51, 0.0  ;;  %v7101_v63 = vpop.f32.mrb[88].mxu0 }
 0x2cb   : > { %v8605_v2 = vadd.f32 %v7101_v63, %v9625_v16  ;;  %v2220_v19 = vpop.f32.mrb[89].mxu0  ;;  %v9629_v16 = vmax.f32 %v8153_v9, 0.0 }
 0x2cc   : > { %v8609_v57 = vadd.f32 %v2220_v19, %v9626_v21  ;;  %7200 = vmatprep.mubr.msk.f32.mxu1 %vm1196_vm2, %v2441_v15  ;;  %v9630_v21 = vmax.f32 %v8158_v35, 0.0 }
 0x2cd   : > { %7201 = vmatmul.mubr.msk.f32.gmra.mrb[86].mxu1 %vm1196_vm2, %v2442_v32  ;;  %v2444_v10 = vmax.f32 %v8605_v2, 0.0 }
 0x2ce   : > { %v2443_v29 = vmax.f32 %v8609_v57, 0.0  ;;  %v7104_v5 = vpop.f32.mrb[90].mxu0 }
 0x2cf   : > { %v8617_v8 = vadd.f32 %v7104_v5, %v9627_v26  ;;  %v2230_v37 = vpop.f32.mrb[91].mxu0  ;;  %v9631_v26 = vmax.f32 %v8165_v59, 0.0 }
 0x2d0   : > { %v8621_v63 = vadd.f32 %v2230_v37, %v9628_v22  ;;  %7203 = vmatprep.mubr.msk.f32.mxu1 %vm1196_vm2, %v2443_v29  ;;  %v9632_v22 = vmax.f32 %v8170_v49, 0.0 }
 0x2d1   : > { %7204 = vmatmul.mubr.msk.f32.gmra.mrb[88].mxu1 %vm1196_vm2, %v2444_v10  ;;  %v2446_v32 = vmax.f32 %v8617_v8, 0.0 }
 0x2d2   : > { %v2445_v47 = vmax.f32 %v8621_v63, 0.0  ;;  %v7107_v15 = vpop.f32.mrb[92].mxu0 }
 0x2d3   : > { %v8629_v19 = vadd.f32 %v7107_v15, %v9629_v16  ;;  %v2240_v55 = vpop.f32.mrb[93].mxu0  ;;  %v9633_v16 = vmax.f32 %v8177_v18, 0.0 }
 0x2d4   : > { %v8633_v5 = vadd.f32 %v2240_v55, %v9630_v21  ;;  %7206 = vmatprep.mubr.msk.f32.mxu1 %vm1196_vm2, %v2445_v47  ;;  %v9634_v21 = vmax.f32 %v8182_v31, 0.0 }
 0x2d5   : > { %7207 = vmatmul.mubr.msk.f32.gmra.mrb[90].mxu1 %vm1196_vm2, %v2446_v32  ;;  %v2448_v10 = vmax.f32 %v8629_v19, 0.0 }
 0x2d6   : > { %v2447_v1 = vmax.f32 %v8633_v5, 0.0  ;;  %v7110_v29 = vpop.f32.mrb[94].mxu0 }
 0x2d7   : > { %v8641_v37 = vadd.f32 %v7110_v29, %v9631_v26  ;;  %v2250_v9 = vpop.f32.mrb[95].mxu0  ;;  %v9635_v26 = vmax.f32 %v8189_v53, 0.0 }
 0x2d8   : > { %v8645_v15 = vadd.f32 %v2250_v9, %v9632_v22  ;;  %7209 = vmatprep.mubr.msk.f32.mxu1 %vm1196_vm2, %v2447_v1  ;;  %v9636_v22 = vmax.f32 %v8194_v17, 0.0 }
 0x2d9   : > { %7210 = vmatmul.mubr.msk.f32.gmra.mrb[92].mxu1 %vm1196_vm2, %v2448_v10  ;;  %v2450_v32 = vmax.f32 %v8641_v37, 0.0 }
 0x2da   : > { %v2449_v35 = vmax.f32 %v8645_v15, 0.0  ;;  %v7113_v47 = vpop.f32.mrb[96].mxu0 }
 0x2db   : > { %v8653_v55 = vadd.f32 %v7113_v47, %v9633_v16  ;;  %v2260_v59 = vpop.f32.mrb[97].mxu0  ;;  %v9637_v16 = vmax.f32 %v8201_v7, 0.0 }
 0x2dc   : > { %v8657_v29 = vadd.f32 %v2260_v59, %v9634_v21  ;;  %7212 = vmatprep.mubr.msk.f32.mxu1 %vm1196_vm2, %v2449_v35  ;;  %v9638_v21 = vmax.f32 %v8206_v6, 0.0 }
 0x2dd   : > { %7213 = vmatmul.mubr.msk.f32.gmra.mrb[94].mxu1 %vm1196_vm2, %v2450_v32  ;;  %v2452_v10 = vmax.f32 %v8653_v55, 0.0 }
 0x2de   : > { %v2451_v49 = vmax.f32 %v8657_v29, 0.0  ;;  %v7116_v1 = vpop.f32.mrb[98].mxu0 }
 0x2df   : > { %v8665_v9 = vadd.f32 %v7116_v1, %v9635_v26  ;;  %v2270_v18 = vpop.f32.mrb[99].mxu0  ;;  %v9639_v26 = vmax.f32 %v8213_v3, 0.0 }
 0x2e0   : > { %v8669_v47 = vadd.f32 %v2270_v18, %v9636_v22  ;;  %7215 = vmatprep.mubr.msk.f32.mxu1 %vm1196_vm2, %v2451_v49  ;;  %v9640_v22 = vmax.f32 %v8218_v0, 0.0 }
 0x2e1   : > { %7216 = vmatmul.mubr.msk.f32.gmra.mrb[96].mxu1 %vm1196_vm2, %v2452_v10  ;;  %v2454_v32 = vmax.f32 %v8665_v9, 0.0 }
 0x2e2   : > { %v2453_v31 = vmax.f32 %v8669_v47, 0.0  ;;  %v7119_v35 = vpop.f32.mrb[100].mxu0 }
 0x2e3   : > { %v8677_v59 = vadd.f32 %v7119_v35, %v9637_v16  ;;  %v2280_v53 = vpop.f32.mrb[101].mxu0  ;;  %v9641_v16 = vmax.f32 %v8225_v41, 0.0 }
 0x2e4   : > { %v8681_v1 = vadd.f32 %v2280_v53, %v9638_v21  ;;  %7218 = vmatprep.mubr.msk.f32.mxu1 %vm1196_vm2, %v2453_v31  ;;  %v9642_v21 = vmax.f32 %v8230_v58, 0.0 }
 0x2e5   : > { %7219 = vmatmul.mubr.msk.f32.gmra.mrb[98].mxu1 %vm1196_vm2, %v2454_v32  ;;  %v2456_v10 = vmax.f32 %v8677_v59, 0.0 }
 0x2e6   : > { %v2455_v17 = vmax.f32 %v8681_v1, 0.0  ;;  %v7122_v49 = vpop.f32.mrb[102].mxu0 }
 0x2e7   : > { %v8689_v18 = vadd.f32 %v7122_v49, %v9639_v26  ;;  %v2290_v7 = vpop.f32.mrb[103].mxu0  ;;  %v9643_v26 = vmax.f32 %v8237_v43, 0.0 }
 0x2e8   : > { %v8693_v35 = vadd.f32 %v2290_v7, %v9640_v22  ;;  %7221 = vmatprep.mubr.msk.f32.mxu1 %vm1196_vm2, %v2455_v17  ;;  %v9644_v22 = vmax.f32 %v8242_v52, 0.0 }
 0x2e9   : > { %7222 = vmatmul.mubr.msk.f32.gmra.mrb[100].mxu1 %vm1196_vm2, %v2456_v10  ;;  %v2458_v32 = vmax.f32 %v8689_v18, 0.0 }
 0x2ea   : > { %v2457_v6 = vmax.f32 %v8693_v35, 0.0  ;;  %v7125_v31 = vpop.f32.mrb[104].mxu0 }
 0x2eb   : > { %v8701_v53 = vadd.f32 %v7125_v31, %v9641_v16  ;;  %v2300_v3 = vpop.f32.mrb[105].mxu0  ;;  %v9645_v16 = vmax.f32 %v8249_v25, 0.0 }
 0x2ec   : > { %v8705_v49 = vadd.f32 %v2300_v3, %v9642_v21  ;;  %7224 = vmatprep.mubr.msk.f32.mxu1 %vm1196_vm2, %v2457_v6  ;;  %v9646_v21 = vmax.f32 %v8254_v46, 0.0 }
 0x2ed   : > { %7225 = vmatmul.mubr.msk.f32.gmra.mrb[102].mxu1 %vm1196_vm2, %v2458_v32  ;;  %v2460_v10 = vmax.f32 %v8701_v53, 0.0 }
 0x2ee   : > { %v2459_v0 = vmax.f32 %v8705_v49, 0.0  ;;  %v7128_v17 = vpop.f32.mrb[106].mxu0 }
 0x2ef   : > { %v8713_v7 = vadd.f32 %v7128_v17, %v9643_v26  ;;  %v2310_v41 = vpop.f32.mrb[107].mxu0  ;;  %v9647_v26 = vmax.f32 %v8261_v14, 0.0 }
 0x2f0   : > { %v8717_v31 = vadd.f32 %v2310_v41, %v9644_v22  ;;  %7227 = vmatprep.mubr.msk.f32.mxu1 %vm1196_vm2, %v2459_v0  ;;  %v9648_v22 = vmax.f32 %v8266_v40, 0.0 }
 0x2f1   : > { %7228 = vmatmul.mubr.msk.f32.gmra.mrb[104].mxu1 %vm1196_vm2, %v2460_v10  ;;  %v2462_v32 = vmax.f32 %v8713_v7, 0.0 }
 0x2f2   : > { %v2461_v58 = vmax.f32 %v8717_v31, 0.0  ;;  %v7131_v6 = vpop.f32.mrb[108].mxu0 }
 0x2f3   : > { %v8725_v3 = vadd.f32 %v7131_v6, %v9645_v16  ;;  %v2320_v43 = vpop.f32.mrb[109].mxu0  ;;  %v9650_v16 = vmax.f32 %v8273_v4, 0.0 }
 0x2f4   : > { %v8729_v17 = vadd.f32 %v2320_v43, %v9646_v21  ;;  %7230 = vmatprep.mubr.msk.f32.mxu1 %vm1196_vm2, %v2461_v58  ;;  %v9652_v21 = vmax.f32 %v8278_v34, 0.0 }
 0x2f5   : > { %7231 = vmatmul.mubr.msk.f32.gmra.mrb[106].mxu1 %vm1196_vm2, %v2462_v32  ;;  %v2464_v10 = vmax.f32 %v8725_v3, 0.0 }
 0x2f6   : > { %v2463_v52 = vmax.f32 %v8729_v17, 0.0  ;;  %v7134_v0 = vpop.f32.mrb[110].mxu0 }
 0x2f7   : > { %v8737_v41 = vadd.f32 %v7134_v0, %v9647_v26  ;;  %v2330_v25 = vpop.f32.mrb[111].mxu0  ;;  %v9654_v26 = vld [vmem:[#allocation2_spill] sm:$0xff] }
 0x2f8   : > { %v8741_v6 = vadd.f32 %v2330_v25, %v9648_v22  ;;  %7233 = vmatprep.mubr.msk.f32.mxu1 %vm1196_vm2, %v2463_v52  ;;  %v9655_v25 = vmax.f32 %v9654_v26, 0.0  ;;  %v9663_v26 = vld [vmem:[#allocation5_spill] sm:$0xff] }
 0x2f9   : > { %7234 = vmatmul.mubr.msk.f32.gmra.mrb[108].mxu1 %vm1196_vm2, %v2464_v10  ;;  %v2466_v32 = vmax.f32 %v8737_v41, 0.0 }
 0x2fa   : > { %9649 = vst [vmem:[#allocation16_spill] sm:$0xff] %v8741_v6  ;;  %v2465_v46 = vmax.f32 %v8741_v6, 0.0  ;;  %v7137_v58 = vpop.f32.mrb[112].mxu0 }
 0x2fb   : > { %v8749_v43 = vadd.f32 %v7137_v58, %v9650_v16  ;;  %v2340_v14 = vpop.f32.mrb[113].mxu0  ;;  %v9657_v58 = vld [vmem:[#allocation3_spill] sm:$0xff] }
 0x2fc   : > { %v8753_v0 = vadd.f32 %v2340_v14, %v9652_v21  ;;  %7236 = vmatprep.mubr.msk.f32.mxu1 %vm1196_vm2, %v2465_v46  ;;  %v9658_v16 = vmax.f32 %v9657_v58, 0.0  ;;  %v9660_v14 = vld [vmem:[#allocation4_spill] sm:$0xff]  ;;  %v9666_v58 = vld [vmem:[#allocation6_spill] sm:$0xff] }
 0x2fd   : > { %9651 = vst [vmem:[#allocation17_spill] sm:$0xff] %v8749_v43  ;;  %7237 = vmatmul.mubr.msk.f32.gmra.mrb[110].mxu1 %vm1196_vm2, %v2466_v32  ;;  %v2468_v10 = vmax.f32 %v8749_v43, 0.0  ;;  %v9661_v21 = vmax.f32 %v9660_v14, 0.0  ;;  %v9669_v14 = vld [vmem:[#allocation7_spill] sm:$0xff] }
 0x2fe   : > { %9653 = vst [vmem:[#allocation18_spill] sm:$0xff] %v8753_v0  ;;  %v2467_v40 = vmax.f32 %v8753_v0, 0.0  ;;  %v7140_v52 = vpop.f32.mrb[114].mxu0 }
 0x2ff   : > { %v8761_v22 = vadd.f32 %v7140_v52, %v9655_v25  ;;  %v2350_v4 = vpop.f32.mrb[115].mxu0  ;;  %v9664_v25 = vmax.f32 %v9663_v26, 0.0  ;;  %v9672_v26 = vld [vmem:[#allocation8_spill] sm:$0xff] }
 0x300   : > { %v8765_v6 = vadd.f32 %v2350_v4, %v9658_v16  ;;  %7239 = vmatprep.mubr.msk.f32.mxu1 %vm1196_vm2, %v2467_v40  ;;  %v9667_v16 = vmax.f32 %v9666_v58, 0.0  ;;  %v9675_v58 = vld [vmem:[#allocation9_spill] sm:$0xff] }
 0x301   : > { %9656 = vst [vmem:[#allocation2_spill] sm:$0xff] %v8761_v22  ;;  %7240 = vmatmul.mubr.msk.f32.gmra.mrb[112].mxu1 %vm1196_vm2, %v2468_v10  ;;  %v2470_v32 = vmax.f32 %v8761_v22, 0.0 }
 0x302   : > { %9659 = vst [vmem:[#allocation3_spill] sm:$0xff] %v8765_v6  ;;  %v2469_v34 = vmax.f32 %v8765_v6, 0.0  ;;  %v7143_v46 = vpop.f32.mrb[116].mxu0 }
 0x303   : > { %v8773_v0 = vadd.f32 %v7143_v46, %v9661_v21  ;;  %v2360_v52 = vpop.f32.mrb[117].mxu0  ;;  %v9670_v21 = vmax.f32 %v9669_v14, 0.0  ;;  %v9678_v14 = vld [vmem:[#allocation10_spill] sm:$0xff] }
 0x304   : > { %v8777_v43 = vadd.f32 %v2360_v52, %v9664_v25  ;;  %7242 = vmatprep.mubr.msk.f32.mxu1 %vm1196_vm2, %v2469_v34  ;;  %v9673_v25 = vmax.f32 %v9672_v26, 0.0  ;;  %v9681_v26 = vld [vmem:[#allocation11_spill] sm:$0xff] }
 0x305   : > { %9662 = vst [vmem:[#allocation4_spill] sm:$0xff] %v8773_v0  ;;  %7243 = vmatmul.mubr.msk.f32.gmra.mrb[114].mxu1 %vm1196_vm2, %v2470_v32  ;;  %v2472_v4 = vmax.f32 %v8773_v0, 0.0 }
 0x306   : > { %9665 = vst [vmem:[#allocation5_spill] sm:$0xff] %v8777_v43  ;;  %v2471_v40 = vmax.f32 %v8777_v43, 0.0  ;;  %v7146_v10 = vpop.f32.mrb[118].mxu0 }
 0x307   : > { %v8785_v6 = vadd.f32 %v7146_v10, %v9667_v16  ;;  %v2370_v46 = vpop.f32.mrb[119].mxu0  ;;  %v9676_v16 = vmax.f32 %v9675_v58, 0.0  ;;  %v9684_v58 = vld [vmem:[#allocation12_spill] sm:$0xff] }
 0x308   : > { %v8789_v22 = vadd.f32 %v2370_v46, %v9670_v21  ;;  %7245 = vmatprep.mubr.msk.f32.mxu1 %vm1196_vm2, %v2471_v40  ;;  %v9679_v21 = vmax.f32 %v9678_v14, 0.0  ;;  %v9686_v14 = vld [vmem:[#allocation13_spill] sm:$0xff] }
 0x309   : > { %9668 = vst [vmem:[#allocation6_spill] sm:$0xff] %v8785_v6  ;;  %7246 = vmatmul.mubr.msk.f32.gmra.mrb[116].mxu1 %vm1196_vm2, %v2472_v4  ;;  %v2474_v52 = vmax.f32 %v8785_v6, 0.0 }
 0x30a   : > { %9671 = vst [vmem:[#allocation7_spill] sm:$0xff] %v8789_v22  ;;  %v2473_v34 = vmax.f32 %v8789_v22, 0.0  ;;  %v7149_v32 = vpop.f32.mrb[120].mxu0 }
 0x30b   : > { %v8797_v43 = vadd.f32 %v7149_v32, %v9673_v25  ;;  %v2380_v10 = vpop.f32.mrb[121].mxu0  ;;  %v9682_v25 = vmax.f32 %v9681_v26, 0.0  ;;  %v9688_v26 = vld [vmem:[#allocation14_spill] sm:$0xff] }
 0x30c   : > { %v8801_v0 = vadd.f32 %v2380_v10, %v9676_v16  ;;  %7248 = vmatprep.mubr.msk.f32.mxu1 %vm1196_vm2, %v2473_v34  ;;  %v9685_v16 = vmax.f32 %v9684_v58, 0.0  ;;  %v9690_v58 = vld [vmem:[#allocation15_spill] sm:$0xff] }
 0x30d   : > { %9674 = vst [vmem:[#allocation8_spill] sm:$0xff] %v8797_v43  ;;  %7249 = vmatmul.mubr.msk.f32.gmra.mrb[118].mxu1 %vm1196_vm2, %v2474_v52  ;;  %v2476_v46 = vmax.f32 %v8797_v43, 0.0 }
 0x30e   : > { %9677 = vst [vmem:[#allocation9_spill] sm:$0xff] %v8801_v0  ;;  %v2475_v40 = vmax.f32 %v8801_v0, 0.0  ;;  %v7152_v4 = vpop.f32.mrb[122].mxu0 }
 0x30f   : > { %v8809_v22 = vadd.f32 %v7152_v4, %v9679_v21  ;;  %v2390_v32 = vpop.f32.mrb[123].mxu0  ;;  %v9687_v21 = vmax.f32 %v9686_v14, 0.0  ;;  %v3774_v14 = vld [vmem:[%s9488_s6 + $0x8] sm:$0xff] }
 0x310   : > { %v8813_v6 = vadd.f32 %v2390_v32, %v9682_v25  ;;  %7251 = vmatprep.mubr.msk.f32.mxu1 %vm1196_vm2, %v2475_v40  ;;  %v9689_v25 = vmax.f32 %v9688_v26, 0.0  ;;  %v3776_v26 = vld [vmem:[%s9488_s6 + $0x18] sm:$0xff] }
 0x311   : > { %9680 = vst [vmem:[#allocation10_spill] sm:$0xff] %v8809_v22  ;;  %7252 = vmatmul.mubr.msk.f32.gmra.mrb[120].mxu1 %vm1196_vm2, %v2476_v46  ;;  %v2478_v10 = vmax.f32 %v8809_v22, 0.0 }
 0x312   : > { %9683 = vst [vmem:[#allocation11_spill] sm:$0xff] %v8813_v6  ;;  %v2477_v34 = vmax.f32 %v8813_v6, 0.0  ;;  %v7155_v52 = vpop.f32.mrb[124].mxu0 }
 0x313   : > { %v8821_v0 = vadd.f32 %v7155_v52, %v9685_v16  ;;  %v2400_v4 = vpop.f32.mrb[125].mxu0  ;;  %v9691_v16 = vmax.f32 %v9690_v58, 0.0 }
 0x314   : > { %v8825_v43 = vadd.f32 %v2400_v4, %v9687_v21  ;;  %7254 = vmatprep.mubr.msk.f32.mxu1 %vm1196_vm2, %v2477_v34  ;;  %v3773_v4 = vld [vmem:[%s9488_s6] sm:$0xff] }
 0x315   : > { %7255 = vmatmul.mubr.msk.f32.gmra.mrb[122].mxu1 %vm1196_vm2, %v2478_v10  ;;  %v2480_v32 = vmax.f32 %v8821_v0, 0.0  ;;  %v7711_v21 = vpack.c.bf16 %v3774_v14, %v3773_v4 }
 0x316   : > { %v2479_v40 = vmax.f32 %v8825_v43, 0.0  ;;  %v7158_v46 = vpop.f32.mrb[126].mxu0 }
 0x317   : > { %v8833_v6 = vadd.f32 %v7158_v46, %v9689_v25  ;;  %v2410_v52 = vpop.f32.mrb[127].mxu0  ;;  %7712 = vmatprep.subr.bf16.mxu1 %v7711_v21 }
 0x318   : > { %v8837_v22 = vadd.f32 %v2410_v52, %v9691_v16  ;;  %7257 = vmatprep.mubr.msk.f32.mxu1 %vm1196_vm2, %v2479_v40  ;;  %7714 = vmatpush3.bf16.msra.mxu1 %v7711_v21 }
 0x319   : > { %7258 = vmatmul.mubr.msk.f32.gmra.mrb[124].mxu1 %vm1196_vm2, %v2480_v32  ;;  %v2482_v10 = vmax.f32 %v8833_v6, 0.0  ;;  %v3775_v32 = vld [vmem:[%s9488_s6 + $0x10] sm:$0xff] }
 0x31a   : > { %9692 = vst [vmem:[#allocation12_spill] sm:$0xff] %v8837_v22  ;;  %v2481_v34 = vmax.f32 %v8837_v22, 0.0  ;;  %v7715_v52 = vpack.c.bf16 %v3776_v26, %v3775_v32 }
 0x31c   : > { %7260 = vmatprep.mubr.msk.f32.mxu1 %vm1196_vm2, %v2481_v34  ;;  %7716 = vmatprep.subr.bf16.mxu1 %v7715_v52 }
 0x31d   : > { %7261 = vmatmul.mubr.msk.f32.gmra.mrb[126].mxu1 %vm1196_vm2, %v2482_v10 }
 0x31e   : > { %7718 = vmatpush3.bf16.msra.mxu1 %v7715_v52 }
 0x374   : > { %v7169_v40 = vpop.f32.mrb[64].mxu1 }
 0x375   : > { %v2745_v46 = vpop.f32.mrb[65].mxu1  ;;  %v3065_v58 = vmax.f32 %v7169_v40, 0.0 }
 0x376   : > { %v3064_v25 = vmax.f32 %v2745_v46, 0.0 }
 0x378   : > { %v7172_v16 = vpop.f32.mrb[66].mxu1  ;;  %7271 = vmatprep.mubr.msk.f32.mxu0 %vm1196_vm2, %v3064_v25 }
 0x379   : > { %v2755_v34 = vpop.f32.mrb[67].mxu1  ;;  %7272 = vmatmul.mubr.msk.f32.vlgmr.msra.gmra.mrb[128].mxu0 %vm1196_vm2, %v3065_v58  ;;  %v3067_v4 = vmax.f32 %v7172_v16, 0.0 }
 0x37a   : > { %v3066_v10 = vmax.f32 %v2755_v34, 0.0 }
 0x37c   : > { %v7175_v14 = vpop.f32.mrb[68].mxu1  ;;  %7274 = vmatprep.mubr.msk.f32.mxu0 %vm1196_vm2, %v3066_v10 }
 0x37d   : > { %v2765_v21 = vpop.f32.mrb[69].mxu1  ;;  %7275 = vmatmul.mubr.msk.f32.gmra.mrb[130].mxu0 %vm1196_vm2, %v3067_v4  ;;  %v3069_v46 = vmax.f32 %v7175_v14, 0.0 }
 0x37e   : > { %v3068_v22 = vmax.f32 %v2765_v21, 0.0 }
 0x380   : > { %v7178_v32 = vpop.f32.mrb[70].mxu1  ;;  %7277 = vmatprep.mubr.msk.f32.mxu0 %vm1196_vm2, %v3068_v22 }
 0x381   : > { %v2775_v40 = vpop.f32.mrb[71].mxu1  ;;  %7278 = vmatmul.mubr.msk.f32.gmra.mrb[132].mxu0 %vm1196_vm2, %v3069_v46  ;;  %v3071_v25 = vmax.f32 %v7178_v32, 0.0 }
 0x382   : > { %v3070_v26 = vmax.f32 %v2775_v40, 0.0 }
 0x384   : > { %v7181_v58 = vpop.f32.mrb[72].mxu1  ;;  %7280 = vmatprep.mubr.msk.f32.mxu0 %vm1196_vm2, %v3070_v26 }
 0x385   : > { %v2785_v52 = vpop.f32.mrb[73].mxu1  ;;  %7281 = vmatmul.mubr.msk.f32.gmra.mrb[134].mxu0 %vm1196_vm2, %v3071_v25  ;;  %v3073_v34 = vmax.f32 %v7181_v58, 0.0 }
 0x386   : > { %v3072_v16 = vmax.f32 %v2785_v52, 0.0 }
 0x388   : > { %v7184_v10 = vpop.f32.mrb[74].mxu1  ;;  %7283 = vmatprep.mubr.msk.f32.mxu0 %vm1196_vm2, %v3072_v16 }
 0x389   : > { %v2795_v4 = vpop.f32.mrb[75].mxu1  ;;  %7284 = vmatmul.mubr.msk.f32.gmra.mrb[136].mxu0 %vm1196_vm2, %v3073_v34  ;;  %v3075_v14 = vmax.f32 %v7184_v10, 0.0 }
 0x38a   : > { %v3074_v22 = vmax.f32 %v2795_v4, 0.0 }
 0x38c   : > { %v7187_v21 = vpop.f32.mrb[76].mxu1  ;;  %7286 = vmatprep.mubr.msk.f32.mxu0 %vm1196_vm2, %v3074_v22 }
 0x38d   : > { %v2805_v46 = vpop.f32.mrb[77].mxu1  ;;  %7287 = vmatmul.mubr.msk.f32.gmra.mrb[138].mxu0 %vm1196_vm2, %v3075_v14  ;;  %v3077_v40 = vmax.f32 %v7187_v21, 0.0 }
 0x38e   : > { %v3076_v32 = vmax.f32 %v2805_v46, 0.0 }
 0x390   : > { %v7190_v26 = vpop.f32.mrb[78].mxu1  ;;  %7289 = vmatprep.mubr.msk.f32.mxu0 %vm1196_vm2, %v3076_v32 }
 0x391   : > { %v2815_v25 = vpop.f32.mrb[79].mxu1  ;;  %7290 = vmatmul.mubr.msk.f32.gmra.mrb[140].mxu0 %vm1196_vm2, %v3077_v40  ;;  %v3079_v52 = vmax.f32 %v7190_v26, 0.0 }
 0x392   : > { %v3078_v58 = vmax.f32 %v2815_v25, 0.0 }
 0x394   : > { %v7193_v16 = vpop.f32.mrb[80].mxu1  ;;  %7292 = vmatprep.mubr.msk.f32.mxu0 %vm1196_vm2, %v3078_v58 }
 0x395   : > { %v2825_v34 = vpop.f32.mrb[81].mxu1  ;;  %7293 = vmatmul.mubr.msk.f32.gmra.mrb[142].mxu0 %vm1196_vm2, %v3079_v52  ;;  %v3081_v4 = vmax.f32 %v7193_v16, 0.0 }
 0x396   : > { %v3080_v10 = vmax.f32 %v2825_v34, 0.0 }
 0x398   : > { %v7196_v22 = vpop.f32.mrb[82].mxu1  ;;  %7295 = vmatprep.mubr.msk.f32.mxu0 %vm1196_vm2, %v3080_v10 }
 0x399   : > { %v2835_v14 = vpop.f32.mrb[83].mxu1  ;;  %7296 = vmatmul.mubr.msk.f32.gmra.mrb[144].mxu0 %vm1196_vm2, %v3081_v4  ;;  %v3083_v46 = vmax.f32 %v7196_v22, 0.0 }
 0x39a   : > { %v3082_v21 = vmax.f32 %v2835_v14, 0.0 }
 0x39c   : > { %v7199_v32 = vpop.f32.mrb[84].mxu1  ;;  %7298 = vmatprep.mubr.msk.f32.mxu0 %vm1196_vm2, %v3082_v21 }
 0x39d   : > { %v2845_v40 = vpop.f32.mrb[85].mxu1  ;;  %7299 = vmatmul.mubr.msk.f32.gmra.mrb[146].mxu0 %vm1196_vm2, %v3083_v46  ;;  %v3085_v25 = vmax.f32 %v7199_v32, 0.0 }
 0x39e   : > { %v3084_v26 = vmax.f32 %v2845_v40, 0.0 }
 0x3a0   : > { %v7202_v58 = vpop.f32.mrb[86].mxu1  ;;  %7301 = vmatprep.mubr.msk.f32.mxu0 %vm1196_vm2, %v3084_v26 }
 0x3a1   : > { %v2855_v52 = vpop.f32.mrb[87].mxu1  ;;  %7302 = vmatmul.mubr.msk.f32.gmra.mrb[148].mxu0 %vm1196_vm2, %v3085_v25  ;;  %v3087_v34 = vmax.f32 %v7202_v58, 0.0 }
 0x3a2   : > { %v3086_v16 = vmax.f32 %v2855_v52, 0.0 }
 0x3a4   : > { %v7205_v10 = vpop.f32.mrb[88].mxu1  ;;  %7304 = vmatprep.mubr.msk.f32.mxu0 %vm1196_vm2, %v3086_v16 }
 0x3a5   : > { %v2865_v4 = vpop.f32.mrb[89].mxu1  ;;  %7305 = vmatmul.mubr.msk.f32.gmra.mrb[150].mxu0 %vm1196_vm2, %v3087_v34  ;;  %v3089_v14 = vmax.f32 %v7205_v10, 0.0 }
 0x3a6   : > { %v3088_v22 = vmax.f32 %v2865_v4, 0.0 }
 0x3a8   : > { %v7208_v21 = vpop.f32.mrb[90].mxu1  ;;  %7307 = vmatprep.mubr.msk.f32.mxu0 %vm1196_vm2, %v3088_v22 }
 0x3a9   : > { %v2875_v46 = vpop.f32.mrb[91].mxu1  ;;  %7308 = vmatmul.mubr.msk.f32.gmra.mrb[152].mxu0 %vm1196_vm2, %v3089_v14  ;;  %v3091_v40 = vmax.f32 %v7208_v21, 0.0 }
 0x3aa   : > { %v3090_v32 = vmax.f32 %v2875_v46, 0.0 }
 0x3ac   : > { %v7211_v26 = vpop.f32.mrb[92].mxu1  ;;  %7310 = vmatprep.mubr.msk.f32.mxu0 %vm1196_vm2, %v3090_v32 }
 0x3ad   : > { %v2885_v25 = vpop.f32.mrb[93].mxu1  ;;  %7311 = vmatmul.mubr.msk.f32.gmra.mrb[154].mxu0 %vm1196_vm2, %v3091_v40  ;;  %v3093_v52 = vmax.f32 %v7211_v26, 0.0 }
 0x3ae   : > { %v3092_v58 = vmax.f32 %v2885_v25, 0.0 }
 0x3b0   : > { %v7214_v16 = vpop.f32.mrb[94].mxu1  ;;  %7313 = vmatprep.mubr.msk.f32.mxu0 %vm1196_vm2, %v3092_v58 }
 0x3b1   : > { %v2895_v34 = vpop.f32.mrb[95].mxu1  ;;  %7314 = vmatmul.mubr.msk.f32.gmra.mrb[156].mxu0 %vm1196_vm2, %v3093_v52  ;;  %v3095_v4 = vmax.f32 %v7214_v16, 0.0 }
 0x3b2   : > { %v3094_v10 = vmax.f32 %v2895_v34, 0.0 }
 0x3b4   : > { %v7217_v22 = vpop.f32.mrb[96].mxu1  ;;  %7316 = vmatprep.mubr.msk.f32.mxu0 %vm1196_vm2, %v3094_v10 }
 0x3b5   : > { %v2905_v14 = vpop.f32.mrb[97].mxu1  ;;  %7317 = vmatmul.mubr.msk.f32.gmra.mrb[158].mxu0 %vm1196_vm2, %v3095_v4  ;;  %v3097_v46 = vmax.f32 %v7217_v22, 0.0 }
 0x3b6   : > { %v3096_v21 = vmax.f32 %v2905_v14, 0.0 }
 0x3b8   : > { %v7220_v32 = vpop.f32.mrb[98].mxu1  ;;  %7319 = vmatprep.mubr.msk.f32.mxu0 %vm1196_vm2, %v3096_v21 }
 0x3b9   : > { %v2915_v40 = vpop.f32.mrb[99].mxu1  ;;  %7320 = vmatmul.mubr.msk.f32.gmra.mrb[160].mxu0 %vm1196_vm2, %v3097_v46  ;;  %v3099_v25 = vmax.f32 %v7220_v32, 0.0 }
 0x3ba   : > { %v3098_v26 = vmax.f32 %v2915_v40, 0.0 }
 0x3bc   : > { %v7223_v58 = vpop.f32.mrb[100].mxu1  ;;  %7322 = vmatprep.mubr.msk.f32.mxu0 %vm1196_vm2, %v3098_v26 }
 0x3bd   : > { %v2925_v52 = vpop.f32.mrb[101].mxu1  ;;  %7323 = vmatmul.mubr.msk.f32.gmra.mrb[162].mxu0 %vm1196_vm2, %v3099_v25  ;;  %v3101_v34 = vmax.f32 %v7223_v58, 0.0 }
 0x3be   : > { %v3100_v16 = vmax.f32 %v2925_v52, 0.0 }
 0x3c0   : > { %v7226_v10 = vpop.f32.mrb[102].mxu1  ;;  %7325 = vmatprep.mubr.msk.f32.mxu0 %vm1196_vm2, %v3100_v16 }
 0x3c1   : > { %v2935_v4 = vpop.f32.mrb[103].mxu1  ;;  %7326 = vmatmul.mubr.msk.f32.gmra.mrb[164].mxu0 %vm1196_vm2, %v3101_v34  ;;  %v3103_v14 = vmax.f32 %v7226_v10, 0.0 }
 0x3c2   : > { %v3102_v22 = vmax.f32 %v2935_v4, 0.0 }
 0x3c4   : > { %v7229_v21 = vpop.f32.mrb[104].mxu1  ;;  %7328 = vmatprep.mubr.msk.f32.mxu0 %vm1196_vm2, %v3102_v22 }
 0x3c5   : > { %v2945_v46 = vpop.f32.mrb[105].mxu1  ;;  %7329 = vmatmul.mubr.msk.f32.gmra.mrb[166].mxu0 %vm1196_vm2, %v3103_v14  ;;  %v3105_v40 = vmax.f32 %v7229_v21, 0.0 }
 0x3c6   : > { %v3104_v32 = vmax.f32 %v2945_v46, 0.0 }
 0x3c8   : > { %v7232_v26 = vpop.f32.mrb[106].mxu1  ;;  %7331 = vmatprep.mubr.msk.f32.mxu0 %vm1196_vm2, %v3104_v32 }
 0x3c9   : > { %v2955_v25 = vpop.f32.mrb[107].mxu1  ;;  %7332 = vmatmul.mubr.msk.f32.gmra.mrb[168].mxu0 %vm1196_vm2, %v3105_v40  ;;  %v3107_v52 = vmax.f32 %v7232_v26, 0.0 }
 0x3ca   : > { %v3106_v58 = vmax.f32 %v2955_v25, 0.0 }
 0x3cc   : > { %v7235_v16 = vpop.f32.mrb[108].mxu1  ;;  %7334 = vmatprep.mubr.msk.f32.mxu0 %vm1196_vm2, %v3106_v58 }
 0x3cd   : > { %v2965_v34 = vpop.f32.mrb[109].mxu1  ;;  %7335 = vmatmul.mubr.msk.f32.gmra.mrb[170].mxu0 %vm1196_vm2, %v3107_v52  ;;  %v3109_v4 = vmax.f32 %v7235_v16, 0.0 }
 0x3ce   : > { %v3108_v10 = vmax.f32 %v2965_v34, 0.0 }
 0x3d0   : > { %v7238_v22 = vpop.f32.mrb[110].mxu1  ;;  %7337 = vmatprep.mubr.msk.f32.mxu0 %vm1196_vm2, %v3108_v10 }
 0x3d1   : > { %v2975_v14 = vpop.f32.mrb[111].mxu1  ;;  %7338 = vmatmul.mubr.msk.f32.gmra.mrb[172].mxu0 %vm1196_vm2, %v3109_v4  ;;  %v3111_v46 = vmax.f32 %v7238_v22, 0.0 }
 0x3d2   : > { %v3110_v21 = vmax.f32 %v2975_v14, 0.0 }
 0x3d4   : > { %v7241_v32 = vpop.f32.mrb[112].mxu1  ;;  %7340 = vmatprep.mubr.msk.f32.mxu0 %vm1196_vm2, %v3110_v21 }
 0x3d5   : > { %v2985_v40 = vpop.f32.mrb[113].mxu1  ;;  %7341 = vmatmul.mubr.msk.f32.gmra.mrb[174].mxu0 %vm1196_vm2, %v3111_v46  ;;  %v3113_v25 = vmax.f32 %v7241_v32, 0.0 }
 0x3d6   : > { %v3112_v26 = vmax.f32 %v2985_v40, 0.0 }
 0x3d8   : > { %v7244_v58 = vpop.f32.mrb[114].mxu1  ;;  %7343 = vmatprep.mubr.msk.f32.mxu0 %vm1196_vm2, %v3112_v26 }
 0x3d9   : > { %v2995_v52 = vpop.f32.mrb[115].mxu1  ;;  %7344 = vmatmul.mubr.msk.f32.gmra.mrb[176].mxu0 %vm1196_vm2, %v3113_v25  ;;  %v3115_v34 = vmax.f32 %v7244_v58, 0.0 }
 0x3da   : > { %v3114_v16 = vmax.f32 %v2995_v52, 0.0 }
 0x3dc   : > { %v7247_v10 = vpop.f32.mrb[116].mxu1  ;;  %7346 = vmatprep.mubr.msk.f32.mxu0 %vm1196_vm2, %v3114_v16 }
 0x3dd   : > { %v3005_v4 = vpop.f32.mrb[117].mxu1  ;;  %7347 = vmatmul.mubr.msk.f32.gmra.mrb[178].mxu0 %vm1196_vm2, %v3115_v34  ;;  %v3117_v14 = vmax.f32 %v7247_v10, 0.0 }
 0x3de   : > { %v3116_v22 = vmax.f32 %v3005_v4, 0.0 }
 0x3e0   : > { %v7250_v21 = vpop.f32.mrb[118].mxu1  ;;  %7349 = vmatprep.mubr.msk.f32.mxu0 %vm1196_vm2, %v3116_v22 }
 0x3e1   : > { %v3015_v46 = vpop.f32.mrb[119].mxu1  ;;  %7350 = vmatmul.mubr.msk.f32.gmra.mrb[180].mxu0 %vm1196_vm2, %v3117_v14  ;;  %v3119_v40 = vmax.f32 %v7250_v21, 0.0 }
 0x3e2   : > { %v3118_v32 = vmax.f32 %v3015_v46, 0.0 }
 0x3e4   : > { %v7253_v26 = vpop.f32.mrb[120].mxu1  ;;  %7352 = vmatprep.mubr.msk.f32.mxu0 %vm1196_vm2, %v3118_v32 }
 0x3e5   : > { %v3025_v25 = vpop.f32.mrb[121].mxu1  ;;  %7353 = vmatmul.mubr.msk.f32.gmra.mrb[182].mxu0 %vm1196_vm2, %v3119_v40  ;;  %v3121_v52 = vmax.f32 %v7253_v26, 0.0 }
 0x3e6   : > { %v3120_v58 = vmax.f32 %v3025_v25, 0.0 }
 0x3e8   : > { %v7256_v16 = vpop.f32.mrb[122].mxu1  ;;  %7355 = vmatprep.mubr.msk.f32.mxu0 %vm1196_vm2, %v3120_v58  ;;  %v4425_v58 = vld [vmem:[%s9490_s8] sm:$0xff] }
 0x3e9   : > { %v3035_v34 = vpop.f32.mrb[123].mxu1  ;;  %7356 = vmatmul.mubr.msk.f32.gmra.mrb[184].mxu0 %vm1196_vm2, %v3121_v52  ;;  %v3123_v4 = vmax.f32 %v7256_v16, 0.0  ;;  %v4426_v52 = vld [vmem:[%s9490_s8 + $0x8] sm:$0xff] }
 0x3ea   : > { %v3122_v10 = vmax.f32 %v3035_v34, 0.0  ;;  %v7719_v16 = vpack.c.bf16 %v4426_v52, %v4425_v58 }
 0x3ec   : > { %v7259_v22 = vpop.f32.mrb[124].mxu1  ;;  %7358 = vmatprep.mubr.msk.f32.mxu0 %vm1196_vm2, %v3122_v10  ;;  %7720 = vmatprep.subr.bf16.mxu0 %v7719_v16 }
 0x3ed   : > { %v3045_v14 = vpop.f32.mrb[125].mxu1  ;;  %7359 = vmatmul.mubr.msk.f32.gmra.mrb[186].mxu0 %vm1196_vm2, %v3123_v4  ;;  %v3125_v46 = vmax.f32 %v7259_v22, 0.0 }
 0x3ee   : > { %v3124_v21 = vmax.f32 %v3045_v14, 0.0  ;;  %7722 = vmatpush3.bf16.msra.mxu0 %v7719_v16  ;;  %v4427_v14 = vld [vmem:[%s9490_s8 + $0x10] sm:$0xff] }
 0x3f0   : > { %v7262_v32 = vpop.f32.mrb[126].mxu1  ;;  %7361 = vmatprep.mubr.msk.f32.mxu0 %vm1196_vm2, %v3124_v21  ;;  %v4428_v21 = vld [vmem:[%s9490_s8 + $0x18] sm:$0xff] }
 0x3f1   : > { %v3055_v40 = vpop.f32.mrb[127].mxu1  ;;  %7362 = vmatmul.mubr.msk.f32.gmra.mrb[188].mxu0 %vm1196_vm2, %v3125_v46  ;;  %v3127_v25 = vmax.f32 %v7262_v32, 0.0 }
 0x3f2   : > { %v3126_v26 = vmax.f32 %v3055_v40, 0.0  ;;  %v7723_v40 = vpack.c.bf16 %v4428_v21, %v4427_v14 }
 0x3f4   : > { %7364 = vmatprep.mubr.msk.f32.mxu0 %vm1196_vm2, %v3126_v26  ;;  %7724 = vmatprep.subr.bf16.mxu0 %v7723_v40 }
 0x3f5   : > { %7365 = vmatmul.mubr.msk.f32.gmra.mrb[190].mxu0 %vm1196_vm2, %v3127_v25 }
 0x3f6   : > { %7726 = vmatpush3.bf16.msra.mxu0 %v7723_v40 }
 0x44c   : > { %v7273_v34 = vpop.f32.mrb[128].mxu0 }
 0x44d   : > { %v3396_v10 = vadd.f32 %v7273_v34, %v8457_v28  ;;  %v3390_v4 = vpop.f32.mrb[129].mxu0 }
 0x44e   : > { %v3391_v22 = vadd.f32 %v3390_v4, %v8461_v11 }
 0x44f   : > { %v3710_v26 = vmax.f32 %v3396_v10, 0.0 }
 0x450   : > { %v3709_v46 = vmax.f32 %v3391_v22, 0.0  ;;  %v7276_v32 = vpop.f32.mrb[130].mxu0 }
 0x451   : > { %v3406_v25 = vadd.f32 %v7276_v32, %v8473_v13  ;;  %v3400_v58 = vpop.f32.mrb[131].mxu0 }
 0x452   : > { %v3401_v28 = vadd.f32 %v3400_v58, %v8477_v44  ;;  %7375 = vmatprep.mubr.msk.f32.mxu1 %vm1196_vm2, %v3709_v46 }
 0x453   : > { %7376 = vmatmul.mubr.msk.f32.vlgmr.msra.gmra.mrb[128].mxu1 %vm1196_vm2, %v3710_v26  ;;  %v3712_v16 = vmax.f32 %v3406_v25, 0.0 }
 0x454   : > { %v3711_v11 = vmax.f32 %v3401_v28, 0.0  ;;  %v7279_v52 = vpop.f32.mrb[132].mxu0 }
 0x455   : > { %v3416_v34 = vadd.f32 %v7279_v52, %v8485_v38  ;;  %v3410_v4 = vpop.f32.mrb[133].mxu0 }
 0x456   : > { %v3411_v22 = vadd.f32 %v3410_v4, %v8489_v56  ;;  %7378 = vmatprep.mubr.msk.f32.mxu1 %vm1196_vm2, %v3711_v11 }
 0x457   : > { %7379 = vmatmul.mubr.msk.f32.gmra.mrb[130].mxu1 %vm1196_vm2, %v3712_v16  ;;  %v3714_v10 = vmax.f32 %v3416_v34, 0.0 }
 0x458   : > { %v3713_v13 = vmax.f32 %v3411_v22, 0.0  ;;  %v7282_v44 = vpop.f32.mrb[134].mxu0 }
 0x459   : > { %v3426_v14 = vadd.f32 %v7282_v44, %v8497_v12  ;;  %v3420_v21 = vpop.f32.mrb[135].mxu0 }
 0x45a   : > { %v3421_v46 = vadd.f32 %v3420_v21, %v8501_v62  ;;  %7381 = vmatprep.mubr.msk.f32.mxu1 %vm1196_vm2, %v3713_v13 }
 0x45b   : > { %7382 = vmatmul.mubr.msk.f32.gmra.mrb[132].mxu1 %vm1196_vm2, %v3714_v10  ;;  %v3716_v40 = vmax.f32 %v3426_v14, 0.0 }
 0x45c   : > { %v3715_v38 = vmax.f32 %v3421_v46, 0.0  ;;  %v7285_v32 = vpop.f32.mrb[136].mxu0 }
 0x45d   : > { %v3436_v56 = vadd.f32 %v7285_v32, %v8509_v61  ;;  %v3430_v26 = vpop.f32.mrb[137].mxu0 }
 0x45e   : > { %v3431_v25 = vadd.f32 %v3430_v26, %v8513_v20  ;;  %7384 = vmatprep.mubr.msk.f32.mxu1 %vm1196_vm2, %v3715_v38 }
 0x45f   : > { %7385 = vmatmul.mubr.msk.f32.gmra.mrb[134].mxu1 %vm1196_vm2, %v3716_v40  ;;  %v3718_v28 = vmax.f32 %v3436_v56, 0.0 }
 0x460   : > { %v3717_v12 = vmax.f32 %v3431_v25, 0.0  ;;  %v7288_v58 = vpop.f32.mrb[138].mxu0 }
 0x461   : > { %v3446_v62 = vadd.f32 %v7288_v58, %v8521_v24  ;;  %v3440_v11 = vpop.f32.mrb[139].mxu0 }
 0x462   : > { %v3441_v52 = vadd.f32 %v3440_v11, %v8525_v23  ;;  %7387 = vmatprep.mubr.msk.f32.mxu1 %vm1196_vm2, %v3717_v12 }
 0x463   : > { %7388 = vmatmul.mubr.msk.f32.gmra.mrb[136].mxu1 %vm1196_vm2, %v3718_v28  ;;  %v3720_v34 = vmax.f32 %v3446_v62, 0.0 }
 0x464   : > { %v3719_v61 = vmax.f32 %v3441_v52, 0.0  ;;  %v7291_v16 = vpop.f32.mrb[140].mxu0 }
 0x465   : > { %v3456_v20 = vadd.f32 %v7291_v16, %v8533_v30  ;;  %v3450_v4 = vpop.f32.mrb[141].mxu0 }
 0x466   : > { %v3451_v22 = vadd.f32 %v3450_v4, %v8537_v50  ;;  %7390 = vmatprep.mubr.msk.f32.mxu1 %vm1196_vm2, %v3719_v61 }
 0x467   : > { %7391 = vmatmul.mubr.msk.f32.gmra.mrb[138].mxu1 %vm1196_vm2, %v3720_v34  ;;  %v3722_v44 = vmax.f32 %v3456_v20, 0.0 }
 0x468   : > { %v3721_v24 = vmax.f32 %v3451_v22, 0.0  ;;  %v7294_v13 = vpop.f32.mrb[142].mxu0 }
 0x469   : > { %v3466_v23 = vadd.f32 %v7294_v13, %v8545_v36  ;;  %v3460_v10 = vpop.f32.mrb[143].mxu0 }
 0x46a   : > { %v3461_v14 = vadd.f32 %v3460_v10, %v8549_v27  ;;  %7393 = vmatprep.mubr.msk.f32.mxu1 %vm1196_vm2, %v3721_v24 }
 0x46b   : > { %7394 = vmatmul.mubr.msk.f32.gmra.mrb[140].mxu1 %vm1196_vm2, %v3722_v44  ;;  %v3724_v46 = vmax.f32 %v3466_v23, 0.0 }
 0x46c   : > { %v3723_v30 = vmax.f32 %v3461_v14, 0.0  ;;  %v7297_v21 = vpop.f32.mrb[144].mxu0 }
 0x46d   : > { %v3476_v50 = vadd.f32 %v7297_v21, %v8557_v42  ;;  %v3470_v38 = vpop.f32.mrb[145].mxu0 }
 0x46e   : > { %v3471_v32 = vadd.f32 %v3470_v38, %v8561_v33  ;;  %7396 = vmatprep.mubr.msk.f32.mxu1 %vm1196_vm2, %v3723_v30 }
 0x46f   : > { %7397 = vmatmul.mubr.msk.f32.gmra.mrb[142].mxu1 %vm1196_vm2, %v3724_v46  ;;  %v3726_v56 = vmax.f32 %v3476_v50, 0.0 }
 0x470   : > { %v3725_v36 = vmax.f32 %v3471_v32, 0.0  ;;  %v7300_v40 = vpop.f32.mrb[146].mxu0 }
 0x471   : > { %v3486_v27 = vadd.f32 %v7300_v40, %v8569_v48  ;;  %v3480_v26 = vpop.f32.mrb[147].mxu0 }
 0x472   : > { %v3481_v25 = vadd.f32 %v3480_v26, %v8573_v39  ;;  %7399 = vmatprep.mubr.msk.f32.mxu1 %vm1196_vm2, %v3725_v36 }
 0x473   : > { %7400 = vmatmul.mubr.msk.f32.gmra.mrb[144].mxu1 %vm1196_vm2, %v3726_v56  ;;  %v3728_v58 = vmax.f32 %v3486_v27, 0.0 }
 0x474   : > { %v3727_v42 = vmax.f32 %v3481_v25, 0.0  ;;  %v7303_v12 = vpop.f32.mrb[148].mxu0 }
 0x475   : > { %v3496_v33 = vadd.f32 %v7303_v12, %v8581_v54  ;;  %v3490_v28 = vpop.f32.mrb[149].mxu0 }
 0x476   : > { %v3491_v62 = vadd.f32 %v3490_v28, %v8585_v45  ;;  %7402 = vmatprep.mubr.msk.f32.mxu1 %vm1196_vm2, %v3727_v42 }
 0x477   : > { %7403 = vmatmul.mubr.msk.f32.gmra.mrb[146].mxu1 %vm1196_vm2, %v3728_v58  ;;  %v3730_v52 = vmax.f32 %v3496_v33, 0.0 }
 0x478   : > { %v3729_v48 = vmax.f32 %v3491_v62, 0.0  ;;  %v7306_v11 = vpop.f32.mrb[150].mxu0 }
 0x479   : > { %v3506_v39 = vadd.f32 %v7306_v11, %v8593_v60  ;;  %v3500_v61 = vpop.f32.mrb[151].mxu0 }
 0x47a   : > { %v3501_v16 = vadd.f32 %v3500_v61, %v8597_v51  ;;  %7405 = vmatprep.mubr.msk.f32.mxu1 %vm1196_vm2, %v3729_v48 }
 0x47b   : > { %7406 = vmatmul.mubr.msk.f32.gmra.mrb[148].mxu1 %vm1196_vm2, %v3730_v52  ;;  %v3732_v20 = vmax.f32 %v3506_v39, 0.0 }
 0x47c   : > { %v3731_v54 = vmax.f32 %v3501_v16, 0.0  ;;  %v7309_v34 = vpop.f32.mrb[152].mxu0 }
 0x47d   : > { %v3516_v45 = vadd.f32 %v7309_v34, %v8605_v2  ;;  %v3510_v4 = vpop.f32.mrb[153].mxu0 }
 0x47e   : > { %v3511_v22 = vadd.f32 %v3510_v4, %v8609_v57  ;;  %7408 = vmatprep.mubr.msk.f32.mxu1 %vm1196_vm2, %v3731_v54 }
 0x47f   : > { %7409 = vmatmul.mubr.msk.f32.gmra.mrb[150].mxu1 %vm1196_vm2, %v3732_v20  ;;  %v3734_v13 = vmax.f32 %v3516_v45, 0.0 }
 0x480   : > { %v3733_v60 = vmax.f32 %v3511_v22, 0.0  ;;  %v7312_v24 = vpop.f32.mrb[154].mxu0 }
 0x481   : > { %v3526_v51 = vadd.f32 %v7312_v24, %v8617_v8  ;;  %v3520_v44 = vpop.f32.mrb[155].mxu0 }
 0x482   : > { %v3521_v23 = vadd.f32 %v3520_v44, %v8621_v63  ;;  %7411 = vmatprep.mubr.msk.f32.mxu1 %vm1196_vm2, %v3733_v60 }
 0x483   : > { %7412 = vmatmul.mubr.msk.f32.gmra.mrb[152].mxu1 %vm1196_vm2, %v3734_v13  ;;  %v3736_v14 = vmax.f32 %v3526_v51, 0.0 }
 0x484   : > { %v3735_v2 = vmax.f32 %v3521_v23, 0.0  ;;  %v7315_v10 = vpop.f32.mrb[156].mxu0 }
 0x485   : > { %v3536_v57 = vadd.f32 %v7315_v10, %v8629_v19  ;;  %v3530_v30 = vpop.f32.mrb[157].mxu0  ;;  %v9693_v10 = vld [vmem:[#allocation16_spill] sm:$0xff] }
 0x486   : > { %v3531_v21 = vadd.f32 %v3530_v30, %v8633_v5  ;;  %7414 = vmatprep.mubr.msk.f32.mxu1 %vm1196_vm2, %v3735_v2 }
 0x487   : > { %7415 = vmatmul.mubr.msk.f32.gmra.mrb[154].mxu1 %vm1196_vm2, %v3736_v14  ;;  %v3738_v50 = vmax.f32 %v3536_v57, 0.0 }
 0x488   : > { %v3737_v8 = vmax.f32 %v3531_v21, 0.0  ;;  %v7318_v46 = vpop.f32.mrb[158].mxu0 }
 0x489   : > { %v3546_v63 = vadd.f32 %v7318_v46, %v8641_v37  ;;  %v3540_v38 = vpop.f32.mrb[159].mxu0  ;;  %v9695_v46 = vld [vmem:[#allocation18_spill] sm:$0xff] }
 0x48a   : > { %v3541_v32 = vadd.f32 %v3540_v38, %v8645_v15  ;;  %7417 = vmatprep.mubr.msk.f32.mxu1 %vm1196_vm2, %v3737_v8 }
 0x48b   : > { %7418 = vmatmul.mubr.msk.f32.gmra.mrb[156].mxu1 %vm1196_vm2, %v3738_v50  ;;  %v3740_v40 = vmax.f32 %v3546_v63, 0.0 }
 0x48c   : > { %v3739_v19 = vmax.f32 %v3541_v32, 0.0  ;;  %v7321_v36 = vpop.f32.mrb[160].mxu0  ;;  %v9696_v32 = vld [vmem:[#allocation2_spill] sm:$0xff] }
 0x48d   : > { %v3556_v5 = vadd.f32 %v7321_v36, %v8653_v55  ;;  %v3550_v56 = vpop.f32.mrb[161].mxu0 }
 0x48e   : > { %v3551_v27 = vadd.f32 %v3550_v56, %v8657_v29  ;;  %7420 = vmatprep.mubr.msk.f32.mxu1 %vm1196_vm2, %v3739_v19 }
 0x48f   : > { %7421 = vmatmul.mubr.msk.f32.gmra.mrb[158].mxu1 %vm1196_vm2, %v3740_v40  ;;  %v3742_v25 = vmax.f32 %v3556_v5, 0.0  ;;  %v9697_v40 = vld [vmem:[#allocation3_spill] sm:$0xff] }
 0x490   : > { %v3741_v37 = vmax.f32 %v3551_v27, 0.0  ;;  %v7324_v26 = vpop.f32.mrb[162].mxu0 }
 0x491   : > { %v3566_v15 = vadd.f32 %v7324_v26, %v8665_v9  ;;  %v3560_v42 = vpop.f32.mrb[163].mxu0  ;;  %v9698_v26 = vld [vmem:[#allocation4_spill] sm:$0xff] }
 0x492   : > { %v3561_v12 = vadd.f32 %v3560_v42, %v8669_v47  ;;  %7423 = vmatprep.mubr.msk.f32.mxu1 %vm1196_vm2, %v3741_v37  ;;  %v9699_v42 = vld [vmem:[#allocation5_spill] sm:$0xff] }
 0x493   : > { %7424 = vmatmul.mubr.msk.f32.gmra.mrb[160].mxu1 %vm1196_vm2, %v3742_v25  ;;  %v3744_v33 = vmax.f32 %v3566_v15, 0.0 }
 0x494   : > { %v3743_v55 = vmax.f32 %v3561_v12, 0.0  ;;  %v7327_v58 = vpop.f32.mrb[164].mxu0 }
 0x495   : > { %v3576_v29 = vadd.f32 %v7327_v58, %v8677_v59  ;;  %v3570_v28 = vpop.f32.mrb[165].mxu0 }
 0x496   : > { %v3571_v62 = vadd.f32 %v3570_v28, %v8681_v1  ;;  %7426 = vmatprep.mubr.msk.f32.mxu1 %vm1196_vm2, %v3743_v55 }
 0x497   : > { %7427 = vmatmul.mubr.msk.f32.gmra.mrb[162].mxu1 %vm1196_vm2, %v3744_v33  ;;  %v3746_v11 = vmax.f32 %v3576_v29, 0.0  ;;  %v9700_v29 = vld [vmem:[#allocation6_spill] sm:$0xff] }
 0x498   : > { %v3745_v9 = vmax.f32 %v3571_v62, 0.0  ;;  %v7330_v48 = vpop.f32.mrb[166].mxu0 }
 0x499   : > { %v3586_v47 = vadd.f32 %v7330_v48, %v8689_v18  ;;  %v3580_v52 = vpop.f32.mrb[167].mxu0 }
 0x49a   : > { %v3581_v39 = vadd.f32 %v3580_v52, %v8693_v35  ;;  %7429 = vmatprep.mubr.msk.f32.mxu1 %vm1196_vm2, %v3745_v9  ;;  %v9701_v9 = vld [vmem:[#allocation7_spill] sm:$0xff] }
 0x49b   : > { %7430 = vmatmul.mubr.msk.f32.gmra.mrb[164].mxu1 %vm1196_vm2, %v3746_v11  ;;  %v3748_v16 = vmax.f32 %v3586_v47, 0.0 }
 0x49c   : > { %v3747_v59 = vmax.f32 %v3581_v39, 0.0  ;;  %v7333_v61 = vpop.f32.mrb[168].mxu0  ;;  %v9702_v39 = vld [vmem:[#allocation8_spill] sm:$0xff] }
 0x49d   : > { %v3596_v1 = vadd.f32 %v7333_v61, %v8701_v53  ;;  %v3590_v54 = vpop.f32.mrb[169].mxu0 }
 0x49e   : > { %v3591_v34 = vadd.f32 %v3590_v54, %v8705_v49  ;;  %7432 = vmatprep.mubr.msk.f32.mxu1 %vm1196_vm2, %v3747_v59 }
 0x49f   : > { %7433 = vmatmul.mubr.msk.f32.gmra.mrb[166].mxu1 %vm1196_vm2, %v3748_v16  ;;  %v3750_v45 = vmax.f32 %v3596_v1, 0.0  ;;  %v9703_v16 = vld [vmem:[#allocation9_spill] sm:$0xff] }
 0x4a0   : > { %v3749_v18 = vmax.f32 %v3591_v34, 0.0  ;;  %v7336_v20 = vpop.f32.mrb[170].mxu0 }
 0x4a1   : > { %v3606_v35 = vadd.f32 %v7336_v20, %v8713_v7  ;;  %v3600_v4 = vpop.f32.mrb[171].mxu0  ;;  %v9704_v20 = vld [vmem:[#allocation10_spill] sm:$0xff] }
 0x4a2   : > { %v3601_v22 = vadd.f32 %v3600_v4, %v8717_v31  ;;  %7435 = vmatprep.mubr.msk.f32.mxu1 %vm1196_vm2, %v3749_v18  ;;  %v9705_v4 = vld [vmem:[#allocation11_spill] sm:$0xff] }
 0x4a3   : > { %7436 = vmatmul.mubr.msk.f32.gmra.mrb[168].mxu1 %vm1196_vm2, %v3750_v45  ;;  %v3752_v24 = vmax.f32 %v3606_v35, 0.0 }
 0x4a4   : > { %v3751_v53 = vmax.f32 %v3601_v22, 0.0  ;;  %v7339_v60 = vpop.f32.mrb[172].mxu0 }
 0x4a5   : > { %v3616_v49 = vadd.f32 %v7339_v60, %v8725_v3  ;;  %v3610_v13 = vpop.f32.mrb[173].mxu0 }
 0x4a6   : > { %v3611_v51 = vadd.f32 %v3610_v13, %v8729_v17  ;;  %7438 = vmatprep.mubr.msk.f32.mxu1 %vm1196_vm2, %v3751_v53  ;;  %v9694_v17 = vld [vmem:[#allocation17_spill] sm:$0xff] }
 0x4a7   : > { %7439 = vmatmul.mubr.msk.f32.gmra.mrb[170].mxu1 %vm1196_vm2, %v3752_v24  ;;  %v3754_v23 = vmax.f32 %v3616_v49, 0.0 }
 0x4a8   : > { %v3753_v7 = vmax.f32 %v3611_v51, 0.0  ;;  %v7342_v44 = vpop.f32.mrb[174].mxu0 }
 0x4a9   : > { %v3626_v31 = vadd.f32 %v7342_v44, %v8737_v41  ;;  %v3620_v2 = vpop.f32.mrb[175].mxu0 }
 0x4aa   : > { %v3621_v14 = vadd.f32 %v3620_v2, %v9693_v10  ;;  %7441 = vmatprep.mubr.msk.f32.mxu1 %vm1196_vm2, %v3753_v7  ;;  %v9706_v10 = vld [vmem:[#allocation12_spill] sm:$0xff] }
 0x4ab   : > { %7442 = vmatmul.mubr.msk.f32.gmra.mrb[172].mxu1 %vm1196_vm2, %v3754_v23  ;;  %v3756_v30 = vmax.f32 %v3626_v31, 0.0 }
 0x4ac   : > { %v3755_v3 = vmax.f32 %v3621_v14, 0.0  ;;  %v7345_v57 = vpop.f32.mrb[176].mxu0 }
 0x4ad   : > { %v3636_v21 = vadd.f32 %v7345_v57, %v9694_v17  ;;  %v3630_v8 = vpop.f32.mrb[177].mxu0 }
 0x4ae   : > { %v3631_v50 = vadd.f32 %v3630_v8, %v9695_v46  ;;  %7444 = vmatprep.mubr.msk.f32.mxu1 %vm1196_vm2, %v3755_v3 }
 0x4af   : > { %7445 = vmatmul.mubr.msk.f32.gmra.mrb[174].mxu1 %vm1196_vm2, %v3756_v30  ;;  %v3758_v38 = vmax.f32 %v3636_v21, 0.0  ;;  %v9070_v30 = vld [vmem:[%s9489_s7] ss:$0 sm:$0xff] }
 0x4b0   : > { %v3757_v41 = vmax.f32 %v3631_v50, 0.0  ;;  %v7348_v63 = vpop.f32.mrb[178].mxu0  ;;  %v5079_v50 = vld [vmem:[%s9492_s10 + $0x10] sm:$0xff] }
 0x4b1   : > { %v3646_v19 = vadd.f32 %v7348_v63, %v9696_v32  ;;  %v3640_v36 = vpop.f32.mrb[179].mxu0 }
 0x4b2   : > { %v3641_v5 = vadd.f32 %v3640_v36, %v9697_v40  ;;  %7447 = vmatprep.mubr.msk.f32.mxu1 %vm1196_vm2, %v3757_v41  ;;  %v5080_v41 = vld [vmem:[%s9492_s10 + $0x18] sm:$0xff] }
 0x4b3   : > { %7448 = vmatmul.mubr.msk.f32.gmra.mrb[176].mxu1 %vm1196_vm2, %v3758_v38  ;;  %v3760_v37 = vmax.f32 %v3646_v19, 0.0  ;;  %v7731_v32 = vpack.c.bf16 %v5080_v41, %v5079_v50 }
 0x4b4   : > { %v3759_v56 = vmax.f32 %v3641_v5, 0.0  ;;  %v7351_v27 = vpop.f32.mrb[180].mxu0 }
 0x4b5   : > { %v3656_v25 = vadd.f32 %v7351_v27, %v9698_v26  ;;  %v3650_v15 = vpop.f32.mrb[181].mxu0 }
 0x4b6   : > { %v3651_v12 = vadd.f32 %v3650_v15, %v9699_v42  ;;  %7450 = vmatprep.mubr.msk.f32.mxu1 %vm1196_vm2, %v3759_v56 }
 0x4b7   : > { %7451 = vmatmul.mubr.msk.f32.gmra.mrb[178].mxu1 %vm1196_vm2, %v3760_v37  ;;  %v3762_v33 = vmax.f32 %v3656_v25, 0.0 }
 0x4b8   : > { %v3761_v55 = vmax.f32 %v3651_v12, 0.0  ;;  %v7354_v58 = vpop.f32.mrb[182].mxu0 }
 0x4b9   : > { %v3666_v28 = vadd.f32 %v7354_v58, %v9700_v29  ;;  %v3660_v62 = vpop.f32.mrb[183].mxu0 }
 0x4ba   : > { %v3661_v48 = vadd.f32 %v3660_v62, %v9701_v9  ;;  %7453 = vmatprep.mubr.msk.f32.mxu1 %vm1196_vm2, %v3761_v55 }
 0x4bb   : > { %7454 = vmatmul.mubr.msk.f32.gmra.mrb[180].mxu1 %vm1196_vm2, %v3762_v33  ;;  %v3764_v52 = vmax.f32 %v3666_v28, 0.0 }
 0x4bc   : > { %v3763_v11 = vmax.f32 %v3661_v48, 0.0  ;;  %v7357_v47 = vpop.f32.mrb[184].mxu0 }
 0x4bd   : > { %v3676_v59 = vadd.f32 %v7357_v47, %v9702_v39  ;;  %v3670_v61 = vpop.f32.mrb[185].mxu0 }
 0x4be   : > { %v3671_v1 = vadd.f32 %v3670_v61, %v9703_v16  ;;  %7456 = vmatprep.mubr.msk.f32.mxu1 %vm1196_vm2, %v3763_v11 }
 0x4bf   : > { %7457 = vmatmul.mubr.msk.f32.gmra.mrb[182].mxu1 %vm1196_vm2, %v3764_v52  ;;  %v3766_v18 = vmax.f32 %v3676_v59, 0.0 }
 0x4c0   : > { %v3765_v54 = vmax.f32 %v3671_v1, 0.0  ;;  %v7360_v34 = vpop.f32.mrb[186].mxu0 }
 0x4c1   : > { %v3686_v45 = vadd.f32 %v7360_v34, %v9704_v20  ;;  %v3680_v35 = vpop.f32.mrb[187].mxu0 }
 0x4c2   : > { %v3681_v22 = vadd.f32 %v3680_v35, %v9705_v4  ;;  %7459 = vmatprep.mubr.msk.f32.mxu1 %vm1196_vm2, %v3765_v54 }
 0x4c3   : > { %7460 = vmatmul.mubr.msk.f32.gmra.mrb[184].mxu1 %vm1196_vm2, %v3766_v18  ;;  %v3768_v24 = vmax.f32 %v3686_v45, 0.0 }
 0x4c4   : > { %v3767_v53 = vmax.f32 %v3681_v22, 0.0  ;;  %v7363_v60 = vpop.f32.mrb[188].mxu0 }
 0x4c5   : > { %v3696_v49 = vadd.f32 %v7363_v60, %v8821_v0  ;;  %v3690_v13 = vpop.f32.mrb[189].mxu0 }
 0x4c6   : > { %v3691_v51 = vadd.f32 %v3690_v13, %v8825_v43  ;;  %7462 = vmatprep.mubr.msk.f32.mxu1 %vm1196_vm2, %v3767_v53  ;;  %v5077_v43 = vld [vmem:[%s9492_s10] sm:$0xff] }
 0x4c7   : > { %7463 = vmatmul.mubr.msk.f32.gmra.mrb[186].mxu1 %vm1196_vm2, %v3768_v24  ;;  %v3770_v23 = vmax.f32 %v3696_v49, 0.0 }
 0x4c8   : > { %v3769_v7 = vmax.f32 %v3691_v51, 0.0  ;;  %v7366_v44 = vpop.f32.mrb[190].mxu0 }
 0x4c9   : > { %v3706_v31 = vadd.f32 %v7366_v44, %v8833_v6  ;;  %v3700_v2 = vpop.f32.mrb[191].mxu0  ;;  %v5078_v6 = vld [vmem:[%s9492_s10 + $0x8] sm:$0xff] }
 0x4ca   : > { %v3701_v14 = vadd.f32 %v3700_v2, %v9706_v10  ;;  %7465 = vmatprep.mubr.msk.f32.mxu1 %vm1196_vm2, %v3769_v7  ;;  %v7727_v57 = vpack.c.bf16 %v5078_v6, %v5077_v43 }
 0x4cb   : > { %7466 = vmatmul.mubr.msk.f32.gmra.mrb[188].mxu1 %vm1196_vm2, %v3770_v23  ;;  %v3772_v3 = vmax.f32 %v3706_v31, 0.0 }
 0x4cc   : > { %v3771_v0 = vmax.f32 %v3701_v14, 0.0  ;;  %7728 = vmatprep.subr.bf16.mxu1 %v7727_v57 }
 0x4cd   : > { %7730 = vmatpush3.bf16.msra.mxu1 %v7727_v57 }
 0x4ce   : > { %7468 = vmatprep.mubr.msk.f32.mxu1 %vm1196_vm2, %v3771_v0  ;;  %7732 = vmatprep.subr.bf16.mxu1 %v7731_v32 }
 0x4cf   : > { %7469 = vmatmul.mubr.msk.f32.gmra.mrb[190].mxu1 %vm1196_vm2, %v3772_v3 }
 0x4d1   : > { %7734 = vmatpush3.bf16.msra.mxu1 %v7731_v32 }
 0x526   : > { %v7377_v17 = vpop.f32.mrb[128].mxu1 }
 0x527   : > { %v4048_v21 = vadd.f32 %v7377_v17, %v9070_v30  ;;  %v4042_v8 = vpop.f32.mrb[129].mxu1 }
 0x528   : > { %v4043_v46 = vadd.f32 %v9070_v30, %v4042_v8 }
 0x529   : > { %v4362_v19 = vmax.f32 %v4048_v21, 0.0 }
 0x52a   : > { %v4361_v63 = vmax.f32 %v4043_v46, 0.0  ;;  %v7380_v38 = vpop.f32.mrb[130].mxu1 }
 0x52b   : > { %v4058_v36 = vadd.f32 %v7380_v38, %v9070_v30  ;;  %v4052_v40 = vpop.f32.mrb[131].mxu1 }
 0x52c   : > { %v4053_v5 = vadd.f32 %v9070_v30, %v4052_v40  ;;  %7479 = vmatprep.mubr.msk.f32.mxu0 %vm1196_vm2, %v4361_v63 }
 0x52d   : > { %7480 = vmatmul.mubr.msk.f32.vlgmr.msra.gmra.mrb[192].mxu0 %vm1196_vm2, %v4362_v19  ;;  %v4364_v37 = vmax.f32 %v4058_v36, 0.0 }
 0x52e   : > { %v4363_v56 = vmax.f32 %v4053_v5, 0.0  ;;  %v7383_v27 = vpop.f32.mrb[132].mxu1 }
 0x52f   : > { %v4068_v26 = vadd.f32 %v7383_v27, %v9070_v30  ;;  %v4062_v25 = vpop.f32.mrb[133].mxu1 }
 0x530   : > { %v4063_v15 = vadd.f32 %v9070_v30, %v4062_v25  ;;  %7482 = vmatprep.mubr.msk.f32.mxu0 %vm1196_vm2, %v4363_v56 }
 0x531   : > { %7483 = vmatmul.mubr.msk.f32.gmra.mrb[194].mxu0 %vm1196_vm2, %v4364_v37  ;;  %v4366_v55 = vmax.f32 %v4068_v26, 0.0 }
 0x532   : > { %v4365_v42 = vmax.f32 %v4063_v15, 0.0  ;;  %v7386_v12 = vpop.f32.mrb[134].mxu1 }
 0x533   : > { %v4078_v58 = vadd.f32 %v7386_v12, %v9070_v30  ;;  %v4072_v33 = vpop.f32.mrb[135].mxu1 }
 0x534   : > { %v4073_v29 = vadd.f32 %v9070_v30, %v4072_v33  ;;  %7485 = vmatprep.mubr.msk.f32.mxu0 %vm1196_vm2, %v4365_v42 }
 0x535   : > { %7486 = vmatmul.mubr.msk.f32.gmra.mrb[196].mxu0 %vm1196_vm2, %v4366_v55  ;;  %v4368_v9 = vmax.f32 %v4078_v58, 0.0 }
 0x536   : > { %v4367_v28 = vmax.f32 %v4073_v29, 0.0  ;;  %v7389_v62 = vpop.f32.mrb[136].mxu1 }
 0x537   : > { %v4088_v48 = vadd.f32 %v7389_v62, %v9070_v30  ;;  %v4082_v11 = vpop.f32.mrb[137].mxu1 }
 0x538   : > { %v4083_v47 = vadd.f32 %v9070_v30, %v4082_v11  ;;  %7488 = vmatprep.mubr.msk.f32.mxu0 %vm1196_vm2, %v4367_v28 }
 0x539   : > { %7489 = vmatmul.mubr.msk.f32.gmra.mrb[198].mxu0 %vm1196_vm2, %v4368_v9  ;;  %v4370_v59 = vmax.f32 %v4088_v48, 0.0 }
 0x53a   : > { %v4369_v52 = vmax.f32 %v4083_v47, 0.0  ;;  %v7392_v39 = vpop.f32.mrb[138].mxu1 }
 0x53b   : > { %v4098_v61 = vadd.f32 %v7392_v39, %v9070_v30  ;;  %v4092_v16 = vpop.f32.mrb[139].mxu1 }
 0x53c   : > { %v4093_v1 = vadd.f32 %v9070_v30, %v4092_v16  ;;  %7491 = vmatprep.mubr.msk.f32.mxu0 %vm1196_vm2, %v4369_v52 }
 0x53d   : > { %7492 = vmatmul.mubr.msk.f32.gmra.mrb[200].mxu0 %vm1196_vm2, %v4370_v59  ;;  %v4372_v18 = vmax.f32 %v4098_v61, 0.0 }
 0x53e   : > { %v4371_v54 = vmax.f32 %v4093_v1, 0.0  ;;  %v7395_v34 = vpop.f32.mrb[140].mxu1 }
 0x53f   : > { %v4108_v20 = vadd.f32 %v7395_v34, %v9070_v30  ;;  %v4102_v45 = vpop.f32.mrb[141].mxu1 }
 0x540   : > { %v4103_v35 = vadd.f32 %v9070_v30, %v4102_v45  ;;  %7494 = vmatprep.mubr.msk.f32.mxu0 %vm1196_vm2, %v4371_v54 }
 0x541   : > { %7495 = vmatmul.mubr.msk.f32.gmra.mrb[202].mxu0 %vm1196_vm2, %v4372_v18  ;;  %v4374_v53 = vmax.f32 %v4108_v20, 0.0 }
 0x542   : > { %v4373_v4 = vmax.f32 %v4103_v35, 0.0  ;;  %v7398_v22 = vpop.f32.mrb[142].mxu1 }
 0x543   : > { %v4118_v60 = vadd.f32 %v7398_v22, %v9070_v30  ;;  %v4112_v24 = vpop.f32.mrb[143].mxu1 }
 0x544   : > { %v4113_v49 = vadd.f32 %v9070_v30, %v4112_v24  ;;  %7497 = vmatprep.mubr.msk.f32.mxu0 %vm1196_vm2, %v4373_v4 }
 0x545   : > { %7498 = vmatmul.mubr.msk.f32.gmra.mrb[204].mxu0 %vm1196_vm2, %v4374_v53  ;;  %v4376_v7 = vmax.f32 %v4118_v60, 0.0 }
 0x546   : > { %v4375_v13 = vmax.f32 %v4113_v49, 0.0  ;;  %v7401_v51 = vpop.f32.mrb[144].mxu1 }
 0x547   : > { %v4128_v44 = vadd.f32 %v7401_v51, %v9070_v30  ;;  %v4122_v23 = vpop.f32.mrb[145].mxu1 }
 0x548   : > { %v4123_v31 = vadd.f32 %v9070_v30, %v4122_v23  ;;  %7500 = vmatprep.mubr.msk.f32.mxu0 %vm1196_vm2, %v4375_v13 }
 0x549   : > { %7501 = vmatmul.mubr.msk.f32.gmra.mrb[206].mxu0 %vm1196_vm2, %v4376_v7  ;;  %v4378_v14 = vmax.f32 %v4128_v44, 0.0 }
 0x54a   : > { %v4377_v2 = vmax.f32 %v4123_v31, 0.0  ;;  %v7404_v10 = vpop.f32.mrb[146].mxu1 }
 0x54b   : > { %v4138_v0 = vadd.f32 %v7404_v10, %v9070_v30  ;;  %v4132_v3 = vpop.f32.mrb[147].mxu1 }
 0x54c   : > { %v4133_v43 = vadd.f32 %v9070_v30, %v4132_v3  ;;  %7503 = vmatprep.mubr.msk.f32.mxu0 %vm1196_vm2, %v4377_v2 }
 0x54d   : > { %7504 = vmatmul.mubr.msk.f32.gmra.mrb[208].mxu0 %vm1196_vm2, %v4378_v14  ;;  %v4380_v17 = vmax.f32 %v4138_v0, 0.0 }
 0x54e   : > { %v4379_v6 = vmax.f32 %v4133_v43, 0.0  ;;  %v7407_v57 = vpop.f32.mrb[148].mxu1 }
 0x54f   : > { %v4148_v21 = vadd.f32 %v7407_v57, %v9070_v30  ;;  %v4142_v8 = vpop.f32.mrb[149].mxu1 }
 0x550   : > { %v4143_v46 = vadd.f32 %v9070_v30, %v4142_v8  ;;  %7506 = vmatprep.mubr.msk.f32.mxu0 %vm1196_vm2, %v4379_v6 }
 0x551   : > { %7507 = vmatmul.mubr.msk.f32.gmra.mrb[210].mxu0 %vm1196_vm2, %v4380_v17  ;;  %v4382_v63 = vmax.f32 %v4148_v21, 0.0 }
 0x552   : > { %v4381_v50 = vmax.f32 %v4143_v46, 0.0  ;;  %v7410_v41 = vpop.f32.mrb[150].mxu1 }
 0x553   : > { %v4158_v38 = vadd.f32 %v7410_v41, %v9070_v30  ;;  %v4152_v32 = vpop.f32.mrb[151].mxu1 }
 0x554   : > { %v4153_v19 = vadd.f32 %v9070_v30, %v4152_v32  ;;  %7509 = vmatprep.mubr.msk.f32.mxu0 %vm1196_vm2, %v4381_v50 }
 0x555   : > { %7510 = vmatmul.mubr.msk.f32.gmra.mrb[212].mxu0 %vm1196_vm2, %v4382_v63  ;;  %v4384_v5 = vmax.f32 %v4158_v38, 0.0 }
 0x556   : > { %v4383_v36 = vmax.f32 %v4153_v19, 0.0  ;;  %v7413_v40 = vpop.f32.mrb[152].mxu1 }
 0x557   : > { %v4168_v56 = vadd.f32 %v7413_v40, %v9070_v30  ;;  %v4162_v27 = vpop.f32.mrb[153].mxu1 }
 0x558   : > { %v4163_v37 = vadd.f32 %v9070_v30, %v4162_v27  ;;  %7512 = vmatprep.mubr.msk.f32.mxu0 %vm1196_vm2, %v4383_v36 }
 0x559   : > { %7513 = vmatmul.mubr.msk.f32.gmra.mrb[214].mxu0 %vm1196_vm2, %v4384_v5  ;;  %v4386_v15 = vmax.f32 %v4168_v56, 0.0 }
 0x55a   : > { %v4385_v26 = vmax.f32 %v4163_v37, 0.0  ;;  %v7416_v25 = vpop.f32.mrb[154].mxu1 }
 0x55b   : > { %v4178_v42 = vadd.f32 %v7416_v25, %v9070_v30  ;;  %v4172_v12 = vpop.f32.mrb[155].mxu1 }
 0x55c   : > { %v4173_v55 = vadd.f32 %v9070_v30, %v4172_v12  ;;  %7515 = vmatprep.mubr.msk.f32.mxu0 %vm1196_vm2, %v4385_v26 }
 0x55d   : > { %7516 = vmatmul.mubr.msk.f32.gmra.mrb[216].mxu0 %vm1196_vm2, %v4386_v15  ;;  %v4388_v29 = vmax.f32 %v4178_v42, 0.0 }
 0x55e   : > { %v4387_v58 = vmax.f32 %v4173_v55, 0.0  ;;  %v7419_v33 = vpop.f32.mrb[156].mxu1 }
 0x55f   : > { %v4188_v28 = vadd.f32 %v7419_v33, %v9070_v30  ;;  %v4182_v62 = vpop.f32.mrb[157].mxu1 }
 0x560   : > { %v4183_v9 = vadd.f32 %v9070_v30, %v4182_v62  ;;  %7518 = vmatprep.mubr.msk.f32.mxu0 %vm1196_vm2, %v4387_v58 }
 0x561   : > { %7519 = vmatmul.mubr.msk.f32.gmra.mrb[218].mxu0 %vm1196_vm2, %v4388_v29  ;;  %v4390_v47 = vmax.f32 %v4188_v28, 0.0 }
 0x562   : > { %v4389_v48 = vmax.f32 %v4183_v9, 0.0  ;;  %v7422_v11 = vpop.f32.mrb[158].mxu1 }
 0x563   : > { %v4198_v52 = vadd.f32 %v7422_v11, %v9070_v30  ;;  %v4192_v39 = vpop.f32.mrb[159].mxu1 }
 0x564   : > { %v4193_v59 = vadd.f32 %v9070_v30, %v4192_v39  ;;  %7521 = vmatprep.mubr.msk.f32.mxu0 %vm1196_vm2, %v4389_v48 }
 0x565   : > { %7522 = vmatmul.mubr.msk.f32.gmra.mrb[220].mxu0 %vm1196_vm2, %v4390_v47  ;;  %v4392_v1 = vmax.f32 %v4198_v52, 0.0 }
 0x566   : > { %v4391_v61 = vmax.f32 %v4193_v59, 0.0  ;;  %v7425_v16 = vpop.f32.mrb[160].mxu1 }
 0x567   : > { %v4208_v54 = vadd.f32 %v7425_v16, %v9070_v30  ;;  %v4202_v34 = vpop.f32.mrb[161].mxu1 }
 0x568   : > { %v4203_v18 = vadd.f32 %v9070_v30, %v4202_v34  ;;  %7524 = vmatprep.mubr.msk.f32.mxu0 %vm1196_vm2, %v4391_v61 }
 0x569   : > { %7525 = vmatmul.mubr.msk.f32.gmra.mrb[222].mxu0 %vm1196_vm2, %v4392_v1  ;;  %v4394_v35 = vmax.f32 %v4208_v54, 0.0 }
 0x56a   : > { %v4393_v20 = vmax.f32 %v4203_v18, 0.0  ;;  %v7428_v45 = vpop.f32.mrb[162].mxu1 }
 0x56b   : > { %v4218_v4 = vadd.f32 %v7428_v45, %v9070_v30  ;;  %v4212_v22 = vpop.f32.mrb[163].mxu1 }
 0x56c   : > { %v4213_v53 = vadd.f32 %v9070_v30, %v4212_v22  ;;  %7527 = vmatprep.mubr.msk.f32.mxu0 %vm1196_vm2, %v4393_v20 }
 0x56d   : > { %7528 = vmatmul.mubr.msk.f32.gmra.mrb[224].mxu0 %vm1196_vm2, %v4394_v35  ;;  %v4396_v49 = vmax.f32 %v4218_v4, 0.0 }
 0x56e   : > { %v4395_v60 = vmax.f32 %v4213_v53, 0.0  ;;  %v7431_v24 = vpop.f32.mrb[164].mxu1 }
 0x56f   : > { %v4228_v13 = vadd.f32 %v7431_v24, %v9070_v30  ;;  %v4222_v51 = vpop.f32.mrb[165].mxu1 }
 0x570   : > { %v4223_v7 = vadd.f32 %v9070_v30, %v4222_v51  ;;  %7530 = vmatprep.mubr.msk.f32.mxu0 %vm1196_vm2, %v4395_v60 }
 0x571   : > { %7531 = vmatmul.mubr.msk.f32.gmra.mrb[226].mxu0 %vm1196_vm2, %v4396_v49  ;;  %v4398_v31 = vmax.f32 %v4228_v13, 0.0 }
 0x572   : > { %v4397_v44 = vmax.f32 %v4223_v7, 0.0  ;;  %v7434_v23 = vpop.f32.mrb[166].mxu1 }
 0x573   : > { %v4238_v2 = vadd.f32 %v7434_v23, %v9070_v30  ;;  %v4232_v10 = vpop.f32.mrb[167].mxu1 }
 0x574   : > { %v4233_v14 = vadd.f32 %v9070_v30, %v4232_v10  ;;  %7533 = vmatprep.mubr.msk.f32.mxu0 %vm1196_vm2, %v4397_v44 }
 0x575   : > { %7534 = vmatmul.mubr.msk.f32.gmra.mrb[228].mxu0 %vm1196_vm2, %v4398_v31  ;;  %v4400_v43 = vmax.f32 %v4238_v2, 0.0 }
 0x576   : > { %v4399_v0 = vmax.f32 %v4233_v14, 0.0  ;;  %v7437_v3 = vpop.f32.mrb[168].mxu1 }
 0x577   : > { %v4248_v6 = vadd.f32 %v7437_v3, %v9070_v30  ;;  %v4242_v57 = vpop.f32.mrb[169].mxu1 }
 0x578   : > { %v4243_v17 = vadd.f32 %v9070_v30, %v4242_v57  ;;  %7536 = vmatprep.mubr.msk.f32.mxu0 %vm1196_vm2, %v4399_v0 }
 0x579   : > { %7537 = vmatmul.mubr.msk.f32.gmra.mrb[230].mxu0 %vm1196_vm2, %v4400_v43  ;;  %v4402_v46 = vmax.f32 %v4248_v6, 0.0 }
 0x57a   : > { %v4401_v21 = vmax.f32 %v4243_v17, 0.0  ;;  %v7440_v8 = vpop.f32.mrb[170].mxu1 }
 0x57b   : > { %v4258_v50 = vadd.f32 %v7440_v8, %v9070_v30  ;;  %v4252_v41 = vpop.f32.mrb[171].mxu1 }
 0x57c   : > { %v4253_v63 = vadd.f32 %v9070_v30, %v4252_v41  ;;  %7539 = vmatprep.mubr.msk.f32.mxu0 %vm1196_vm2, %v4401_v21 }
 0x57d   : > { %7540 = vmatmul.mubr.msk.f32.gmra.mrb[232].mxu0 %vm1196_vm2, %v4402_v46  ;;  %v4404_v19 = vmax.f32 %v4258_v50, 0.0 }
 0x57e   : > { %v4403_v38 = vmax.f32 %v4253_v63, 0.0  ;;  %v7443_v32 = vpop.f32.mrb[172].mxu1  ;;  %v9209_v63 = vld [vmem:[%s9491_s9] ss:$0 sm:$0xff] }
 0x57f   : > { %v4268_v36 = vadd.f32 %v7443_v32, %v9070_v30  ;;  %v4262_v40 = vpop.f32.mrb[173].mxu1 }
 0x580   : > { %v4263_v5 = vadd.f32 %v9070_v30, %v4262_v40  ;;  %7542 = vmatprep.mubr.msk.f32.mxu0 %vm1196_vm2, %v4403_v38 }
 0x581   : > { %7543 = vmatmul.mubr.msk.f32.gmra.mrb[234].mxu0 %vm1196_vm2, %v4404_v19  ;;  %v4406_v37 = vmax.f32 %v4268_v36, 0.0 }
 0x582   : > { %v4405_v56 = vmax.f32 %v4263_v5, 0.0  ;;  %v7446_v27 = vpop.f32.mrb[174].mxu1 }
 0x583   : > { %v4278_v26 = vadd.f32 %v7446_v27, %v9070_v30  ;;  %v4272_v25 = vpop.f32.mrb[175].mxu1 }
 0x584   : > { %v4273_v15 = vadd.f32 %v9070_v30, %v4272_v25  ;;  %7545 = vmatprep.mubr.msk.f32.mxu0 %vm1196_vm2, %v4405_v56 }
 0x585   : > { %7546 = vmatmul.mubr.msk.f32.gmra.mrb[236].mxu0 %vm1196_vm2, %v4406_v37  ;;  %v4408_v55 = vmax.f32 %v4278_v26, 0.0 }
 0x586   : > { %v4407_v42 = vmax.f32 %v4273_v15, 0.0  ;;  %v7449_v12 = vpop.f32.mrb[176].mxu1 }
 0x587   : > { %v4288_v58 = vadd.f32 %v7449_v12, %v9070_v30  ;;  %v4282_v33 = vpop.f32.mrb[177].mxu1 }
 0x588   : > { %v4283_v29 = vadd.f32 %v9070_v30, %v4282_v33  ;;  %7548 = vmatprep.mubr.msk.f32.mxu0 %vm1196_vm2, %v4407_v42 }
 0x589   : > { %7549 = vmatmul.mubr.msk.f32.gmra.mrb[238].mxu0 %vm1196_vm2, %v4408_v55  ;;  %v4410_v9 = vmax.f32 %v4288_v58, 0.0 }
 0x58a   : > { %v4409_v28 = vmax.f32 %v4283_v29, 0.0  ;;  %v7452_v62 = vpop.f32.mrb[178].mxu1 }
 0x58b   : > { %v4298_v48 = vadd.f32 %v7452_v62, %v9070_v30  ;;  %v4292_v11 = vpop.f32.mrb[179].mxu1 }
 0x58c   : > { %v4293_v47 = vadd.f32 %v9070_v30, %v4292_v11  ;;  %7551 = vmatprep.mubr.msk.f32.mxu0 %vm1196_vm2, %v4409_v28 }
 0x58d   : > { %7552 = vmatmul.mubr.msk.f32.gmra.mrb[240].mxu0 %vm1196_vm2, %v4410_v9  ;;  %v4412_v59 = vmax.f32 %v4298_v48, 0.0 }
 0x58e   : > { %v4411_v52 = vmax.f32 %v4293_v47, 0.0  ;;  %v7455_v39 = vpop.f32.mrb[180].mxu1 }
 0x58f   : > { %v4308_v61 = vadd.f32 %v7455_v39, %v9070_v30  ;;  %v4302_v16 = vpop.f32.mrb[181].mxu1 }
 0x590   : > { %v4303_v1 = vadd.f32 %v9070_v30, %v4302_v16  ;;  %7554 = vmatprep.mubr.msk.f32.mxu0 %vm1196_vm2, %v4411_v52 }
 0x591   : > { %7555 = vmatmul.mubr.msk.f32.gmra.mrb[242].mxu0 %vm1196_vm2, %v4412_v59  ;;  %v4414_v18 = vmax.f32 %v4308_v61, 0.0 }
 0x592   : > { %v4413_v54 = vmax.f32 %v4303_v1, 0.0  ;;  %v7458_v34 = vpop.f32.mrb[182].mxu1 }
 0x593   : > { %v4318_v20 = vadd.f32 %v7458_v34, %v9070_v30  ;;  %v4312_v45 = vpop.f32.mrb[183].mxu1 }
 0x594   : > { %v4313_v35 = vadd.f32 %v9070_v30, %v4312_v45  ;;  %7557 = vmatprep.mubr.msk.f32.mxu0 %vm1196_vm2, %v4413_v54 }
 0x595   : > { %7558 = vmatmul.mubr.msk.f32.gmra.mrb[244].mxu0 %vm1196_vm2, %v4414_v18  ;;  %v4416_v53 = vmax.f32 %v4318_v20, 0.0 }
 0x596   : > { %v4415_v4 = vmax.f32 %v4313_v35, 0.0  ;;  %v7461_v22 = vpop.f32.mrb[184].mxu1 }
 0x597   : > { %v4328_v60 = vadd.f32 %v7461_v22, %v9070_v30  ;;  %v4322_v24 = vpop.f32.mrb[185].mxu1 }
 0x598   : > { %v4323_v49 = vadd.f32 %v9070_v30, %v4322_v24  ;;  %7560 = vmatprep.mubr.msk.f32.mxu0 %vm1196_vm2, %v4415_v4 }
 0x599   : > { %7561 = vmatmul.mubr.msk.f32.gmra.mrb[246].mxu0 %vm1196_vm2, %v4416_v53  ;;  %v4418_v7 = vmax.f32 %v4328_v60, 0.0 }
 0x59a   : > { %v4417_v13 = vmax.f32 %v4323_v49, 0.0  ;;  %v7464_v51 = vpop.f32.mrb[186].mxu1 }
 0x59b   : > { %v4338_v44 = vadd.f32 %v7464_v51, %v9070_v30  ;;  %v4332_v23 = vpop.f32.mrb[187].mxu1 }
 0x59c   : > { %v4333_v31 = vadd.f32 %v9070_v30, %v4332_v23  ;;  %7563 = vmatprep.mubr.msk.f32.mxu0 %vm1196_vm2, %v4417_v13 }
 0x59d   : > { %7564 = vmatmul.mubr.msk.f32.gmra.mrb[248].mxu0 %vm1196_vm2, %v4418_v7  ;;  %v4420_v14 = vmax.f32 %v4338_v44, 0.0 }
 0x59e   : > { %v4419_v2 = vmax.f32 %v4333_v31, 0.0  ;;  %v7467_v10 = vpop.f32.mrb[188].mxu1 }
 0x59f   : > { %v4348_v0 = vadd.f32 %v7467_v10, %v9070_v30  ;;  %v4342_v3 = vpop.f32.mrb[189].mxu1 }
 0x5a0   : > { %v4343_v43 = vadd.f32 %v9070_v30, %v4342_v3  ;;  %7566 = vmatprep.mubr.msk.f32.mxu0 %vm1196_vm2, %v4419_v2 }
 0x5a1   : > { %7567 = vmatmul.mubr.msk.f32.gmra.mrb[250].mxu0 %vm1196_vm2, %v4420_v14  ;;  %v4422_v17 = vmax.f32 %v4348_v0, 0.0 }
 0x5a2   : > { %v4421_v6 = vmax.f32 %v4343_v43, 0.0  ;;  %v7470_v57 = vpop.f32.mrb[190].mxu1 }
 0x5a3   : > { %v4358_v21 = vadd.f32 %v7470_v57, %v9070_v30  ;;  %v4352_v8 = vpop.f32.mrb[191].mxu1 }
 0x5a4   : > { %v4353_v46 = vadd.f32 %v9070_v30, %v4352_v8  ;;  %7569 = vmatprep.mubr.msk.f32.mxu0 %vm1196_vm2, %v4421_v6 }
 0x5a5   : > { %7570 = vmatmul.mubr.msk.f32.gmra.mrb[252].mxu0 %vm1196_vm2, %v4422_v17  ;;  %v4424_v41 = vmax.f32 %v4358_v21, 0.0 }
 0x5a6   : > { %v4423_v50 = vmax.f32 %v4353_v46, 0.0 }
 0x5a8   : > { %7572 = vmatprep.mubr.msk.f32.mxu0 %vm1196_vm2, %v4423_v50 }
 0x5a9   : > { %7573 = vmatmul.mubr.msk.f32.gmra.mrb[254].mxu0 %vm1196_vm2, %v4424_v41 }
 0x600   : > { %v7481_v38 = vpop.f32.mrb[192].mxu0 }
 0x601   : > { %v4700_v32 = vadd.f32 %v7481_v38, %v9209_v63  ;;  %v4694_v19 = vpop.f32.mrb[193].mxu0 }
 0x602   : > { %v4695_v30 = vadd.f32 %v9209_v63, %v4694_v19 }
 0x603   : > { %v5014_v5 = vmax.f32 %v4700_v32, 0.0 }
 0x604   : > { %v5013_v36 = vmax.f32 %v4695_v30, 0.0  ;;  %v7484_v40 = vpop.f32.mrb[194].mxu0 }
 0x605   : > { %v4710_v56 = vadd.f32 %v7484_v40, %v9209_v63  ;;  %v4704_v27 = vpop.f32.mrb[195].mxu0 }
 0x606   : > { %v4705_v37 = vadd.f32 %v9209_v63, %v4704_v27  ;;  %7583 = vmatprep.mubr.msk.f32.mxu1 %vm1196_vm2, %v5013_v36 }
 0x607   : > { %7584 = vmatmul.mubr.msk.f32.vlgmr.msra.gmra.mrb[192].mxu1 %vm1196_vm2, %v5014_v5  ;;  %v5016_v15 = vmax.f32 %v4710_v56, 0.0 }
 0x608   : > { %v5015_v26 = vmax.f32 %v4705_v37, 0.0  ;;  %v7487_v25 = vpop.f32.mrb[196].mxu0 }
 0x609   : > { %v4720_v42 = vadd.f32 %v7487_v25, %v9209_v63  ;;  %v4714_v12 = vpop.f32.mrb[197].mxu0 }
 0x60a   : > { %v4715_v55 = vadd.f32 %v9209_v63, %v4714_v12  ;;  %7586 = vmatprep.mubr.msk.f32.mxu1 %vm1196_vm2, %v5015_v26 }
 0x60b   : > { %7587 = vmatmul.mubr.msk.f32.gmra.mrb[194].mxu1 %vm1196_vm2, %v5016_v15  ;;  %v5018_v29 = vmax.f32 %v4720_v42, 0.0 }
 0x60c   : > { %v5017_v58 = vmax.f32 %v4715_v55, 0.0  ;;  %v7490_v33 = vpop.f32.mrb[198].mxu0 }
 0x60d   : > { %v4730_v28 = vadd.f32 %v7490_v33, %v9209_v63  ;;  %v4724_v62 = vpop.f32.mrb[199].mxu0 }
 0x60e   : > { %v4725_v9 = vadd.f32 %v9209_v63, %v4724_v62  ;;  %7589 = vmatprep.mubr.msk.f32.mxu1 %vm1196_vm2, %v5017_v58 }
 0x60f   : > { %7590 = vmatmul.mubr.msk.f32.gmra.mrb[196].mxu1 %vm1196_vm2, %v5018_v29  ;;  %v5020_v47 = vmax.f32 %v4730_v28, 0.0 }
 0x610   : > { %v5019_v48 = vmax.f32 %v4725_v9, 0.0  ;;  %v7493_v11 = vpop.f32.mrb[200].mxu0 }
 0x611   : > { %v4740_v52 = vadd.f32 %v7493_v11, %v9209_v63  ;;  %v4734_v39 = vpop.f32.mrb[201].mxu0 }
 0x612   : > { %v4735_v59 = vadd.f32 %v9209_v63, %v4734_v39  ;;  %7592 = vmatprep.mubr.msk.f32.mxu1 %vm1196_vm2, %v5019_v48 }
 0x613   : > { %7593 = vmatmul.mubr.msk.f32.gmra.mrb[198].mxu1 %vm1196_vm2, %v5020_v47  ;;  %v5022_v1 = vmax.f32 %v4740_v52, 0.0 }
 0x614   : > { %v5021_v61 = vmax.f32 %v4735_v59, 0.0  ;;  %v7496_v16 = vpop.f32.mrb[202].mxu0 }
 0x615   : > { %v4750_v54 = vadd.f32 %v7496_v16, %v9209_v63  ;;  %v4744_v34 = vpop.f32.mrb[203].mxu0 }
 0x616   : > { %v4745_v18 = vadd.f32 %v9209_v63, %v4744_v34  ;;  %7595 = vmatprep.mubr.msk.f32.mxu1 %vm1196_vm2, %v5021_v61 }
 0x617   : > { %7596 = vmatmul.mubr.msk.f32.gmra.mrb[200].mxu1 %vm1196_vm2, %v5022_v1  ;;  %v5024_v35 = vmax.f32 %v4750_v54, 0.0 }
 0x618   : > { %v5023_v20 = vmax.f32 %v4745_v18, 0.0  ;;  %v7499_v45 = vpop.f32.mrb[204].mxu0 }
 0x619   : > { %v4760_v4 = vadd.f32 %v7499_v45, %v9209_v63  ;;  %v4754_v22 = vpop.f32.mrb[205].mxu0 }
 0x61a   : > { %v4755_v53 = vadd.f32 %v9209_v63, %v4754_v22  ;;  %7598 = vmatprep.mubr.msk.f32.mxu1 %vm1196_vm2, %v5023_v20 }
 0x61b   : > { %7599 = vmatmul.mubr.msk.f32.gmra.mrb[202].mxu1 %vm1196_vm2, %v5024_v35  ;;  %v5026_v49 = vmax.f32 %v4760_v4, 0.0 }
 0x61c   : > { %v5025_v60 = vmax.f32 %v4755_v53, 0.0  ;;  %v7502_v24 = vpop.f32.mrb[206].mxu0 }
 0x61d   : > { %v4770_v13 = vadd.f32 %v7502_v24, %v9209_v63  ;;  %v4764_v51 = vpop.f32.mrb[207].mxu0 }
 0x61e   : > { %v4765_v7 = vadd.f32 %v9209_v63, %v4764_v51  ;;  %7601 = vmatprep.mubr.msk.f32.mxu1 %vm1196_vm2, %v5025_v60 }
 0x61f   : > { %7602 = vmatmul.mubr.msk.f32.gmra.mrb[204].mxu1 %vm1196_vm2, %v5026_v49  ;;  %v5028_v31 = vmax.f32 %v4770_v13, 0.0 }
 0x620   : > { %v5027_v44 = vmax.f32 %v4765_v7, 0.0  ;;  %v7505_v23 = vpop.f32.mrb[208].mxu0 }
 0x621   : > { %v4780_v2 = vadd.f32 %v7505_v23, %v9209_v63  ;;  %v4774_v10 = vpop.f32.mrb[209].mxu0 }
 0x622   : > { %v4775_v14 = vadd.f32 %v9209_v63, %v4774_v10  ;;  %7604 = vmatprep.mubr.msk.f32.mxu1 %vm1196_vm2, %v5027_v44 }
 0x623   : > { %7605 = vmatmul.mubr.msk.f32.gmra.mrb[206].mxu1 %vm1196_vm2, %v5028_v31  ;;  %v5030_v43 = vmax.f32 %v4780_v2, 0.0 }
 0x624   : > { %v5029_v0 = vmax.f32 %v4775_v14, 0.0  ;;  %v7508_v3 = vpop.f32.mrb[210].mxu0 }
 0x625   : > { %v4790_v6 = vadd.f32 %v7508_v3, %v9209_v63  ;;  %v4784_v57 = vpop.f32.mrb[211].mxu0 }
 0x626   : > { %v4785_v17 = vadd.f32 %v9209_v63, %v4784_v57  ;;  %7607 = vmatprep.mubr.msk.f32.mxu1 %vm1196_vm2, %v5029_v0 }
 0x627   : > { %7608 = vmatmul.mubr.msk.f32.gmra.mrb[208].mxu1 %vm1196_vm2, %v5030_v43  ;;  %v5032_v46 = vmax.f32 %v4790_v6, 0.0 }
 0x628   : > { %v5031_v21 = vmax.f32 %v4785_v17, 0.0  ;;  %v7511_v8 = vpop.f32.mrb[212].mxu0 }
 0x629   : > { %v4800_v50 = vadd.f32 %v7511_v8, %v9209_v63  ;;  %v4794_v41 = vpop.f32.mrb[213].mxu0 }
 0x62a   : > { %v4795_v38 = vadd.f32 %v9209_v63, %v4794_v41  ;;  %7610 = vmatprep.mubr.msk.f32.mxu1 %vm1196_vm2, %v5031_v21 }
 0x62b   : > { %7611 = vmatmul.mubr.msk.f32.gmra.mrb[210].mxu1 %vm1196_vm2, %v5032_v46  ;;  %v5034_v30 = vmax.f32 %v4800_v50, 0.0 }
 0x62c   : > { %v5033_v32 = vmax.f32 %v4795_v38, 0.0  ;;  %v7514_v19 = vpop.f32.mrb[214].mxu0 }
 0x62d   : > { %v4810_v36 = vadd.f32 %v7514_v19, %v9209_v63  ;;  %v4804_v40 = vpop.f32.mrb[215].mxu0 }
 0x62e   : > { %v4805_v5 = vadd.f32 %v9209_v63, %v4804_v40  ;;  %7613 = vmatprep.mubr.msk.f32.mxu1 %vm1196_vm2, %v5033_v32 }
 0x62f   : > { %7614 = vmatmul.mubr.msk.f32.gmra.mrb[212].mxu1 %vm1196_vm2, %v5034_v30  ;;  %v5036_v37 = vmax.f32 %v4810_v36, 0.0 }
 0x630   : > { %v5035_v56 = vmax.f32 %v4805_v5, 0.0  ;;  %v7517_v27 = vpop.f32.mrb[216].mxu0 }
 0x631   : > { %v4820_v26 = vadd.f32 %v7517_v27, %v9209_v63  ;;  %v4814_v25 = vpop.f32.mrb[217].mxu0 }
 0x632   : > { %v4815_v15 = vadd.f32 %v9209_v63, %v4814_v25  ;;  %7616 = vmatprep.mubr.msk.f32.mxu1 %vm1196_vm2, %v5035_v56 }
 0x633   : > { %7617 = vmatmul.mubr.msk.f32.gmra.mrb[214].mxu1 %vm1196_vm2, %v5036_v37  ;;  %v5038_v55 = vmax.f32 %v4820_v26, 0.0 }
 0x634   : > { %v5037_v42 = vmax.f32 %v4815_v15, 0.0  ;;  %v7520_v12 = vpop.f32.mrb[218].mxu0 }
 0x635   : > { %v4830_v58 = vadd.f32 %v7520_v12, %v9209_v63  ;;  %v4824_v33 = vpop.f32.mrb[219].mxu0 }
 0x636   : > { %v4825_v29 = vadd.f32 %v9209_v63, %v4824_v33  ;;  %7619 = vmatprep.mubr.msk.f32.mxu1 %vm1196_vm2, %v5037_v42 }
 0x637   : > { %7620 = vmatmul.mubr.msk.f32.gmra.mrb[216].mxu1 %vm1196_vm2, %v5038_v55  ;;  %v5040_v9 = vmax.f32 %v4830_v58, 0.0 }
 0x638   : > { %v5039_v28 = vmax.f32 %v4825_v29, 0.0  ;;  %v7523_v62 = vpop.f32.mrb[220].mxu0 }
 0x639   : > { %v4840_v48 = vadd.f32 %v7523_v62, %v9209_v63  ;;  %v4834_v11 = vpop.f32.mrb[221].mxu0 }
 0x63a   : > { %v4835_v47 = vadd.f32 %v9209_v63, %v4834_v11  ;;  %7622 = vmatprep.mubr.msk.f32.mxu1 %vm1196_vm2, %v5039_v28 }
 0x63b   : > { %7623 = vmatmul.mubr.msk.f32.gmra.mrb[218].mxu1 %vm1196_vm2, %v5040_v9  ;;  %v5042_v59 = vmax.f32 %v4840_v48, 0.0 }
 0x63c   : > { %v5041_v52 = vmax.f32 %v4835_v47, 0.0  ;;  %v7526_v39 = vpop.f32.mrb[222].mxu0 }
 0x63d   : > { %v4850_v61 = vadd.f32 %v7526_v39, %v9209_v63  ;;  %v4844_v16 = vpop.f32.mrb[223].mxu0 }
 0x63e   : > { %v4845_v1 = vadd.f32 %v9209_v63, %v4844_v16  ;;  %7625 = vmatprep.mubr.msk.f32.mxu1 %vm1196_vm2, %v5041_v52 }
 0x63f   : > { %7626 = vmatmul.mubr.msk.f32.gmra.mrb[220].mxu1 %vm1196_vm2, %v5042_v59  ;;  %v5044_v18 = vmax.f32 %v4850_v61, 0.0 }
 0x640   : > { %v5043_v54 = vmax.f32 %v4845_v1, 0.0  ;;  %v7529_v34 = vpop.f32.mrb[224].mxu0 }
 0x641   : > { %v4860_v20 = vadd.f32 %v7529_v34, %v9209_v63  ;;  %v4854_v45 = vpop.f32.mrb[225].mxu0 }
 0x642   : > { %v4855_v35 = vadd.f32 %v9209_v63, %v4854_v45  ;;  %7628 = vmatprep.mubr.msk.f32.mxu1 %vm1196_vm2, %v5043_v54 }
 0x643   : > { %7629 = vmatmul.mubr.msk.f32.gmra.mrb[222].mxu1 %vm1196_vm2, %v5044_v18  ;;  %v5046_v53 = vmax.f32 %v4860_v20, 0.0 }
 0x644   : > { %v5045_v4 = vmax.f32 %v4855_v35, 0.0  ;;  %v7532_v22 = vpop.f32.mrb[226].mxu0 }
 0x645   : > { %v4870_v60 = vadd.f32 %v7532_v22, %v9209_v63  ;;  %v4864_v24 = vpop.f32.mrb[227].mxu0 }
 0x646   : > { %v4865_v49 = vadd.f32 %v9209_v63, %v4864_v24  ;;  %7631 = vmatprep.mubr.msk.f32.mxu1 %vm1196_vm2, %v5045_v4 }
 0x647   : > { %7632 = vmatmul.mubr.msk.f32.gmra.mrb[224].mxu1 %vm1196_vm2, %v5046_v53  ;;  %v5048_v7 = vmax.f32 %v4870_v60, 0.0 }
 0x648   : > { %v5047_v13 = vmax.f32 %v4865_v49, 0.0  ;;  %v7535_v51 = vpop.f32.mrb[228].mxu0 }
 0x649   : > { %v4880_v44 = vadd.f32 %v7535_v51, %v9209_v63  ;;  %v4874_v23 = vpop.f32.mrb[229].mxu0 }
 0x64a   : > { %v4875_v31 = vadd.f32 %v9209_v63, %v4874_v23  ;;  %7634 = vmatprep.mubr.msk.f32.mxu1 %vm1196_vm2, %v5047_v13 }
 0x64b   : > { %7635 = vmatmul.mubr.msk.f32.gmra.mrb[226].mxu1 %vm1196_vm2, %v5048_v7  ;;  %v5050_v14 = vmax.f32 %v4880_v44, 0.0 }
 0x64c   : > { %v5049_v2 = vmax.f32 %v4875_v31, 0.0  ;;  %v7538_v10 = vpop.f32.mrb[230].mxu0 }
 0x64d   : > { %v4890_v0 = vadd.f32 %v7538_v10, %v9209_v63  ;;  %v4884_v3 = vpop.f32.mrb[231].mxu0 }
 0x64e   : > { %v4885_v43 = vadd.f32 %v9209_v63, %v4884_v3  ;;  %7637 = vmatprep.mubr.msk.f32.mxu1 %vm1196_vm2, %v5049_v2 }
 0x64f   : > { %7638 = vmatmul.mubr.msk.f32.gmra.mrb[228].mxu1 %vm1196_vm2, %v5050_v14  ;;  %v5052_v17 = vmax.f32 %v4890_v0, 0.0 }
 0x650   : > { %v5051_v6 = vmax.f32 %v4885_v43, 0.0  ;;  %v7541_v57 = vpop.f32.mrb[232].mxu0 }
 0x651   : > { %v4900_v21 = vadd.f32 %v7541_v57, %v9209_v63  ;;  %v4894_v8 = vpop.f32.mrb[233].mxu0 }
 0x652   : > { %v4895_v46 = vadd.f32 %v9209_v63, %v4894_v8  ;;  %7640 = vmatprep.mubr.msk.f32.mxu1 %vm1196_vm2, %v5051_v6 }
 0x653   : > { %7641 = vmatmul.mubr.msk.f32.gmra.mrb[230].mxu1 %vm1196_vm2, %v5052_v17  ;;  %v5054_v38 = vmax.f32 %v4900_v21, 0.0 }
 0x654   : > { %v5053_v50 = vmax.f32 %v4895_v46, 0.0  ;;  %v7544_v41 = vpop.f32.mrb[234].mxu0 }
 0x655   : > { %v4910_v32 = vadd.f32 %v7544_v41, %v9209_v63  ;;  %v4904_v19 = vpop.f32.mrb[235].mxu0 }
 0x656   : > { %v4905_v30 = vadd.f32 %v9209_v63, %v4904_v19  ;;  %7643 = vmatprep.mubr.msk.f32.mxu1 %vm1196_vm2, %v5053_v50 }
 0x657   : > { %7644 = vmatmul.mubr.msk.f32.gmra.mrb[232].mxu1 %vm1196_vm2, %v5054_v38  ;;  %v5056_v5 = vmax.f32 %v4910_v32, 0.0 }
 0x658   : > { %v5055_v36 = vmax.f32 %v4905_v30, 0.0  ;;  %v7547_v40 = vpop.f32.mrb[236].mxu0  ;;  %v9342_v30 = vld [vmem:[%s9493_s11] ss:$0 sm:$0xff] }
 0x659   : > { %v4920_v56 = vadd.f32 %v7547_v40, %v9209_v63  ;;  %v4914_v27 = vpop.f32.mrb[237].mxu0 }
 0x65a   : > { %v4915_v37 = vadd.f32 %v9209_v63, %v4914_v27  ;;  %7646 = vmatprep.mubr.msk.f32.mxu1 %vm1196_vm2, %v5055_v36 }
 0x65b   : > { %7647 = vmatmul.mubr.msk.f32.gmra.mrb[234].mxu1 %vm1196_vm2, %v5056_v5  ;;  %v5058_v15 = vmax.f32 %v4920_v56, 0.0 }
 0x65c   : > { %v5057_v26 = vmax.f32 %v4915_v37, 0.0  ;;  %v7550_v25 = vpop.f32.mrb[238].mxu0 }
 0x65d   : > { %v4930_v42 = vadd.f32 %v7550_v25, %v9209_v63  ;;  %v4924_v12 = vpop.f32.mrb[239].mxu0 }
 0x65e   : > { %v4925_v55 = vadd.f32 %v9209_v63, %v4924_v12  ;;  %7649 = vmatprep.mubr.msk.f32.mxu1 %vm1196_vm2, %v5057_v26 }
 0x65f   : > { %7650 = vmatmul.mubr.msk.f32.gmra.mrb[236].mxu1 %vm1196_vm2, %v5058_v15  ;;  %v5060_v29 = vmax.f32 %v4930_v42, 0.0 }
 0x660   : > { %v5059_v58 = vmax.f32 %v4925_v55, 0.0  ;;  %v7553_v33 = vpop.f32.mrb[240].mxu0 }
 0x661   : > { %v4940_v28 = vadd.f32 %v7553_v33, %v9209_v63  ;;  %v4934_v62 = vpop.f32.mrb[241].mxu0 }
 0x662   : > { %v4935_v9 = vadd.f32 %v9209_v63, %v4934_v62  ;;  %7652 = vmatprep.mubr.msk.f32.mxu1 %vm1196_vm2, %v5059_v58 }
 0x663   : > { %7653 = vmatmul.mubr.msk.f32.gmra.mrb[238].mxu1 %vm1196_vm2, %v5060_v29  ;;  %v5062_v47 = vmax.f32 %v4940_v28, 0.0 }
 0x664   : > { %v5061_v48 = vmax.f32 %v4935_v9, 0.0  ;;  %v7556_v11 = vpop.f32.mrb[242].mxu0 }
 0x665   : > { %v4950_v52 = vadd.f32 %v7556_v11, %v9209_v63  ;;  %v4944_v39 = vpop.f32.mrb[243].mxu0 }
 0x666   : > { %v4945_v59 = vadd.f32 %v9209_v63, %v4944_v39  ;;  %7655 = vmatprep.mubr.msk.f32.mxu1 %vm1196_vm2, %v5061_v48 }
 0x667   : > { %7656 = vmatmul.mubr.msk.f32.gmra.mrb[240].mxu1 %vm1196_vm2, %v5062_v47  ;;  %v5064_v1 = vmax.f32 %v4950_v52, 0.0 }
 0x668   : > { %v5063_v61 = vmax.f32 %v4945_v59, 0.0  ;;  %v7559_v16 = vpop.f32.mrb[244].mxu0 }
 0x669   : > { %v4960_v54 = vadd.f32 %v7559_v16, %v9209_v63  ;;  %v4954_v34 = vpop.f32.mrb[245].mxu0 }
 0x66a   : > { %v4955_v18 = vadd.f32 %v9209_v63, %v4954_v34  ;;  %7658 = vmatprep.mubr.msk.f32.mxu1 %vm1196_vm2, %v5063_v61 }
 0x66b   : > { %7659 = vmatmul.mubr.msk.f32.gmra.mrb[242].mxu1 %vm1196_vm2, %v5064_v1  ;;  %v5066_v35 = vmax.f32 %v4960_v54, 0.0 }
 0x66c   : > { %v5065_v20 = vmax.f32 %v4955_v18, 0.0  ;;  %v7562_v45 = vpop.f32.mrb[246].mxu0 }
 0x66d   : > { %v4970_v4 = vadd.f32 %v7562_v45, %v9209_v63  ;;  %v4964_v22 = vpop.f32.mrb[247].mxu0 }
 0x66e   : > { %v4965_v53 = vadd.f32 %v9209_v63, %v4964_v22  ;;  %7661 = vmatprep.mubr.msk.f32.mxu1 %vm1196_vm2, %v5065_v20 }
 0x66f   : > { %7662 = vmatmul.mubr.msk.f32.gmra.mrb[244].mxu1 %vm1196_vm2, %v5066_v35  ;;  %v5068_v49 = vmax.f32 %v4970_v4, 0.0 }
 0x670   : > { %v5067_v60 = vmax.f32 %v4965_v53, 0.0  ;;  %v7565_v24 = vpop.f32.mrb[248].mxu0 }
 0x671   : > { %v4980_v13 = vadd.f32 %v7565_v24, %v9209_v63  ;;  %v4974_v51 = vpop.f32.mrb[249].mxu0 }
 0x672   : > { %v4975_v7 = vadd.f32 %v9209_v63, %v4974_v51  ;;  %7664 = vmatprep.mubr.msk.f32.mxu1 %vm1196_vm2, %v5067_v60 }
 0x673   : > { %7665 = vmatmul.mubr.msk.f32.gmra.mrb[246].mxu1 %vm1196_vm2, %v5068_v49  ;;  %v5070_v31 = vmax.f32 %v4980_v13, 0.0 }
 0x674   : > { %v5069_v44 = vmax.f32 %v4975_v7, 0.0  ;;  %v7568_v23 = vpop.f32.mrb[250].mxu0 }
 0x675   : > { %v4990_v2 = vadd.f32 %v7568_v23, %v9209_v63  ;;  %v4984_v10 = vpop.f32.mrb[251].mxu0 }
 0x676   : > { %v4985_v14 = vadd.f32 %v9209_v63, %v4984_v10  ;;  %7667 = vmatprep.mubr.msk.f32.mxu1 %vm1196_vm2, %v5069_v44 }
 0x677   : > { %7668 = vmatmul.mubr.msk.f32.gmra.mrb[248].mxu1 %vm1196_vm2, %v5070_v31  ;;  %v5072_v43 = vmax.f32 %v4990_v2, 0.0 }
 0x678   : > { %v5071_v0 = vmax.f32 %v4985_v14, 0.0  ;;  %v7571_v3 = vpop.f32.mrb[252].mxu0 }
 0x679   : > { %v5000_v6 = vadd.f32 %v7571_v3, %v9209_v63  ;;  %v4994_v57 = vpop.f32.mrb[253].mxu0 }
 0x67a   : > { %v4995_v17 = vadd.f32 %v9209_v63, %v4994_v57  ;;  %7670 = vmatprep.mubr.msk.f32.mxu1 %vm1196_vm2, %v5071_v0 }
 0x67b   : > { %7671 = vmatmul.mubr.msk.f32.gmra.mrb[250].mxu1 %vm1196_vm2, %v5072_v43  ;;  %v5074_v46 = vmax.f32 %v5000_v6, 0.0 }
 0x67c   : > { %v5073_v21 = vmax.f32 %v4995_v17, 0.0  ;;  %v7574_v8 = vpop.f32.mrb[254].mxu0 }
 0x67d   : > { %v5010_v50 = vadd.f32 %v7574_v8, %v9209_v63  ;;  %v5004_v41 = vpop.f32.mrb[255].mxu0 }
 0x67e   : > { %v5005_v38 = vadd.f32 %v9209_v63, %v5004_v41  ;;  %7673 = vmatprep.mubr.msk.f32.mxu1 %vm1196_vm2, %v5073_v21 }
 0x67f   : > { %7674 = vmatmul.mubr.msk.f32.gmra.mrb[252].mxu1 %vm1196_vm2, %v5074_v46  ;;  %v5076_v19 = vmax.f32 %v5010_v50, 0.0 }
 0x680   : > { %v5075_v32 = vmax.f32 %v5005_v38, 0.0 }
 0x682   : > { %7676 = vmatprep.mubr.msk.f32.mxu1 %vm1196_vm2, %v5075_v32 }
 0x683   : > { %7677 = vmatmul.mubr.msk.f32.gmra.mrb[254].mxu1 %vm1196_vm2, %v5076_v19 }
 0x6da   : > { %v7585_v63 = vpop.f32.mrb[192].mxu1 }
 0x6db   : > { %v5352_v36 = vadd.f32 %v7585_v63, %v9342_v30  ;;  %v5346_v40 = vpop.f32.mrb[193].mxu1 }
 0x6dc   : > { %v5347_v5 = vadd.f32 %v9342_v30, %v5346_v40 }
 0x6dd   : > { %5666 = vst [vmem:[%s9349_s16 + $0x8] sm:$0xff] %v5352_v36 }
 0x6de   : > { %5665 = vst [vmem:[%s9349_s16] sm:$0xff] %v5347_v5  ;;  %v7588_v56 = vpop.f32.mrb[194].mxu1 }
 0x6df   : > { %v5362_v27 = vadd.f32 %v7588_v56, %v9342_v30  ;;  %v5356_v37 = vpop.f32.mrb[195].mxu1 }
 0x6e0   : > { %v5357_v26 = vadd.f32 %v9342_v30, %v5356_v37 }
 0x6e1   : > { %5668 = vst [vmem:[%s9349_s16 + $0x18] sm:$0xff] %v5362_v27 }
 0x6e2   : > { %5667 = vst [vmem:[%s9349_s16 + $0x10] sm:$0xff] %v5357_v26  ;;  %v7591_v25 = vpop.f32.mrb[196].mxu1 }
 0x6e3   : > { %v5372_v15 = vadd.f32 %v7591_v25, %v9342_v30  ;;  %v5366_v42 = vpop.f32.mrb[197].mxu1 }
 0x6e4   : > { %v5367_v12 = vadd.f32 %v9342_v30, %v5366_v42 }
 0x6e5   : > { %5670 = vst [vmem:[%s9349_s16 + $0x28] sm:$0xff] %v5372_v15 }
 0x6e6   : > { %5669 = vst [vmem:[%s9349_s16 + $0x20] sm:$0xff] %v5367_v12  ;;  %v7594_v55 = vpop.f32.mrb[198].mxu1 }
 0x6e7   : > { %v5382_v58 = vadd.f32 %v7594_v55, %v9342_v30  ;;  %v5376_v33 = vpop.f32.mrb[199].mxu1 }
 0x6e8   : > { %v5377_v29 = vadd.f32 %v9342_v30, %v5376_v33 }
 0x6e9   : > { %5672 = vst [vmem:[%s9349_s16 + $0x38] sm:$0xff] %v5382_v58 }
 0x6ea   : > { %5671 = vst [vmem:[%s9349_s16 + $0x30] sm:$0xff] %v5377_v29  ;;  %v7597_v28 = vpop.f32.mrb[200].mxu1 }
 0x6eb   : > { %v5392_v62 = vadd.f32 %v7597_v28, %v9342_v30  ;;  %v5386_v9 = vpop.f32.mrb[201].mxu1 }
 0x6ec   : > { %v5387_v48 = vadd.f32 %v9342_v30, %v5386_v9 }
 0x6ed   : > { %5674 = vst [vmem:[%s9349_s16 + $0x48] sm:$0xff] %v5392_v62 }
 0x6ee   : > { %5673 = vst [vmem:[%s9349_s16 + $0x40] sm:$0xff] %v5387_v48  ;;  %v7600_v11 = vpop.f32.mrb[202].mxu1 }
 0x6ef   : > { %v5402_v47 = vadd.f32 %v7600_v11, %v9342_v30  ;;  %v5396_v52 = vpop.f32.mrb[203].mxu1 }
 0x6f0   : > { %v5397_v39 = vadd.f32 %v9342_v30, %v5396_v52 }
 0x6f1   : > { %5676 = vst [vmem:[%s9349_s16 + $0x58] sm:$0xff] %v5402_v47 }
 0x6f2   : > { %5675 = vst [vmem:[%s9349_s16 + $0x50] sm:$0xff] %v5397_v39  ;;  %v7603_v59 = vpop.f32.mrb[204].mxu1 }
 0x6f3   : > { %v5412_v61 = vadd.f32 %v7603_v59, %v9342_v30  ;;  %v5406_v16 = vpop.f32.mrb[205].mxu1 }
 0x6f4   : > { %v5407_v1 = vadd.f32 %v9342_v30, %v5406_v16 }
 0x6f5   : > { %5678 = vst [vmem:[%s9349_s16 + $0x68] sm:$0xff] %v5412_v61 }
 0x6f6   : > { %5677 = vst [vmem:[%s9349_s16 + $0x60] sm:$0xff] %v5407_v1  ;;  %v7606_v54 = vpop.f32.mrb[206].mxu1 }
 0x6f7   : > { %v5422_v34 = vadd.f32 %v7606_v54, %v9342_v30  ;;  %v5416_v18 = vpop.f32.mrb[207].mxu1 }
 0x6f8   : > { %v5417_v20 = vadd.f32 %v9342_v30, %v5416_v18 }
 0x6f9   : > { %5680 = vst [vmem:[%s9349_s16 + $0x78] sm:$0xff] %v5422_v34 }
 0x6fa   : > { %5679 = vst [vmem:[%s9349_s16 + $0x70] sm:$0xff] %v5417_v20  ;;  %v7609_v45 = vpop.f32.mrb[208].mxu1 }
 0x6fb   : > { %v5432_v35 = vadd.f32 %v7609_v45, %v9342_v30  ;;  %v5426_v4 = vpop.f32.mrb[209].mxu1 }
 0x6fc   : > { %v5427_v22 = vadd.f32 %v9342_v30, %v5426_v4 }
 0x6fd   : > { %5682 = vst [vmem:[%s9349_s16 + $0x88] sm:$0xff] %v5432_v35 }
 0x6fe   : > { %5681 = vst [vmem:[%s9349_s16 + $0x80] sm:$0xff] %v5427_v22  ;;  %v7612_v53 = vpop.f32.mrb[210].mxu1 }
 0x6ff   : > { %v5442_v60 = vadd.f32 %v7612_v53, %v9342_v30  ;;  %v5436_v24 = vpop.f32.mrb[211].mxu1 }
 0x700   : > { %v5437_v49 = vadd.f32 %v9342_v30, %v5436_v24 }
 0x701   : > { %5684 = vst [vmem:[%s9349_s16 + $0x98] sm:$0xff] %v5442_v60 }
 0x702   : > { %5683 = vst [vmem:[%s9349_s16 + $0x90] sm:$0xff] %v5437_v49  ;;  %v7615_v13 = vpop.f32.mrb[212].mxu1 }
 0x703   : > { %v5452_v51 = vadd.f32 %v7615_v13, %v9342_v30  ;;  %v5446_v7 = vpop.f32.mrb[213].mxu1 }
 0x704   : > { %v5447_v44 = vadd.f32 %v9342_v30, %v5446_v7 }
 0x705   : > { %5686 = vst [vmem:[%s9349_s16 + $0xa8] sm:$0xff] %v5452_v51 }
 0x706   : > { %5685 = vst [vmem:[%s9349_s16 + $0xa0] sm:$0xff] %v5447_v44  ;;  %v7618_v23 = vpop.f32.mrb[214].mxu1 }
 0x707   : > { %v5462_v31 = vadd.f32 %v7618_v23, %v9342_v30  ;;  %v5456_v2 = vpop.f32.mrb[215].mxu1 }
 0x708   : > { %v5457_v10 = vadd.f32 %v9342_v30, %v5456_v2 }
 0x709   : > { %5688 = vst [vmem:[%s9349_s16 + $0xb8] sm:$0xff] %v5462_v31 }
 0x70a   : > { %5687 = vst [vmem:[%s9349_s16 + $0xb0] sm:$0xff] %v5457_v10  ;;  %v7621_v14 = vpop.f32.mrb[216].mxu1 }
 0x70b   : > { %v5472_v0 = vadd.f32 %v7621_v14, %v9342_v30  ;;  %v5466_v3 = vpop.f32.mrb[217].mxu1 }
 0x70c   : > { %v5467_v43 = vadd.f32 %v9342_v30, %v5466_v3 }
 0x70d   : > { %5690 = vst [vmem:[%s9349_s16 + $0xc8] sm:$0xff] %v5472_v0 }
 0x70e   : > { %5689 = vst [vmem:[%s9349_s16 + $0xc0] sm:$0xff] %v5467_v43  ;;  %v7624_v6 = vpop.f32.mrb[218].mxu1 }
 0x70f   : > { %v5482_v57 = vadd.f32 %v7624_v6, %v9342_v30  ;;  %v5476_v17 = vpop.f32.mrb[219].mxu1 }
 0x710   : > { %v5477_v21 = vadd.f32 %v9342_v30, %v5476_v17 }
 0x711   : > { %5692 = vst [vmem:[%s9349_s16 + $0xd8] sm:$0xff] %v5482_v57 }
 0x712   : > { %5691 = vst [vmem:[%s9349_s16 + $0xd0] sm:$0xff] %v5477_v21  ;;  %v7627_v8 = vpop.f32.mrb[220].mxu1 }
 0x713   : > { %v5492_v46 = vadd.f32 %v7627_v8, %v9342_v30  ;;  %v5486_v50 = vpop.f32.mrb[221].mxu1 }
 0x714   : > { %v5487_v41 = vadd.f32 %v9342_v30, %v5486_v50 }
 0x715   : > { %5694 = vst [vmem:[%s9349_s16 + $0xe8] sm:$0xff] %v5492_v46 }
 0x716   : > { %5693 = vst [vmem:[%s9349_s16 + $0xe0] sm:$0xff] %v5487_v41  ;;  %v7630_v38 = vpop.f32.mrb[222].mxu1 }
 0x717   : > { %v5502_v32 = vadd.f32 %v7630_v38, %v9342_v30  ;;  %v5496_v19 = vpop.f32.mrb[223].mxu1 }
 0x718   : > { %v5497_v63 = vadd.f32 %v9342_v30, %v5496_v19 }
 0x719   : > { %5696 = vst [vmem:[%s9349_s16 + $0xf8] sm:$0xff] %v5502_v32 }
 0x71a   : > { %5695 = vst [vmem:[%s9349_s16 + $0xf0] sm:$0xff] %v5497_v63  ;;  %v7633_v36 = vpop.f32.mrb[224].mxu1 }
 0x71b   : > { %v5512_v40 = vadd.f32 %v7633_v36, %v9342_v30  ;;  %v5506_v5 = vpop.f32.mrb[225].mxu1 }
 0x71c   : > { %v5507_v56 = vadd.f32 %v9342_v30, %v5506_v5 }
 0x71d   : > { %5698 = vst [vmem:[%s9349_s16 + $0x108] sm:$0xff] %v5512_v40 }
 0x71e   : > { %5697 = vst [vmem:[%s9349_s16 + $0x100] sm:$0xff] %v5507_v56  ;;  %v7636_v27 = vpop.f32.mrb[226].mxu1 }
 0x71f   : > { %v5522_v37 = vadd.f32 %v7636_v27, %v9342_v30  ;;  %v5516_v26 = vpop.f32.mrb[227].mxu1 }
 0x720   : > { %v5517_v25 = vadd.f32 %v9342_v30, %v5516_v26 }
 0x721   : > { %5700 = vst [vmem:[%s9349_s16 + $0x118] sm:$0xff] %v5522_v37 }
 0x722   : > { %5699 = vst [vmem:[%s9349_s16 + $0x110] sm:$0xff] %v5517_v25  ;;  %v7639_v15 = vpop.f32.mrb[228].mxu1 }
 0x723   : > { %v5532_v42 = vadd.f32 %v7639_v15, %v9342_v30  ;;  %v5526_v12 = vpop.f32.mrb[229].mxu1 }
 0x724   : > { %v5527_v55 = vadd.f32 %v9342_v30, %v5526_v12 }
 0x725   : > { %5702 = vst [vmem:[%s9349_s16 + $0x128] sm:$0xff] %v5532_v42 }
 0x726   : > { %5701 = vst [vmem:[%s9349_s16 + $0x120] sm:$0xff] %v5527_v55  ;;  %v7642_v58 = vpop.f32.mrb[230].mxu1 }
 0x727   : > { %v5542_v33 = vadd.f32 %v7642_v58, %v9342_v30  ;;  %v5536_v29 = vpop.f32.mrb[231].mxu1 }
 0x728   : > { %v5537_v28 = vadd.f32 %v9342_v30, %v5536_v29 }
 0x729   : > { %5704 = vst [vmem:[%s9349_s16 + $0x138] sm:$0xff] %v5542_v33 }
 0x72a   : > { %5703 = vst [vmem:[%s9349_s16 + $0x130] sm:$0xff] %v5537_v28  ;;  %v7645_v62 = vpop.f32.mrb[232].mxu1 }
 0x72b   : > { %v5552_v9 = vadd.f32 %v7645_v62, %v9342_v30  ;;  %v5546_v48 = vpop.f32.mrb[233].mxu1 }
 0x72c   : > { %v5547_v11 = vadd.f32 %v9342_v30, %v5546_v48 }
 0x72d   : > { %5706 = vst [vmem:[%s9349_s16 + $0x148] sm:$0xff] %v5552_v9 }
 0x72e   : > { %5705 = vst [vmem:[%s9349_s16 + $0x140] sm:$0xff] %v5547_v11  ;;  %v7648_v47 = vpop.f32.mrb[234].mxu1 }
 0x72f   : > { %v5562_v52 = vadd.f32 %v7648_v47, %v9342_v30  ;;  %v5556_v39 = vpop.f32.mrb[235].mxu1 }
 0x730   : > { %v5557_v59 = vadd.f32 %v9342_v30, %v5556_v39 }
 0x731   : > { %5708 = vst [vmem:[%s9349_s16 + $0x158] sm:$0xff] %v5562_v52 }
 0x732   : > { %5707 = vst [vmem:[%s9349_s16 + $0x150] sm:$0xff] %v5557_v59  ;;  %v7651_v61 = vpop.f32.mrb[236].mxu1 }
 0x733   : > { %v5572_v16 = vadd.f32 %v7651_v61, %v9342_v30  ;;  %v5566_v1 = vpop.f32.mrb[237].mxu1 }
 0x734   : > { %v5567_v54 = vadd.f32 %v9342_v30, %v5566_v1 }
 0x735   : > { %5710 = vst [vmem:[%s9349_s16 + $0x168] sm:$0xff] %v5572_v16 }
 0x736   : > { %5709 = vst [vmem:[%s9349_s16 + $0x160] sm:$0xff] %v5567_v54  ;;  %v7654_v34 = vpop.f32.mrb[238].mxu1 }
 0x737   : > { %v5582_v18 = vadd.f32 %v7654_v34, %v9342_v30  ;;  %v5576_v20 = vpop.f32.mrb[239].mxu1 }
 0x738   : > { %v5577_v45 = vadd.f32 %v9342_v30, %v5576_v20 }
 0x739   : > { %5712 = vst [vmem:[%s9349_s16 + $0x178] sm:$0xff] %v5582_v18 }
 0x73a   : > { %5711 = vst [vmem:[%s9349_s16 + $0x170] sm:$0xff] %v5577_v45  ;;  %v7657_v35 = vpop.f32.mrb[240].mxu1 }
 0x73b   : > { %v5592_v4 = vadd.f32 %v7657_v35, %v9342_v30  ;;  %v5586_v22 = vpop.f32.mrb[241].mxu1 }
 0x73c   : > { %v5587_v53 = vadd.f32 %v9342_v30, %v5586_v22 }
 0x73d   : > { %5714 = vst [vmem:[%s9349_s16 + $0x188] sm:$0xff] %v5592_v4 }
 0x73e   : > { %5713 = vst [vmem:[%s9349_s16 + $0x180] sm:$0xff] %v5587_v53  ;;  %v7660_v60 = vpop.f32.mrb[242].mxu1 }
 0x73f   : > { %v5602_v24 = vadd.f32 %v7660_v60, %v9342_v30  ;;  %v5596_v49 = vpop.f32.mrb[243].mxu1 }
 0x740   : > { %v5597_v13 = vadd.f32 %v9342_v30, %v5596_v49 }
 0x741   : > { %5716 = vst [vmem:[%s9349_s16 + $0x198] sm:$0xff] %v5602_v24 }
 0x742   : > { %5715 = vst [vmem:[%s9349_s16 + $0x190] sm:$0xff] %v5597_v13  ;;  %v7663_v51 = vpop.f32.mrb[244].mxu1 }
 0x743   : > { %v5612_v7 = vadd.f32 %v7663_v51, %v9342_v30  ;;  %v5606_v44 = vpop.f32.mrb[245].mxu1 }
 0x744   : > { %v5607_v23 = vadd.f32 %v9342_v30, %v5606_v44 }
 0x745   : > { %5718 = vst [vmem:[%s9349_s16 + $0x1a8] sm:$0xff] %v5612_v7 }
 0x746   : > { %5717 = vst [vmem:[%s9349_s16 + $0x1a0] sm:$0xff] %v5607_v23  ;;  %v7666_v31 = vpop.f32.mrb[246].mxu1 }
 0x747   : > { %v5622_v2 = vadd.f32 %v7666_v31, %v9342_v30  ;;  %v5616_v10 = vpop.f32.mrb[247].mxu1 }
 0x748   : > { %v5617_v14 = vadd.f32 %v9342_v30, %v5616_v10 }
 0x749   : > { %5720 = vst [vmem:[%s9349_s16 + $0x1b8] sm:$0xff] %v5622_v2 }
 0x74a   : > { %5719 = vst [vmem:[%s9349_s16 + $0x1b0] sm:$0xff] %v5617_v14  ;;  %v7669_v0 = vpop.f32.mrb[248].mxu1 }
 0x74b   : > { %v5632_v3 = vadd.f32 %v7669_v0, %v9342_v30  ;;  %v5626_v43 = vpop.f32.mrb[249].mxu1 }
 0x74c   : > { %v5627_v6 = vadd.f32 %v9342_v30, %v5626_v43 }
 0x74d   : > { %5722 = vst [vmem:[%s9349_s16 + $0x1c8] sm:$0xff] %v5632_v3 }
 0x74e   : > { %5721 = vst [vmem:[%s9349_s16 + $0x1c0] sm:$0xff] %v5627_v6  ;;  %v7672_v57 = vpop.f32.mrb[250].mxu1 }
 0x74f   : > { %v5642_v17 = vadd.f32 %v7672_v57, %v9342_v30  ;;  %v5636_v21 = vpop.f32.mrb[251].mxu1 }
 0x750   : > { %v5637_v8 = vadd.f32 %v9342_v30, %v5636_v21 }
 0x751   : > { %5724 = vst [vmem:[%s9349_s16 + $0x1d8] sm:$0xff] %v5642_v17 }
 0x752   : > { %5723 = vst [vmem:[%s9349_s16 + $0x1d0] sm:$0xff] %v5637_v8  ;;  %v7675_v46 = vpop.f32.mrb[252].mxu1 }
 0x753   : > { %v5652_v50 = vadd.f32 %v7675_v46, %v9342_v30  ;;  %v5646_v41 = vpop.f32.mrb[253].mxu1 }
 0x754   : > { %v5647_v38 = vadd.f32 %v9342_v30, %v5646_v41 }
 0x755   : > { %5726 = vst [vmem:[%s9349_s16 + $0x1e8] sm:$0xff] %v5652_v50 }
 0x756   : > { %5725 = vst [vmem:[%s9349_s16 + $0x1e0] sm:$0xff] %v5647_v38  ;;  %v7678_v32 = vpop.f32.mrb[254].mxu1 }
 0x757   : > { %v5662_v19 = vadd.f32 %v7678_v32, %v9342_v30  ;;  %v5656_v63 = vpop.f32.mrb[255].mxu1 }
 0x758   : > { %v5657_v36 = vadd.f32 %v9342_v30, %v5656_v63 }
 0x759   : > { %5728 = vst [vmem:[%s9349_s16 + $0x1f8] sm:$0xff] %v5662_v19 }
 0x75a   : > { %5727 = vst [vmem:[%s9349_s16 + $0x1f0] sm:$0xff] %v5657_v36 }
 0x75b PF: > { %s22_s21 = sadd.s32 1, %s7749_s21  }
 0x75c   : > { %p19_p4 = scmp.ge.s32.totalorder %s22_s21, 6  }
 0x75e   :  { %21 = sbr.rel (!%p19_p4) target bundleno = 1 (0x1), region = 98 }

</bundles_post_ra>
